<compile_context>
chip_gen: v6e
topology: v6e:2x2x1
jax: 0.10.0
libtpu: 0.0.40
codegen_flags: <defaults>
</compile_context>

<pallas_src>
import functools

import jax
import jax.numpy as jnp
from jax.experimental import pallas as pl
from jax.experimental.pallas import tpu as pltpu

LEAKY_SLOPE = 0.01        # nn.LeakyReLU() default negative_slope
BN_EPS = 1e-5             # nn.BatchNorm1d default eps
LATENT = 100
LATENT_PAD = 128          # lane-aligned latent dim (zero-padded)
IMG = 28 * 28             # 784
IMG_PAD = 896             # 7 * 128, lane-aligned output dim (zero-padded cols)

VMEM_LIMIT_BYTES = 32 << 20
_PER_ROW_VMEM_BYTES = 24 * 1024   # conservative per-row activation footprint


def _make_gnet_kernel(groups_per_step, group_rows):
    """Kernel factory; groups_per_step BN groups are folded into the matmul M."""

    def leaky(h):
        return jnp.where(h >= 0.0, h, LEAKY_SLOPE * h)

    def mm(h, w_bf16):
        # bf16 x bf16 -> f32 accumulation on the MXU.
        return jnp.dot(h.astype(jnp.bfloat16), w_bf16,
                       preferred_element_type=jnp.float32)

    def batchnorm(h, g_ref, be_ref):
        # BatchNorm1d training forward (batch mean, biased variance) with the
        # affine folded into one fused scale/shift. Statistics are computed
        # per BN group (each group == one independent PyTorch forward()).
        if groups_per_step == 1:
            mean = jnp.mean(h, axis=0, keepdims=True)
            var = jnp.mean(jnp.square(h - mean), axis=0, keepdims=True)
            scale = g_ref[...] * jax.lax.rsqrt(var + BN_EPS)
            shift = be_ref[...] - mean * scale
            return h * scale + shift
        f = h.shape[-1]
        h3 = h.reshape(groups_per_step, group_rows, f)
        mean = jnp.mean(h3, axis=1, keepdims=True)                 # (G, 1, F)
        var = jnp.mean(jnp.square(h3 - mean), axis=1, keepdims=True)
        scale = g_ref[...] * jax.lax.rsqrt(var + BN_EPS)           # (G, 1, F)
        shift = be_ref[...] - mean * scale
        return (h3 * scale + shift).reshape(groups_per_step * group_rows, f)

    def kernel(x_ref,
               w1_ref, b1_ref, g1_ref, be1_ref,
               w2_ref, b2_ref, g2_ref, be2_ref,
               w3_ref, s3_ref, b3_ref, g3_ref, be3_ref,
               w4_ref, s4_ref, b4_ref,
               out_ref):
        h = x_ref[...]                                             # (M, 128) f32
        # b1 / b2: resident bf16 weights.
        h = batchnorm(leaky(mm(h, w1_ref[...]) + b1_ref[...]), g1_ref, be1_ref)
        h = batchnorm(leaky(mm(h, w2_ref[...]) + b2_ref[...]), g2_ref, be2_ref)
        # b3: resident int8 weights; per-column dequant scale folded into the
        # epilogue (int8 values are exactly representable in bf16).
        h = mm(h, w3_ref[...].astype(jnp.bfloat16)) * s3_ref[...] + b3_ref[...]
        h = batchnorm(leaky(h), g3_ref, be3_ref)
        # fc: resident int8 weights -> Tanh. Padded columns are all-zero, so
        # they produce tanh(0) = 0 and are sliced off in the wrapper.
        h = mm(h, w4_ref[...].astype(jnp.bfloat16)) * s4_ref[...] + b4_ref[...]
        out_ref[...] = jnp.tanh(h)

    return kernel


def _quantize_per_column(w):
    """Symmetric int8 quantization with one f32 scale per output column."""
    amax = jnp.max(jnp.abs(w), axis=0, keepdims=True)
    scale = jnp.maximum(amax, 1e-12) / 127.0
    q = jnp.clip(jnp.round(w / scale), -127.0, 127.0).astype(jnp.int8)
    return q, scale.astype(jnp.float32)


def init_params(key):
    """Deterministic synthetic parameters matching GNet's shapes.

    Weights are pre-transposed to (in_features, out_features). w1's K dim is
    zero-padded 100 -> 128; w4/b4's N dim is zero-padded 784 -> 896. w1/w2 are
    stored bf16; w3/w4 are stored int8 with per-column f32 scales.
    """
    dims = [(LATENT, 256), (256, 512), (512, 1024), (1024, IMG)]
    keys = jax.random.split(key, 2 * len(dims))
    raw = []
    for i, (fin, fout) in enumerate(dims):
        bound = float(fin) ** -0.5   # PyTorch nn.Linear default init bound
        w = jax.random.uniform(keys[2 * i], (fin, fout), jnp.float32,
                               -bound, bound)
        b = jax.random.uniform(keys[2 * i + 1], (1, fout), jnp.float32,
                               -bound, bound)
        raw.append((w, b))
    (w1, b1), (w2, b2), (w3, b3), (w4, b4) = raw

    # Zero rows contribute nothing once x is zero-padded to 128 columns.
    w1 = jnp.pad(w1, ((0, LATENT_PAD - LATENT), (0, 0)))
    # Zero columns -> zero (pre-tanh) outputs in the padded lanes; sliced off.
    w4 = jnp.pad(w4, ((0, 0), (0, IMG_PAD - IMG)))
    b4 = jnp.pad(b4, ((0, 0), (0, IMG_PAD - IMG)))

    w3q, s3 = _quantize_per_column(w3)
    w4q, s4 = _quantize_per_column(w4)

    params = ((w1.astype(jnp.bfloat16), b1),
              (w2.astype(jnp.bfloat16), b2),
              (w3q, s3, b3),
              (w4q, s4, b4))
    # BatchNorm affine params (PyTorch default init: gamma=1, beta=0).
    bn = tuple((jnp.ones((1, n), jnp.float32), jnp.zeros((1, n), jnp.float32))
               for n in (256, 512, 1024))
    return params, bn


@functools.partial(jax.jit, static_argnames=("bn_group_rows", "rows_per_step"))
def gnet_forward(x, params, bn, *, bn_group_rows=None, rows_per_step=None):
    """GNet forward.

    bn_group_rows: rows per BatchNorm group. Default = whole batch (exact
        PyTorch training-mode forward). Set to pack several *independent*
        latent batches into one call; each group then gets its own BN stats
        (== separate forward() calls), folded into the matmul M dim.
    rows_per_step: rows per grid step (must be a multiple of bn_group_rows).
        Default = all rows -> a single grid step. Use smaller values only to
        bound VMEM for very large batches / exploit v7x's 2 TensorCores; the
        grid axis is marked "parallel" (groups are independent).
    """
    (w1, b1), (w2, b2), (w3q, s3, b3), (w4q, s4, b4) = params
    (g1, be1), (g2, be2), (g3, be3) = bn

    total_rows = x.shape[0]
    if bn_group_rows is None:
        bn_group_rows = total_rows
    if rows_per_step is None:
        rows_per_step = total_rows            # fold all BN groups into one step
    assert total_rows % bn_group_rows == 0, "batch must divide into BN groups"
    assert rows_per_step % bn_group_rows == 0, \
        "rows_per_step must be a multiple of bn_group_rows"
    assert total_rows % rows_per_step == 0
    groups_per_step = rows_per_step // bn_group_rows
    num_steps = total_rows // rows_per_step
    if num_steps > 1:
        # (8, 128) block constraint on partial-batch blocks.
        assert rows_per_step % 8 == 0, "rows_per_step must be a multiple of 8"

    # Zero-pad the latent dim to the lane width (w1 rows were zero-padded at
    # init, so the product is unchanged).
    if x.shape[1] < LATENT_PAD:
        x = jnp.pad(x, ((0, 0), (0, LATENT_PAD - x.shape[1])))

    weights = (w1, b1, g1, be1,
               w2, b2, g2, be2,
               w3q, s3, b3, g3, be3,
               w4q, s4, b4)

    # VMEM footprint guard (v7x has only 64 MiB physical VMEM per core).
    weight_bytes = sum(int(a.size) * a.dtype.itemsize for a in weights)
    est = weight_bytes + rows_per_step * _PER_ROW_VMEM_BYTES
    if est > VMEM_LIMIT_BYTES:
        raise ValueError(
            f"estimated VMEM footprint {est / 2**20:.1f} MiB exceeds "
            f"{VMEM_LIMIT_BYTES >> 20} MiB; use a smaller rows_per_step "
            "(with per-group BN via bn_group_rows) or implement streaming BN")

    # Weights / biases / BN params: whole-array, VMEM-resident across all grid
    # steps, single-buffered (no blocking -> no double-buffer allocation).
    resident = pl.BlockSpec(memory_space=pltpu.MemorySpace.VMEM)

    kernel = _make_gnet_kernel(groups_per_step, bn_group_rows)

    out = pl.pallas_call(
        kernel,
        out_shape=jax.ShapeDtypeStruct((total_rows, IMG_PAD), jnp.float32),
        grid=(num_steps,),
        in_specs=[pl.BlockSpec((rows_per_step, LATENT_PAD), lambda i: (i, 0))]
                 + [resident] * len(weights),
        out_specs=pl.BlockSpec((rows_per_step, IMG_PAD), lambda i: (i, 0)),
        compiler_params=pltpu.CompilerParams(
            dimension_semantics=("parallel",),
            vmem_limit_bytes=VMEM_LIMIT_BYTES),
    )(x, *weights)

    # Glue: drop the zero-padded output columns, then reshape like the PyTorch
    # x.reshape(-1, 1, 28, 28).
    return out[:, :IMG].reshape(-1, 1, 28, 28)


def gnet_reference(x, params, bn):
    """Pure-JAX reference with identical bf16/int8 weight math (full-batch BN)."""
    (w1, b1), (w2, b2), (w3q, s3, b3), (w4q, s4, b4) = params
    (g1, be1), (g2, be2), (g3, be3) = bn
    if x.shape[1] < LATENT_PAD:
        x = jnp.pad(x, ((0, 0), (0, LATENT_PAD - x.shape[1])))

    def mm(h, w):
        return jnp.dot(h.astype(jnp.bfloat16), w,
                       preferred_element_type=jnp.float32)

    def leaky(h):
        return jnp.where(h >= 0.0, h, LEAKY_SLOPE * h)

    def bnorm(h, g, be):
        mean = jnp.mean(h, axis=0, keepdims=True)
        var = jnp.mean(jnp.square(h - mean), axis=0, keepdims=True)
        scale = g * jax.lax.rsqrt(var + BN_EPS)
        return h * scale + (be - mean * scale)

    h = bnorm(leaky(mm(x, w1) + b1), g1, be1)
    h = bnorm(leaky(mm(h, w2) + b2), g2, be2)
    h = bnorm(leaky(mm(h, w3q.astype(jnp.bfloat16)) * s3 + b3), g3, be3)
    h = jnp.tanh(mm(h, w4q.astype(jnp.bfloat16)) * s4 + b4)
    return h[:, :IMG].reshape(-1, 1, 28, 28)


if __name__ == "__main__":
    key = jax.random.PRNGKey(0)
    k_param, k_x1, k_x2 = jax.random.split(key, 3)
    params, bn = init_params(k_param)

    # Case 1: one batch, full-batch BN statistics (exact nn.BatchNorm1d
    # training-mode forward), single grid step.
    B = 8
    x = jax.random.normal(k_x1, (B, LATENT), jnp.float32)   # latent noise z
    y = gnet_forward(x, params, bn)
    jax.block_until_ready(y)
    assert y.shape == (B, 1, 28, 28), y.shape
    y_ref = gnet_reference(x, params, bn)
    err1 = float(jnp.max(jnp.abs(y - y_ref)))
    assert err1 < 5e-3, f"case1 max abs error {err1}"

    # Case 2: 4 independent latent batches folded into the matmul M dimension
    # (single grid step); each group gets its own BN stats, equivalent to 4
    # separate PyTorch forward() calls.
    NB = 4
    xs = jax.random.normal(k_x2, (NB, B, LATENT), jnp.float32)
    y2 = gnet_forward(xs.reshape(NB * B, LATENT), params, bn, bn_group_rows=B)
    jax.block_until_ready(y2)
    assert y2.shape == (NB * B, 1, 28, 28), y2.shape
    y2_ref = jnp.concatenate(
        [gnet_reference(xs[i], params, bn) for i in range(NB)], axis=0)
    err2 = float(jnp.max(jnp.abs(y2 - y2_ref)))
    assert err2 < 5e-3, f"case2 max abs error {err2}"

    # Case 3: same packed batches, split over 2 grid steps (2 groups per step)
    # to exercise the blocked, "parallel" grid path (v7x: 2 TensorCores).
    y3 = gnet_forward(xs.reshape(NB * B, LATENT), params, bn,
                      bn_group_rows=B, rows_per_step=2 * B)
    jax.block_until_ready(y3)
    err3 = float(jnp.max(jnp.abs(y3 - y2_ref)))
    assert err3 < 5e-3, f"case3 max abs error {err3}"

    print("KERNEL_OK")
</pallas_src>

<mosaic_0001>
module attributes {stable_mosaic.version = 11 : i64} {
  func.func @kernel(%arg0: i32, %arg1: memref<8x128xf32, #tpu.memory_space<vmem>>, %arg2: memref<128x256xbf16, #tpu.memory_space<vmem>>, %arg3: memref<1x256xf32, #tpu.memory_space<vmem>>, %arg4: memref<1x256xf32, #tpu.memory_space<vmem>>, %arg5: memref<1x256xf32, #tpu.memory_space<vmem>>, %arg6: memref<256x512xbf16, #tpu.memory_space<vmem>>, %arg7: memref<1x512xf32, #tpu.memory_space<vmem>>, %arg8: memref<1x512xf32, #tpu.memory_space<vmem>>, %arg9: memref<1x512xf32, #tpu.memory_space<vmem>>, %arg10: memref<512x1024xi8, #tpu.memory_space<vmem>>, %arg11: memref<1x1024xf32, #tpu.memory_space<vmem>>, %arg12: memref<1x1024xf32, #tpu.memory_space<vmem>>, %arg13: memref<1x1024xf32, #tpu.memory_space<vmem>>, %arg14: memref<1x1024xf32, #tpu.memory_space<vmem>>, %arg15: memref<1024x896xi8, #tpu.memory_space<vmem>>, %arg16: memref<1x896xf32, #tpu.memory_space<vmem>>, %arg17: memref<1x896xf32, #tpu.memory_space<vmem>>, %arg18: memref<8x896xf32, #tpu.memory_space<vmem>>) attributes {dimension_semantics = [#tpu.dimension_semantics<parallel>], iteration_bounds = array<i64: 1>, scalar_prefetch = 0 : i64, scratch_operands = 0 : i64, tpu.core_type = #tpu.core_type<tc>, window_params = [{transform_indices = @transform_0, window_bounds = array<i64: 8, 128>}, {pipeline_mode = #tpu.pipeline_mode<synchronous>, transform_indices = @transform_1, window_bounds = array<i64: 128, 256>}, {pipeline_mode = #tpu.pipeline_mode<synchronous>, transform_indices = @transform_2, window_bounds = array<i64: 1, 256>}, {pipeline_mode = #tpu.pipeline_mode<synchronous>, transform_indices = @transform_3, window_bounds = array<i64: 1, 256>}, {pipeline_mode = #tpu.pipeline_mode<synchronous>, transform_indices = @transform_4, window_bounds = array<i64: 1, 256>}, {pipeline_mode = #tpu.pipeline_mode<synchronous>, transform_indices = @transform_5, window_bounds = array<i64: 256, 512>}, {pipeline_mode = #tpu.pipeline_mode<synchronous>, transform_indices = @transform_6, window_bounds = array<i64: 1, 512>}, {pipeline_mode = #tpu.pipeline_mode<synchronous>, transform_indices = @transform_7, window_bounds = array<i64: 1, 512>}, {pipeline_mode = #tpu.pipeline_mode<synchronous>, transform_indices = @transform_8, window_bounds = array<i64: 1, 512>}, {pipeline_mode = #tpu.pipeline_mode<synchronous>, transform_indices = @transform_9, window_bounds = array<i64: 512, 1024>}, {pipeline_mode = #tpu.pipeline_mode<synchronous>, transform_indices = @transform_10, window_bounds = array<i64: 1, 1024>}, {pipeline_mode = #tpu.pipeline_mode<synchronous>, transform_indices = @transform_11, window_bounds = array<i64: 1, 1024>}, {pipeline_mode = #tpu.pipeline_mode<synchronous>, transform_indices = @transform_12, window_bounds = array<i64: 1, 1024>}, {pipeline_mode = #tpu.pipeline_mode<synchronous>, transform_indices = @transform_13, window_bounds = array<i64: 1, 1024>}, {pipeline_mode = #tpu.pipeline_mode<synchronous>, transform_indices = @transform_14, window_bounds = array<i64: 1024, 896>}, {pipeline_mode = #tpu.pipeline_mode<synchronous>, transform_indices = @transform_15, window_bounds = array<i64: 1, 896>}, {pipeline_mode = #tpu.pipeline_mode<synchronous>, transform_indices = @transform_16, window_bounds = array<i64: 1, 896>}, {transform_indices = @transform_17, window_bounds = array<i64: 8, 896>}]} {
    %c0 = arith.constant 0 : index
    %c0_0 = arith.constant 0 : index
    %0 = vector.load %arg1[%c0, %c0_0] : memref<8x128xf32, #tpu.memory_space<vmem>>, vector<8x128xf32>
    %c0_1 = arith.constant 0 : index
    %c0_2 = arith.constant 0 : index
    %1 = vector.load %arg2[%c0_1, %c0_2] : memref<128x256xbf16, #tpu.memory_space<vmem>>, vector<128x256xbf16>
    %2 = arith.truncf %0 : vector<8x128xf32> to vector<8x128xbf16>
    %cst = arith.constant dense<0.000000e+00> : vector<8x256xf32>
    %3 = tpu.matmul %2, %1, %cst {dimension_numbers = #tpu.dot_dimension_numbers<[1], [0], [0], [1], [0, 0, 1, 1], [], []>} : vector<8x128xbf16>, vector<128x256xbf16>, vector<8x256xf32> -> vector<8x256xf32>
    %c0_3 = arith.constant 0 : index
    %c0_4 = arith.constant 0 : index
    %4 = vector.load %arg3[%c0_3, %c0_4] : memref<1x256xf32, #tpu.memory_space<vmem>>, vector<1x256xf32>
    %5 = vector.broadcast %4 : vector<1x256xf32> to vector<8x256xf32>
    %6 = arith.addf %3, %5 : vector<8x256xf32>
    %cst_5 = arith.constant 0.000000e+00 : f32
    %7 = vector.broadcast %cst_5 : f32 to vector<8x256xf32>
    %8 = arith.cmpf oge, %6, %7 : vector<8x256xf32>
    %cst_6 = arith.constant 0.00999999977 : f32
    %9 = vector.broadcast %cst_6 : f32 to vector<8x256xf32>
    %10 = arith.mulf %9, %6 : vector<8x256xf32>
    %11 = arith.select %8, %6, %10 : vector<8x256xi1>, vector<8x256xf32>
    %cst_7 = arith.constant dense<0.000000e+00> : vector<256xf32>
    %12 = vector.multi_reduction <add>, %11, %cst_7 [0] : vector<8x256xf32> to vector<256xf32>
    %13 = vector.shape_cast %12 : vector<256xf32> to vector<1x256xf32>
    %cst_8 = arith.constant 8.000000e+00 : f32
    %14 = vector.broadcast %cst_8 : f32 to vector<1x256xf32>
    %15 = arith.divf %13, %14 : vector<1x256xf32>
    %16 = vector.broadcast %15 : vector<1x256xf32> to vector<8x256xf32>
    %17 = arith.subf %11, %16 : vector<8x256xf32>
    %18 = arith.mulf %17, %17 : vector<8x256xf32>
    %cst_9 = arith.constant dense<0.000000e+00> : vector<256xf32>
    %19 = vector.multi_reduction <add>, %18, %cst_9 [0] : vector<8x256xf32> to vector<256xf32>
    %20 = vector.shape_cast %19 : vector<256xf32> to vector<1x256xf32>
    %cst_10 = arith.constant 8.000000e+00 : f32
    %21 = vector.broadcast %cst_10 : f32 to vector<1x256xf32>
    %22 = arith.divf %20, %21 : vector<1x256xf32>
    %c0_11 = arith.constant 0 : index
    %c0_12 = arith.constant 0 : index
    %23 = vector.load %arg4[%c0_11, %c0_12] : memref<1x256xf32, #tpu.memory_space<vmem>>, vector<1x256xf32>
    %cst_13 = arith.constant 9.99999974E-6 : f32
    %24 = vector.broadcast %cst_13 : f32 to vector<1x256xf32>
    %25 = arith.addf %22, %24 : vector<1x256xf32>
    %26 = math.rsqrt %25 : vector<1x256xf32>
    %27 = arith.mulf %23, %26 : vector<1x256xf32>
    %c0_14 = arith.constant 0 : index
    %c0_15 = arith.constant 0 : index
    %28 = vector.load %arg5[%c0_14, %c0_15] : memref<1x256xf32, #tpu.memory_space<vmem>>, vector<1x256xf32>
    %29 = arith.mulf %15, %27 : vector<1x256xf32>
    %30 = arith.subf %28, %29 : vector<1x256xf32>
    %31 = vector.broadcast %27 : vector<1x256xf32> to vector<8x256xf32>
    %32 = arith.mulf %11, %31 : vector<8x256xf32>
    %33 = vector.broadcast %30 : vector<1x256xf32> to vector<8x256xf32>
    %34 = arith.addf %32, %33 : vector<8x256xf32>
    %c0_16 = arith.constant 0 : index
    %c0_17 = arith.constant 0 : index
    %35 = vector.load %arg6[%c0_16, %c0_17] : memref<256x512xbf16, #tpu.memory_space<vmem>>, vector<256x512xbf16>
    %36 = arith.truncf %34 : vector<8x256xf32> to vector<8x256xbf16>
    %cst_18 = arith.constant dense<0.000000e+00> : vector<8x512xf32>
    %37 = tpu.matmul %36, %35, %cst_18 {dimension_numbers = #tpu.dot_dimension_numbers<[1], [0], [0], [1], [0, 0, 1, 1], [], []>} : vector<8x256xbf16>, vector<256x512xbf16>, vector<8x512xf32> -> vector<8x512xf32>
    %c0_19 = arith.constant 0 : index
    %c0_20 = arith.constant 0 : index
    %38 = vector.load %arg7[%c0_19, %c0_20] : memref<1x512xf32, #tpu.memory_space<vmem>>, vector<1x512xf32>
    %39 = vector.broadcast %38 : vector<1x512xf32> to vector<8x512xf32>
    %40 = arith.addf %37, %39 : vector<8x512xf32>
    %cst_21 = arith.constant 0.000000e+00 : f32
    %41 = vector.broadcast %cst_21 : f32 to vector<8x512xf32>
    %42 = arith.cmpf oge, %40, %41 : vector<8x512xf32>
    %cst_22 = arith.constant 0.00999999977 : f32
    %43 = vector.broadcast %cst_22 : f32 to vector<8x512xf32>
    %44 = arith.mulf %43, %40 : vector<8x512xf32>
    %45 = arith.select %42, %40, %44 : vector<8x512xi1>, vector<8x512xf32>
    %cst_23 = arith.constant dense<0.000000e+00> : vector<512xf32>
    %46 = vector.multi_reduction <add>, %45, %cst_23 [0] : vector<8x512xf32> to vector<512xf32>
    %47 = vector.shape_cast %46 : vector<512xf32> to vector<1x512xf32>
    %cst_24 = arith.constant 8.000000e+00 : f32
    %48 = vector.broadcast %cst_24 : f32 to vector<1x512xf32>
    %49 = arith.divf %47, %48 : vector<1x512xf32>
    %50 = vector.broadcast %49 : vector<1x512xf32> to vector<8x512xf32>
    %51 = arith.subf %45, %50 : vector<8x512xf32>
    %52 = arith.mulf %51, %51 : vector<8x512xf32>
    %cst_25 = arith.constant dense<0.000000e+00> : vector<512xf32>
    %53 = vector.multi_reduction <add>, %52, %cst_25 [0] : vector<8x512xf32> to vector<512xf32>
    %54 = vector.shape_cast %53 : vector<512xf32> to vector<1x512xf32>
    %cst_26 = arith.constant 8.000000e+00 : f32
    %55 = vector.broadcast %cst_26 : f32 to vector<1x512xf32>
    %56 = arith.divf %54, %55 : vector<1x512xf32>
    %c0_27 = arith.constant 0 : index
    %c0_28 = arith.constant 0 : index
    %57 = vector.load %arg8[%c0_27, %c0_28] : memref<1x512xf32, #tpu.memory_space<vmem>>, vector<1x512xf32>
    %cst_29 = arith.constant 9.99999974E-6 : f32
    %58 = vector.broadcast %cst_29 : f32 to vector<1x512xf32>
    %59 = arith.addf %56, %58 : vector<1x512xf32>
    %60 = math.rsqrt %59 : vector<1x512xf32>
    %61 = arith.mulf %57, %60 : vector<1x512xf32>
    %c0_30 = arith.constant 0 : index
    %c0_31 = arith.constant 0 : index
    %62 = vector.load %arg9[%c0_30, %c0_31] : memref<1x512xf32, #tpu.memory_space<vmem>>, vector<1x512xf32>
    %63 = arith.mulf %49, %61 : vector<1x512xf32>
    %64 = arith.subf %62, %63 : vector<1x512xf32>
    %65 = vector.broadcast %61 : vector<1x512xf32> to vector<8x512xf32>
    %66 = arith.mulf %45, %65 : vector<8x512xf32>
    %67 = vector.broadcast %64 : vector<1x512xf32> to vector<8x512xf32>
    %68 = arith.addf %66, %67 : vector<8x512xf32>
    %c0_32 = arith.constant 0 : index
    %c0_33 = arith.constant 0 : index
    %69 = vector.load %arg10[%c0_32, %c0_33] : memref<512x1024xi8, #tpu.memory_space<vmem>>, vector<512x1024xi8>
    %70 = arith.sitofp %69 : vector<512x1024xi8> to vector<512x1024xbf16>
    %71 = arith.truncf %68 : vector<8x512xf32> to vector<8x512xbf16>
    %cst_34 = arith.constant dense<0.000000e+00> : vector<8x1024xf32>
    %72 = tpu.matmul %71, %70, %cst_34 {dimension_numbers = #tpu.dot_dimension_numbers<[1], [0], [0], [1], [0, 0, 1, 1], [], []>} : vector<8x512xbf16>, vector<512x1024xbf16>, vector<8x1024xf32> -> vector<8x1024xf32>
    %c0_35 = arith.constant 0 : index
    %c0_36 = arith.constant 0 : index
    %73 = vector.load %arg11[%c0_35, %c0_36] : memref<1x1024xf32, #tpu.memory_space<vmem>>, vector<1x1024xf32>
    %74 = vector.broadcast %73 : vector<1x1024xf32> to vector<8x1024xf32>
    %75 = arith.mulf %72, %74 : vector<8x1024xf32>
    %c0_37 = arith.constant 0 : index
    %c0_38 = arith.constant 0 : index
    %76 = vector.load %arg12[%c0_37, %c0_38] : memref<1x1024xf32, #tpu.memory_space<vmem>>, vector<1x1024xf32>
    %77 = vector.broadcast %76 : vector<1x1024xf32> to vector<8x1024xf32>
    %78 = arith.addf %75, %77 : vector<8x1024xf32>
    %cst_39 = arith.constant 0.000000e+00 : f32
    %79 = vector.broadcast %cst_39 : f32 to vector<8x1024xf32>
    %80 = arith.cmpf oge, %78, %79 : vector<8x1024xf32>
    %cst_40 = arith.constant 0.00999999977 : f32
    %81 = vector.broadcast %cst_40 : f32 to vector<8x1024xf32>
    %82 = arith.mulf %81, %78 : vector<8x1024xf32>
    %83 = arith.select %80, %78, %82 : vector<8x1024xi1>, vector<8x1024xf32>
    %cst_41 = arith.constant dense<0.000000e+00> : vector<1024xf32>
    %84 = vector.multi_reduction <add>, %83, %cst_41 [0] : vector<8x1024xf32> to vector<1024xf32>
    %85 = vector.shape_cast %84 : vector<1024xf32> to vector<1x1024xf32>
    %cst_42 = arith.constant 8.000000e+00 : f32
    %86 = vector.broadcast %cst_42 : f32 to vector<1x1024xf32>
    %87 = arith.divf %85, %86 : vector<1x1024xf32>
    %88 = vector.broadcast %87 : vector<1x1024xf32> to vector<8x1024xf32>
    %89 = arith.subf %83, %88 : vector<8x1024xf32>
    %90 = arith.mulf %89, %89 : vector<8x1024xf32>
    %cst_43 = arith.constant dense<0.000000e+00> : vector<1024xf32>
    %91 = vector.multi_reduction <add>, %90, %cst_43 [0] : vector<8x1024xf32> to vector<1024xf32>
    %92 = vector.shape_cast %91 : vector<1024xf32> to vector<1x1024xf32>
    %cst_44 = arith.constant 8.000000e+00 : f32
    %93 = vector.broadcast %cst_44 : f32 to vector<1x1024xf32>
    %94 = arith.divf %92, %93 : vector<1x1024xf32>
    %c0_45 = arith.constant 0 : index
    %c0_46 = arith.constant 0 : index
    %95 = vector.load %arg13[%c0_45, %c0_46] : memref<1x1024xf32, #tpu.memory_space<vmem>>, vector<1x1024xf32>
    %cst_47 = arith.constant 9.99999974E-6 : f32
    %96 = vector.broadcast %cst_47 : f32 to vector<1x1024xf32>
    %97 = arith.addf %94, %96 : vector<1x1024xf32>
    %98 = math.rsqrt %97 : vector<1x1024xf32>
    %99 = arith.mulf %95, %98 : vector<1x1024xf32>
    %c0_48 = arith.constant 0 : index
    %c0_49 = arith.constant 0 : index
    %100 = vector.load %arg14[%c0_48, %c0_49] : memref<1x1024xf32, #tpu.memory_space<vmem>>, vector<1x1024xf32>
    %101 = arith.mulf %87, %99 : vector<1x1024xf32>
    %102 = arith.subf %100, %101 : vector<1x1024xf32>
    %103 = vector.broadcast %99 : vector<1x1024xf32> to vector<8x1024xf32>
    %104 = arith.mulf %83, %103 : vector<8x1024xf32>
    %105 = vector.broadcast %102 : vector<1x1024xf32> to vector<8x1024xf32>
    %106 = arith.addf %104, %105 : vector<8x1024xf32>
    %c0_50 = arith.constant 0 : index
    %c0_51 = arith.constant 0 : index
    %107 = vector.load %arg15[%c0_50, %c0_51] : memref<1024x896xi8, #tpu.memory_space<vmem>>, vector<1024x896xi8>
    %108 = arith.sitofp %107 : vector<1024x896xi8> to vector<1024x896xbf16>
    %109 = arith.truncf %106 : vector<8x1024xf32> to vector<8x1024xbf16>
    %cst_52 = arith.constant dense<0.000000e+00> : vector<8x896xf32>
    %110 = tpu.matmul %109, %108, %cst_52 {dimension_numbers = #tpu.dot_dimension_numbers<[1], [0], [0], [1], [0, 0, 1, 1], [], []>} : vector<8x1024xbf16>, vector<1024x896xbf16>, vector<8x896xf32> -> vector<8x896xf32>
    %c0_53 = arith.constant 0 : index
    %c0_54 = arith.constant 0 : index
    %111 = vector.load %arg16[%c0_53, %c0_54] : memref<1x896xf32, #tpu.memory_space<vmem>>, vector<1x896xf32>
    %112 = vector.broadcast %111 : vector<1x896xf32> to vector<8x896xf32>
    %113 = arith.mulf %110, %112 : vector<8x896xf32>
    %c0_55 = arith.constant 0 : index
    %c0_56 = arith.constant 0 : index
    %114 = vector.load %arg17[%c0_55, %c0_56] : memref<1x896xf32, #tpu.memory_space<vmem>>, vector<1x896xf32>
    %115 = vector.broadcast %114 : vector<1x896xf32> to vector<8x896xf32>
    %116 = arith.addf %113, %115 : vector<8x896xf32>
    %117 = math.tanh %116 : vector<8x896xf32>
    %c0_57 = arith.constant 0 : index
    %c0_58 = arith.constant 0 : index
    %118 = vector.load %arg18[%c0_57, %c0_58] : memref<8x896xf32, #tpu.memory_space<vmem>>, vector<8x896xf32>
    tpu.vector_store %arg18[%c0_57, %c0_58], %117 {strides = array<i32>} : memref<8x896xf32, #tpu.memory_space<vmem>>, vector<8x896xf32>,
    return
  }
  func.func @transform_0(%arg0: i32) -> (i32, i32) {
    %c0_i32 = arith.constant 0 : i32
    %c0_i32_0 = arith.constant 0 : i32
    return %arg0, %c0_i32 : i32, i32
  }
  func.func @transform_1(%arg0: i32) -> (i32, i32) {
    %c0_i32 = arith.constant 0 : i32
    %c0_i32_0 = arith.constant 0 : i32
    %c0_i32_1 = arith.constant 0 : i32
    return %c0_i32, %c0_i32_0 : i32, i32
  }
  func.func @transform_2(%arg0: i32) -> (i32, i32) {
    %c0_i32 = arith.constant 0 : i32
    %c0_i32_0 = arith.constant 0 : i32
    %c0_i32_1 = arith.constant 0 : i32
    return %c0_i32, %c0_i32_0 : i32, i32
  }
  func.func @transform_3(%arg0: i32) -> (i32, i32) {
    %c0_i32 = arith.constant 0 : i32
    %c0_i32_0 = arith.constant 0 : i32
    %c0_i32_1 = arith.constant 0 : i32
    return %c0_i32, %c0_i32_0 : i32, i32
  }
  func.func @transform_4(%arg0: i32) -> (i32, i32) {
    %c0_i32 = arith.constant 0 : i32
    %c0_i32_0 = arith.constant 0 : i32
    %c0_i32_1 = arith.constant 0 : i32
    return %c0_i32, %c0_i32_0 : i32, i32
  }
  func.func @transform_5(%arg0: i32) -> (i32, i32) {
    %c0_i32 = arith.constant 0 : i32
    %c0_i32_0 = arith.constant 0 : i32
    %c0_i32_1 = arith.constant 0 : i32
    return %c0_i32, %c0_i32_0 : i32, i32
  }
  func.func @transform_6(%arg0: i32) -> (i32, i32) {
    %c0_i32 = arith.constant 0 : i32
    %c0_i32_0 = arith.constant 0 : i32
    %c0_i32_1 = arith.constant 0 : i32
    return %c0_i32, %c0_i32_0 : i32, i32
  }
  func.func @transform_7(%arg0: i32) -> (i32, i32) {
    %c0_i32 = arith.constant 0 : i32
    %c0_i32_0 = arith.constant 0 : i32
    %c0_i32_1 = arith.constant 0 : i32
    return %c0_i32, %c0_i32_0 : i32, i32
  }
  func.func @transform_8(%arg0: i32) -> (i32, i32) {
    %c0_i32 = arith.constant 0 : i32
    %c0_i32_0 = arith.constant 0 : i32
    %c0_i32_1 = arith.constant 0 : i32
    return %c0_i32, %c0_i32_0 : i32, i32
  }
  func.func @transform_9(%arg0: i32) -> (i32, i32) {
    %c0_i32 = arith.constant 0 : i32
    %c0_i32_0 = arith.constant 0 : i32
    %c0_i32_1 = arith.constant 0 : i32
    return %c0_i32, %c0_i32_0 : i32, i32
  }
  func.func @transform_10(%arg0: i32) -> (i32, i32) {
    %c0_i32 = arith.constant 0 : i32
    %c0_i32_0 = arith.constant 0 : i32
    %c0_i32_1 = arith.constant 0 : i32
    return %c0_i32, %c0_i32_0 : i32, i32
  }
  func.func @transform_11(%arg0: i32) -> (i32, i32) {
    %c0_i32 = arith.constant 0 : i32
    %c0_i32_0 = arith.constant 0 : i32
    %c0_i32_1 = arith.constant 0 : i32
    return %c0_i32, %c0_i32_0 : i32, i32
  }
  func.func @transform_12(%arg0: i32) -> (i32, i32) {
    %c0_i32 = arith.constant 0 : i32
    %c0_i32_0 = arith.constant 0 : i32
    %c0_i32_1 = arith.constant 0 : i32
    return %c0_i32, %c0_i32_0 : i32, i32
  }
  func.func @transform_13(%arg0: i32) -> (i32, i32) {
    %c0_i32 = arith.constant 0 : i32
    %c0_i32_0 = arith.constant 0 : i32
    %c0_i32_1 = arith.constant 0 : i32
    return %c0_i32, %c0_i32_0 : i32, i32
  }
  func.func @transform_14(%arg0: i32) -> (i32, i32) {
    %c0_i32 = arith.constant 0 : i32
    %c0_i32_0 = arith.constant 0 : i32
    %c0_i32_1 = arith.constant 0 : i32
    return %c0_i32, %c0_i32_0 : i32, i32
  }
  func.func @transform_15(%arg0: i32) -> (i32, i32) {
    %c0_i32 = arith.constant 0 : i32
    %c0_i32_0 = arith.constant 0 : i32
    %c0_i32_1 = arith.constant 0 : i32
    return %c0_i32, %c0_i32_0 : i32, i32
  }
  func.func @transform_16(%arg0: i32) -> (i32, i32) {
    %c0_i32 = arith.constant 0 : i32
    %c0_i32_0 = arith.constant 0 : i32
    %c0_i32_1 = arith.constant 0 : i32
    return %c0_i32, %c0_i32_0 : i32, i32
  }
  func.func @transform_17(%arg0: i32) -> (i32, i32) {
    %c0_i32 = arith.constant 0 : i32
    %c0_i32_0 = arith.constant 0 : i32
    return %arg0, %c0_i32 : i32, i32
  }
}

</mosaic_0001>

<bundles_post_ra>
// kernel: gnet_forward.1
= control target key start
LH: loop header
LB: loop body
LE: loop exit
PB: predicated region body
PF: predicated region fallthrough
CT: control target
= control target key end

     0   :  { %s4944_s0 = inlined_call_operand.vmem [shape: f32[8,128], index: 0, kind: input, shape index: {}]   ;;  %s4945_s1 = inlined_call_operand.hbm [shape: bf16[128,256], index: 1, kind: input, shape index: {}]   ;;  %s4946_s2 = inlined_call_operand.hbm [shape: f32[1,256], index: 2, kind: input, shape index: {}]   ;;  %s4947_s3 = inlined_call_operand.hbm [shape: f32[1,256], index: 3, kind: input, shape index: {}]   ;;  %s4948_s4 = inlined_call_operand.hbm [shape: f32[1,256], index: 4, kind: input, shape index: {}]   ;;  %s4949_s5 = inlined_call_operand.hbm [shape: bf16[256,512], index: 5, kind: input, shape index: {}]   ;;  %s4950_s6 = inlined_call_operand.hbm [shape: f32[1,512], index: 6, kind: input, shape index: {}]   ;;  %s4951_s7 = inlined_call_operand.vmem [shape: f32[1,512], index: 7, kind: input, shape index: {}]   ;;  %s4952_s8 = inlined_call_operand.vmem [shape: f32[1,512], index: 8, kind: input, shape index: {}]   ;;  %s4953_s9 = inlined_call_operand.hbm [shape: s8[512,1024], index: 9, kind: input, shape index: {}]   ;;  %s4954_s10 = inlined_call_operand.vmem [shape: f32[1,1024], index: 10, kind: input, shape index: {}]   ;;  %s4955_s11 = inlined_call_operand.vmem [shape: f32[1,1024], index: 11, kind: input, shape index: {}]   ;;  %s4956_s12 = inlined_call_operand.vmem [shape: f32[1,1024], index: 12, kind: input, shape index: {}]   ;;  %s4957_s13 = inlined_call_operand.vmem [shape: f32[1,1024], index: 13, kind: input, shape index: {}]   ;;  %s4958_s14 = inlined_call_operand.hbm [shape: s8[1024,896], index: 14, kind: input, shape index: {}]   ;;  %s4959_s15 = inlined_call_operand.hbm [shape: f32[1,896], index: 15, kind: input, shape index: {}]   ;;  %s4960_s16 = inlined_call_operand.hbm [shape: f32[1,896], index: 16, kind: input, shape index: {}]   ;;  %s4961_s17 = inlined_call_operand.vmem [shape: f32[8,896], index: 17, kind: output, shape index: {}]  }
   0x1   :  { %4962 = sst [smem:[#allocation24_spill]] %s4944_s0 }
   0x2   :  { %4963 = sst [smem:[#allocation25_spill]] %s4945_s1 }
   0x3   :  { %22 = vsyncpa [#allocation3], 0 }
   0x4   :  { %23 = vsyncpa [#allocation5], 0 }
   0x5   :  { %24 = vsyncpa [#allocation8], 0 }
   0x6   :  { %25 = vsyncpa [#allocation11], 0 }
   0x7   :  { %26 = vsyncpa [#allocation14], 0 }
   0x8   :  { %27 = vsyncpa [#allocation17], 0  ;;  %s4349_s24 = smov [#allocation4]   ;;  %s4350_s26 = smov [#allocation7]  }
   0x9   :  { %s48_s25 = sshll.u32 %s4349_s24, 4  ;;  %s68_s27 = sshll.u32 %s4350_s26, 4  ;;  %s49_s25 = int_to_ptr.vmem [resolvable:$true] %s48_s25  ;;  %s69_s27 = int_to_ptr.vmem [resolvable:$true] %s68_s27 }
   0xa   :  { %s4145_s28 = scalar_lea.vmem %s49_s25, 32  ;;  %p4150_p1 = scmp.lt.s32.totalorder %s49_s25, %s49_s25 }
   0xb   :  { %p4146_p0 = scmp.ne.s32.totalorder %s49_s25, %s4145_s28  ;;  %p4151_p2 = scmp.lt.s32.totalorder %s4145_s28, %s4145_s28 }
   0xd   :  { %p4152_p3 = por %p4151_p2, %p4150_p1 }
   0xf   :  { %p4153_p4 = pnand %p4152_p3, %p4146_p0 }
  0x11   :  { %4156 = shalt.err (!%p4153_p4)
}
  0x12   :  { %51 = dma.hbm_to_vmem [thread:$0]  %s4946_s2, 32, %s49_s25, [#allocation5]  }
  0x13   :  { %s4165_s30 = scalar_lea.vmem %s69_s27, 32  ;;  %p4170_p6 = scmp.lt.s32.totalorder %s69_s27, %s69_s27 }
  0x14   :  { %p4166_p5 = scmp.ne.s32.totalorder %s69_s27, %s4165_s30  ;;  %p4171_p7 = scmp.lt.s32.totalorder %s4165_s30, %s4165_s30 }
  0x16   :  { %p4172_p8 = por %p4171_p7, %p4170_p6 }
  0x18   :  { %p4173_p9 = pnand %p4172_p8, %p4166_p5 }
  0x1a   :  { %4176 = shalt.err (!%p4173_p9)
}
  0x1b   :  { %71 = dma.hbm_to_vmem [thread:$0]  %s4948_s4, 32, %s69_s27, [#allocation8]  }
  0x1c   :  { %s4351_s1 = smov [#allocation10]   ;;  %s4352_s21 = smov [#allocation13]  }
  0x1d   :  { %s90_s20 = sshll.u32 %s4351_s1, 4  ;;  %s123_s22 = sshll.u32 %s4352_s21, 4  ;;  %s91_s20 = int_to_ptr.vmem [resolvable:$true] %s90_s20  ;;  %s124_s22 = int_to_ptr.vmem [resolvable:$true] %s123_s22 }
  0x1e   :  { %s4185_s23 = scalar_lea.vmem %s91_s20, 64  ;;  %p4190_p11 = scmp.lt.s32.totalorder %s91_s20, %s91_s20 }
  0x1f   :  { %p4186_p10 = scmp.ne.s32.totalorder %s91_s20, %s4185_s23  ;;  %p4191_p12 = scmp.lt.s32.totalorder %s4185_s23, %s4185_s23 }
  0x21   :  { %p4192_p13 = por %p4191_p12, %p4190_p11 }
  0x23   :  { %p4193_p0 = pnand %p4192_p13, %p4186_p10 }
  0x25   :  { %4196 = shalt.err (!%p4193_p0)
}
  0x26   :  { %93 = dma.hbm_to_vmem [thread:$0]  %s4950_s6, 64, %s91_s20, [#allocation11]  }
  0x27   :  { %s4205_s25 = scalar_lea.vmem %s124_s22, 28672  ;;  %p4210_p2 = scmp.lt.s32.totalorder %s124_s22, %s124_s22 }
  0x28   :  { %p4206_p1 = scmp.ne.s32.totalorder %s124_s22, %s4205_s25  ;;  %p4211_p3 = scmp.lt.s32.totalorder %s4205_s25, %s4205_s25 }
  0x2a   :  { %p4212_p4 = por %p4211_p3, %p4210_p2 }
  0x2c   :  { %p4213_p5 = pnand %p4212_p4, %p4206_p1 }
  0x2e   :  { %4216 = shalt.err (!%p4213_p5)
}
  0x2f   :  { %s4353_s4 = smov 896   ;;  %s4354_s26 = smov 56  }
  0x30   :  { %129 = dma.hbm_to_vmem [thread:$0]  %s4958_s14, 28672, %s124_s22, [#allocation14], %s4353_s4, %s4353_s4, %s4354_s26  }
  0x31   :  { %s4355_s29 = smov [#allocation2]  }
  0x32   :  { %s35_s0 = sshll.u32 %s4355_s29, 4  ;;  %s36_s0 = int_to_ptr.vmem [resolvable:$true] %s35_s0 }
  0x33   :  { %s4225_s30 = scalar_lea.vmem %s36_s0, 2048  ;;  %p4230_p7 = scmp.lt.s32.totalorder %s36_s0, %s36_s0 }
  0x34   :  { %p4226_p6 = scmp.ne.s32.totalorder %s36_s0, %s4225_s30  ;;  %p4231_p8 = scmp.lt.s32.totalorder %s4225_s30, %s4225_s30 }
  0x36   :  { %p4232_p9 = por %p4231_p8, %p4230_p7 }
  0x38   :  { %p4233_p10 = pnand %p4232_p9, %p4226_p6 }
  0x3a   :  { %4236 = shalt.err (!%p4233_p10)
}
  0x3b   :  { %s4356_s6 = smov 128   ;;  %s4357_s18 = smov 8  }
  0x3c   :  { %s4964_s20 = sld [smem:[#allocation25_spill]]  ;;  %s4358_s21 = smov [#allocation6]  }
  0x3d   :  { %s58_s23 = sshll.u32 %s4358_s21, 4  ;;  %s4359_s14 = smov [#allocation9]   ;;  %s59_s23 = int_to_ptr.vmem [resolvable:$true] %s58_s23 }
  0x3e   :  { %s77_s22 = sshll.u32 %s4359_s14, 4  ;;  %s4245_s2 = scalar_lea.vmem %s59_s23, 32  ;;  %s78_s22 = int_to_ptr.vmem [resolvable:$true] %s77_s22 }
  0x3f   :  { %p4246_p11 = scmp.ne.s32.totalorder %s59_s23, %s4245_s2  ;;  %p4250_p12 = scmp.lt.s32.totalorder %s59_s23, %s59_s23 }
  0x40   :  { %p4251_p13 = scmp.lt.s32.totalorder %s4245_s2, %s4245_s2 }
  0x42   :  { %41 = dma.hbm_to_vmem [thread:$0]  %s4964_s20, 2048, %s36_s0, [#allocation3], %s4356_s6, %s4356_s6, %s4357_s18  }
  0x43   :  { %p4252_p0 = por %p4251_p13, %p4250_p12 }
  0x45   :  { %p4253_p1 = pnand %p4252_p0, %p4246_p11 }
  0x47   :  { %4256 = shalt.err (!%p4253_p1)
}
  0x48   :  { %61 = dma.hbm_to_vmem [thread:$0]  %s4947_s3, 32, %s59_s23, [#allocation5]  }
  0x49   :  { %s4265_s4 = scalar_lea.vmem %s78_s22, 8192  ;;  %p4270_p3 = scmp.lt.s32.totalorder %s78_s22, %s78_s22 }
  0x4a   :  { %p4266_p2 = scmp.ne.s32.totalorder %s78_s22, %s4265_s4  ;;  %p4271_p4 = scmp.lt.s32.totalorder %s4265_s4, %s4265_s4 }
  0x4c   :  { %p4272_p5 = por %p4271_p4, %p4270_p3 }
  0x4e   :  { %p4273_p6 = pnand %p4272_p5, %p4266_p2 }
  0x50   :  { %4276 = shalt.err (!%p4273_p6)
}
  0x51   :  { %s4360_s26 = smov 256   ;;  %s4361_s27 = smov 16  }
  0x52   :  { %83 = dma.hbm_to_vmem [thread:$0]  %s4949_s5, 8192, %s78_s22, [#allocation8], %s4360_s26, %s4360_s26, %s4361_s27  }
  0x53   :  { %s4362_s0 = smov [#allocation12]  }
  0x54   :  { %s103_s30 = sshll.u32 %s4362_s0, 4  ;;  %s104_s30 = int_to_ptr.vmem [resolvable:$true] %s103_s30 }
  0x55   :  { %s4285_s6 = scalar_lea.vmem %s104_s30, 16384  ;;  %p4290_p8 = scmp.lt.s32.totalorder %s104_s30, %s104_s30 }
  0x56   :  { %p4286_p7 = scmp.ne.s32.totalorder %s104_s30, %s4285_s6  ;;  %p4291_p9 = scmp.lt.s32.totalorder %s4285_s6, %s4285_s6 }
  0x58   :  { %p4292_p10 = por %p4291_p9, %p4290_p8 }
  0x5a   :  { %p4293_p11 = pnand %p4292_p10, %p4286_p7 }
  0x5c   :  { %4296 = shalt.err (!%p4293_p11)
}
  0x5d   :  { %s4363_s3 = smov 1024   ;;  %s4364_s18 = smov 64  }
  0x5e   :  { %109 = dma.hbm_to_vmem [thread:$0]  %s4953_s9, 16384, %s104_s30, [#allocation11], %s4363_s3, %s4363_s3, %s4364_s18  }
  0x5f   :  { %s4365_s20 = smov [#allocation15]   ;;  %s4366_s23 = smov [#allocation16]  }
  0x60   :  { %s136_s21 = sshll.u32 %s4365_s20, 4  ;;  %s146_s5 = sshll.u32 %s4366_s23, 4  ;;  %s137_s21 = int_to_ptr.vmem [resolvable:$true] %s136_s21  ;;  %s147_s5 = int_to_ptr.vmem [resolvable:$true] %s146_s5 }
  0x61   :  { %s4305_s14 = scalar_lea.vmem %s137_s21, 112  ;;  %s4309_s22 = scalar_lea.vmem %s137_s21, 128 }
  0x62   :  { %p4306_p12 = scmp.ne.s32.totalorder %s137_s21, %s4305_s14  ;;  %p4310_p13 = scmp.lt.s32.totalorder %s137_s21, %s137_s21 }
  0x63   :  { %p4311_p0 = scmp.lt.s32.totalorder %s4309_s22, %s4305_s14 }
  0x65   :  { %p4312_p1 = por %p4311_p0, %p4310_p13 }
  0x67   :  { %p4313_p2 = pnand %p4312_p1, %p4306_p12 }
  0x69   :  { %4316 = shalt.err (!%p4313_p2)
}
  0x6a   :  { %139 = dma.hbm_to_vmem [thread:$0]  %s4959_s15, 112, %s137_s21, [#allocation14]  }
  0x6b   :  { %s4325_s25 = scalar_lea.vmem %s147_s5, 112  ;;  %s4329_s9 = scalar_lea.vmem %s147_s5, 128 }
  0x6c   :  { %p4326_p3 = scmp.ne.s32.totalorder %s147_s5, %s4325_s25  ;;  %p4330_p4 = scmp.lt.s32.totalorder %s147_s5, %s147_s5 }
  0x6d   :  { %p4331_p5 = scmp.lt.s32.totalorder %s4329_s9, %s4325_s25 }
  0x6f   :  { %p4332_p6 = por %p4331_p5, %p4330_p4 }
  0x71   :  { %p4333_p7 = pnand %p4332_p6, %p4326_p3 }
  0x73   :  { %4336 = shalt.err (!%p4333_p7)
}
  0x74   :  { %149 = dma.hbm_to_vmem [thread:$0]  %s4960_s16, 112, %s147_s5, [#allocation17]  }
  0x75   :  { %4337 = dma.done.wait [#allocation3], 2048  }
  0x76   :  { %4338 = vsyncadd [#allocation3], 4294965248 }
  0x77   :  { %4339 = dma.done.wait [#allocation5], 64  }
  0x78   :  { %4340 = vsyncadd [#allocation5], 4294967232 }
  0x79   :  { %4341 = dma.done.wait [#allocation8], 8224  }
  0x7a   :  { %4342 = vsyncadd [#allocation8], 4294959072 }
  0x7b   :  { %4343 = dma.done.wait [#allocation11], 16448  }
  0x7c   :  { %4344 = vsyncadd [#allocation11], 4294950848 }
  0x7d   :  { %4345 = dma.done.wait [#allocation14], 28784  }
  0x7e   :  { %4346 = vsyncadd [#allocation14], 4294938512 }
  0x7f   :  { %4347 = dma.done.wait [#allocation17], 112  }
  0x80   :  { %4348 = vsyncadd [#allocation17], 4294967184  ;;  %v4367_v0 = vmov 0   ;;  %v3975_v1 = vld [vmem:[#allocation2 + $0x74] ss:$8 sps:$4 sm:$0xff]   ;;  %s4965_s27 = sld [smem:[#allocation24_spill]] }
  0x81   :  { %323 = vmatprep.mubr.bf16.mxu0 %v4367_v0  ;;  %v3977_v2 = vld [vmem:[#allocation2 + $0x70] ss:$8 sps:$4 sm:$0xff]   ;;  %291 = vmatprep.subr.bf16.mxu0 %v3975_v1  ;;  %v3978_v3 = vld [vmem:[#allocation2 + $0x64] ss:$8 sps:$4 sm:$0xff]   ;;  %v3980_v4 = vld [vmem:[#allocation2 + $0x60] ss:$8 sps:$4 sm:$0xff]  }
  0x82   :  { %292 = vmatpush1.bf16.msra.mxu0 %v3977_v2  ;;  %v3981_v5 = vld [vmem:[#allocation2 + $0x54] ss:$8 sps:$4 sm:$0xff]   ;;  %v3983_v6 = vld [vmem:[#allocation2 + $0x50] ss:$8 sps:$4 sm:$0xff]   ;;  %v3984_v7 = vld [vmem:[#allocation2 + $0x44] ss:$8 sps:$4 sm:$0xff]  }
  0x83   :  { %293 = vmatprep.subr.bf16.mxu0 %v3978_v3  ;;  %v3986_v8 = vld [vmem:[#allocation2 + $0x40] ss:$8 sps:$4 sm:$0xff]   ;;  %v3987_v9 = vld [vmem:[#allocation2 + $0x34] ss:$8 sps:$4 sm:$0xff]   ;;  %v3989_v10 = vld [vmem:[#allocation2 + $0x30] ss:$8 sps:$4 sm:$0xff]  }
  0x84   :  { %v3990_v11 = vld [vmem:[#allocation2 + $0x24] ss:$8 sps:$4 sm:$0xff]   ;;  %v3992_v12 = vld [vmem:[#allocation2 + $0x20] ss:$8 sps:$4 sm:$0xff]   ;;  %v3993_v13 = vld [vmem:[#allocation2 + $0x14] ss:$8 sps:$4 sm:$0xff]  }
  0x85   :  { %v3995_v14 = vld [vmem:[#allocation2 + $0x10] ss:$8 sps:$4 sm:$0xff]   ;;  %v3996_v15 = vld [vmem:[#allocation2 + $0x4] ss:$8 sps:$4 sm:$0xff]   ;;  %v3998_v16 = vld [vmem:[#allocation2] ss:$8 sps:$4 sm:$0xff]  }
  0x86   :  { %294 = vmatpush1.bf16.msra.mxu0 %v3980_v4  ;;  %v181_v17 = vld [vmem:[%s4965_s27] sm:$0xff]  ;;  %v3999_v19 = vld [vmem:[#allocation9 + $0xe4] ss:$16 sps:$4 sm:$0xff]  }
  0x87   :  { %295 = vmatprep.subr.bf16.mxu0 %v3981_v5  ;;  %v198_v18 = vpack.c.bf16 %v181_v17, %v181_v17  ;;  %v4003_v20 = vld [vmem:[#allocation9 + $0xec] ss:$16 sps:$4 sm:$0xff]   ;;  %v4001_v21 = vld [vmem:[#allocation9 + $0xe8] ss:$16 sps:$4 sm:$0xff]   ;;  %v4004_v22 = vld [vmem:[#allocation9 + $0xe0] ss:$16 sps:$4 sm:$0xff]   ;;  %851 = vmatprep.subr.bf16.mxu1 %v3999_v19  ;;  %v201_v19 = vlaneseq }
  0x88   :  { %852 = vmatpush1.bf16.msra.mxu1 %v4004_v22  ;;  %v4005_v23 = vld [vmem:[#allocation9 + $0xc4] ss:$16 sps:$4 sm:$0xff]   ;;  %v4009_v24 = vld [vmem:[#allocation9 + $0xcc] ss:$16 sps:$4 sm:$0xff]   ;;  %v4007_v25 = vld [vmem:[#allocation9 + $0xc8] ss:$16 sps:$4 sm:$0xff]  }
  0x89   :  { %v4010_v26 = vld [vmem:[#allocation9 + $0xc0] ss:$16 sps:$4 sm:$0xff]   ;;  %853 = vmatprep.subr.bf16.mxu1 %v4005_v23  ;;  %v4011_v27 = vld [vmem:[#allocation9 + $0xa4] ss:$16 sps:$4 sm:$0xff]   ;;  %v4015_v28 = vld [vmem:[#allocation9 + $0xac] ss:$16 sps:$4 sm:$0xff]  }
  0x8a   :  { %296 = vmatpush1.bf16.msra.mxu0 %v3983_v6  ;;  %v4013_v29 = vld [vmem:[#allocation9 + $0xa8] ss:$16 sps:$4 sm:$0xff]   ;;  %v4016_v30 = vld [vmem:[#allocation9 + $0xa0] ss:$16 sps:$4 sm:$0xff]   ;;  %v4017_v31 = vld [vmem:[#allocation9 + $0x84] ss:$16 sps:$4 sm:$0xff]  }
  0x8b   :  { %297 = vmatprep.subr.bf16.mxu0 %v3984_v7  ;;  %v4021_v32 = vld [vmem:[#allocation9 + $0x8c] ss:$16 sps:$4 sm:$0xff]   ;;  %v4019_v33 = vld [vmem:[#allocation9 + $0x88] ss:$16 sps:$4 sm:$0xff]   ;;  %v4022_v34 = vld [vmem:[#allocation9 + $0x80] ss:$16 sps:$4 sm:$0xff]  }
  0x8c   :  { %854 = vmatpush1.bf16.msra.mxu1 %v4010_v26  ;;  %v4023_v35 = vld [vmem:[#allocation9 + $0x64] ss:$16 sps:$4 sm:$0xff]   ;;  %v4027_v36 = vld [vmem:[#allocation9 + $0x6c] ss:$16 sps:$4 sm:$0xff]   ;;  %v4025_v37 = vld [vmem:[#allocation9 + $0x68] ss:$16 sps:$4 sm:$0xff]  }
  0x8d   :  { %855 = vmatprep.subr.bf16.mxu1 %v4011_v27  ;;  %v4028_v38 = vld [vmem:[#allocation9 + $0x60] ss:$16 sps:$4 sm:$0xff]   ;;  %v4029_v39 = vld [vmem:[#allocation9 + $0x44] ss:$16 sps:$4 sm:$0xff]   ;;  %v4033_v40 = vld [vmem:[#allocation9 + $0x4c] ss:$16 sps:$4 sm:$0xff]  }
  0x8e   :  { %298 = vmatpush1.bf16.msra.mxu0 %v3986_v8  ;;  %v4031_v41 = vld [vmem:[#allocation9 + $0x48] ss:$16 sps:$4 sm:$0xff]   ;;  %v4034_v42 = vld [vmem:[#allocation9 + $0x40] ss:$16 sps:$4 sm:$0xff]   ;;  %v4035_v43 = vld [vmem:[#allocation9 + $0x24] ss:$16 sps:$4 sm:$0xff]  }
  0x8f   :  { %299 = vmatprep.subr.bf16.mxu0 %v3987_v9  ;;  %v4039_v44 = vld [vmem:[#allocation9 + $0x2c] ss:$16 sps:$4 sm:$0xff]   ;;  %v4037_v45 = vld [vmem:[#allocation9 + $0x28] ss:$16 sps:$4 sm:$0xff]   ;;  %v4040_v46 = vld [vmem:[#allocation9 + $0x20] ss:$16 sps:$4 sm:$0xff]  }
  0x90   :  { %856 = vmatpush1.bf16.msra.mxu1 %v4016_v30  ;;  %v4041_v47 = vld [vmem:[#allocation9 + $0x4] ss:$16 sps:$4 sm:$0xff]   ;;  %v4045_v48 = vld [vmem:[#allocation9 + $0xc] ss:$16 sps:$4 sm:$0xff]   ;;  %v4043_v49 = vld [vmem:[#allocation9 + $0x8] ss:$16 sps:$4 sm:$0xff]  }
  0x91   :  { %857 = vmatprep.subr.bf16.mxu1 %v4017_v31  ;;  %v4046_v50 = vld [vmem:[#allocation9] ss:$16 sps:$4 sm:$0xff]   ;;  %v4047_v51 = vld [vmem:[#allocation9 + $0x1e4] ss:$16 sps:$4 sm:$0xff]   ;;  %v4051_v52 = vld [vmem:[#allocation9 + $0x1ec] ss:$16 sps:$4 sm:$0xff]  }
  0x92   :  { %300 = vmatpush1.bf16.msra.mxu0 %v3989_v10  ;;  %v4049_v53 = vld [vmem:[#allocation9 + $0x1e8] ss:$16 sps:$4 sm:$0xff]   ;;  %v4052_v54 = vld [vmem:[#allocation9 + $0x1e0] ss:$16 sps:$4 sm:$0xff]   ;;  %v4053_v55 = vld [vmem:[#allocation9 + $0x1c4] ss:$16 sps:$4 sm:$0xff]  }
  0x93   :  { %301 = vmatprep.subr.bf16.mxu0 %v3990_v11  ;;  %v4057_v56 = vld [vmem:[#allocation9 + $0x1cc] ss:$16 sps:$4 sm:$0xff]   ;;  %v4055_v57 = vld [vmem:[#allocation9 + $0x1c8] ss:$16 sps:$4 sm:$0xff]   ;;  %v4058_v58 = vld [vmem:[#allocation9 + $0x1c0] ss:$16 sps:$4 sm:$0xff]  }
  0x94   :  { %858 = vmatpush1.bf16.msra.mxu1 %v4022_v34  ;;  %v4059_v59 = vld [vmem:[#allocation9 + $0x1a4] ss:$16 sps:$4 sm:$0xff]   ;;  %v4063_v60 = vld [vmem:[#allocation9 + $0x1ac] ss:$16 sps:$4 sm:$0xff]   ;;  %v4061_v61 = vld [vmem:[#allocation9 + $0x1a8] ss:$16 sps:$4 sm:$0xff]  }
  0x95   :  { %859 = vmatprep.subr.bf16.mxu1 %v4023_v35  ;;  %v4064_v62 = vld [vmem:[#allocation9 + $0x1a0] ss:$16 sps:$4 sm:$0xff]   ;;  %v4065_v63 = vld [vmem:[#allocation9 + $0x184] ss:$16 sps:$4 sm:$0xff]   ;;  %v4069_v0 = vld [vmem:[#allocation9 + $0x18c] ss:$16 sps:$4 sm:$0xff]  }
  0x96   :  { %302 = vmatpush1.bf16.msra.mxu0 %v3992_v12  ;;  %v4067_v1 = vld [vmem:[#allocation9 + $0x188] ss:$16 sps:$4 sm:$0xff]   ;;  %v4070_v2 = vld [vmem:[#allocation9 + $0x180] ss:$16 sps:$4 sm:$0xff]   ;;  %v4071_v3 = vld [vmem:[#allocation9 + $0x164] ss:$16 sps:$4 sm:$0xff]  }
  0x97   :  { %303 = vmatprep.subr.bf16.mxu0 %v3993_v13  ;;  %v4075_v4 = vld [vmem:[#allocation9 + $0x16c] ss:$16 sps:$4 sm:$0xff]   ;;  %v4073_v5 = vld [vmem:[#allocation9 + $0x168] ss:$16 sps:$4 sm:$0xff]   ;;  %v4076_v6 = vld [vmem:[#allocation9 + $0x160] ss:$16 sps:$4 sm:$0xff]  }
  0x98   :  { %860 = vmatpush1.bf16.msra.mxu1 %v4028_v38  ;;  %v4077_v7 = vld [vmem:[#allocation9 + $0x144] ss:$16 sps:$4 sm:$0xff]   ;;  %v4081_v8 = vld [vmem:[#allocation9 + $0x14c] ss:$16 sps:$4 sm:$0xff]   ;;  %v4079_v9 = vld [vmem:[#allocation9 + $0x148] ss:$16 sps:$4 sm:$0xff]  }
  0x99   :  { %861 = vmatprep.subr.bf16.mxu1 %v4029_v39  ;;  %v4082_v10 = vld [vmem:[#allocation9 + $0x140] ss:$16 sps:$4 sm:$0xff]   ;;  %v4083_v11 = vld [vmem:[#allocation9 + $0x124] ss:$16 sps:$4 sm:$0xff]   ;;  %v4087_v12 = vld [vmem:[#allocation9 + $0x12c] ss:$16 sps:$4 sm:$0xff]  }
  0x9a   :  { %304 = vmatpush1.bf16.msra.mxu0 %v3995_v14  ;;  %v4085_v13 = vld [vmem:[#allocation9 + $0x128] ss:$16 sps:$4 sm:$0xff]   ;;  %v4088_v14 = vld [vmem:[#allocation9 + $0x120] ss:$16 sps:$4 sm:$0xff]  }
  0x9b   :  { %305 = vmatprep.subr.bf16.mxu0 %v3996_v15  ;;  %v4089_v15 = vld [vmem:[#allocation9 + $0x104] ss:$16 sps:$4 sm:$0xff]   ;;  %v4091_v17 = vld [vmem:[#allocation9 + $0x108] ss:$16 sps:$4 sm:$0xff]  }
  0x9c   :  { %862 = vmatpush1.bf16.msra.mxu1 %v4034_v42  ;;  %v199_v22 = vld [vmem:[#allocation4] sm:$0x3] }
  0x9d   :  { %863 = vmatprep.subr.bf16.mxu1 %v4035_v43 }
  0x9e   :  { %306 = vmatpush1.bf16.msra.mxu0 %v3998_v16  ;;  %v4093_v16 = vld [vmem:[#allocation9 + $0x10c] ss:$16 sps:$4 sm:$0xff]  }
  0x9f   :  { %892 = vmatprep.subr.bf16.mxu0 %v4003_v20  ;;  %v4492_v20 = vshrl.u32 %v201_v19, 7 }
  0xa0   :  { %864 = vmatpush1.bf16.msra.mxu1 %v4040_v46 }
  0xa1   :  { %324 = vmatmul.mubr.bf16.vlgmr.msra.gmra.mxu0 %v198_v18  ;;  %865 = vmatprep.subr.bf16.mxu1 %v4041_v47  ;;  %v4094_v18 = vld [vmem:[#allocation9 + $0x100] ss:$16 sps:$4 sm:$0xff]   ;;  %v4498_v23 = vsub.s32 1, %v4492_v20 }
  0xa2   :  { %893 = vmatpush1.bf16.msra.mxu0 %v4001_v21  ;;  %v4495_v21 = vsub.s32 0, %v4492_v20 }
  0xa3   :  { %894 = vmatprep.subr.bf16.mxu0 %v4009_v24 }
  0xa4   :  { %866 = vmatpush1.bf16.msra.mxu1 %v4046_v50  ;;  %v204_v24 = vrot.slane %v199_v22, %v4495_v21 }
  0xa5   :  { %867 = vmatprep.subr.bf16.mxu1 %v4047_v51 }
  0xa6   :  { %895 = vmatpush1.bf16.msra.mxu0 %v4007_v25  ;;  %v208_v25 = vrot.slane %v199_v22, %v4498_v23 }
  0xa7   :  { %896 = vmatprep.subr.bf16.mxu0 %v4015_v28 }
  0xa8   :  { %868 = vmatpush2.bf16.msra.mxu1 %v4052_v54 }
  0xa9   :  { %869 = vmatprep.subr.bf16.mxu1 %v4053_v55 }
  0xaa   :  { %897 = vmatpush1.bf16.msra.mxu0 %v4013_v29 }
  0xab   :  { %898 = vmatprep.subr.bf16.mxu0 %v4021_v32 }
  0xac   :  { %870 = vmatpush2.bf16.msra.mxu1 %v4058_v58 }
  0xad   :  { %871 = vmatprep.subr.bf16.mxu1 %v4059_v59 }
  0xae   :  { %899 = vmatpush1.bf16.msra.mxu0 %v4019_v33 }
  0xaf   :  { %900 = vmatprep.subr.bf16.mxu0 %v4027_v36 }
  0xb0   :  { %872 = vmatpush2.bf16.msra.mxu1 %v4064_v62 }
  0xb1   :  { %873 = vmatprep.subr.bf16.mxu1 %v4065_v63 }
  0xb2   :  { %901 = vmatpush1.bf16.msra.mxu0 %v4025_v37 }
  0xb3   :  { %902 = vmatprep.subr.bf16.mxu0 %v4033_v40 }
  0xb4   :  { %874 = vmatpush2.bf16.msra.mxu1 %v4070_v2 }
  0xb5   :  { %875 = vmatprep.subr.bf16.mxu1 %v4071_v3 }
  0xb6   :  { %903 = vmatpush1.bf16.msra.mxu0 %v4031_v41 }
  0xb7   :  { %904 = vmatprep.subr.bf16.mxu0 %v4039_v44 }
  0xb8   :  { %876 = vmatpush2.bf16.msra.mxu1 %v4076_v6  ;;  %v4368_v6 = vmov 1966171168  }
  0xb9   :  { %877 = vmatprep.subr.bf16.mxu1 %v4077_v7  ;;  %v380_v7 = vunpack.c.l.s4 %v4368_v6 }
  0xba   :  { %905 = vmatpush1.bf16.msra.mxu0 %v4037_v45 }
  0xbb   :  { %906 = vmatprep.subr.bf16.mxu0 %v4045_v48 }
  0xbc   :  { %878 = vmatpush2.bf16.msra.mxu1 %v4082_v10 }
  0xbd   :  { %879 = vmatprep.subr.bf16.mxu1 %v4083_v11 }
  0xbe   :  { %907 = vmatpush1.bf16.msra.mxu0 %v4043_v49 }
  0xbf   :  { %908 = vmatprep.subr.bf16.mxu0 %v4051_v52 }
  0xc0   :  { %880 = vmatpush2.bf16.msra.mxu1 %v4088_v14  ;;  %v371_v14 = vld [vmem:[#allocation6] sm:$0x3] }
  0xc1   :  { %881 = vmatprep.subr.bf16.mxu1 %v4089_v15 }
  0xc2   :  { %909 = vmatpush2.bf16.msra.mxu0 %v4049_v53 }
  0xc3   :  { %910 = vmatprep.subr.bf16.mxu0 %v4057_v56 }
  0xc4   :  { %882 = vmatpush2.bf16.msra.mxu1 %v4094_v18 }
  0xc6   :  { %911 = vmatpush2.bf16.msra.mxu0 %v4055_v57 }
  0xc7   :  { %912 = vmatprep.subr.bf16.mxu0 %v4063_v60 }
  0xca   :  { %913 = vmatpush2.bf16.msra.mxu0 %v4061_v61 }
  0xcb   :  { %914 = vmatprep.subr.bf16.mxu0 %v4069_v0 }
  0xce   :  { %915 = vmatpush2.bf16.msra.mxu0 %v4067_v1 }
  0xcf   :  { %916 = vmatprep.subr.bf16.mxu0 %v4075_v4 }
  0xd2   :  { %917 = vmatpush2.bf16.msra.mxu0 %v4073_v5 }
  0xd3   :  { %918 = vmatprep.subr.bf16.mxu0 %v4081_v8  ;;  %v381_v8 = vunpack.c.0.s8 %v380_v7 }
  0xd5   :  { %v4508_v10 = vsub.s32 %v381_v8, %v4492_v20 }
  0xd6   :  { %919 = vmatpush2.bf16.msra.mxu0 %v4079_v9 }
  0xd7   :  { %920 = vmatprep.subr.bf16.mxu0 %v4087_v12 }
  0xda   :  { %921 = vmatpush2.bf16.msra.mxu0 %v4085_v13 }
  0xdb   :  { %922 = vmatprep.subr.bf16.mxu0 %v4093_v16 }
  0xde   :  { %923 = vmatpush2.bf16.msra.mxu0 %v4091_v17 }
 0x161   :  { %v325_v26 = vpop.f32.mrf.mxu0 }
 0x162   :  { %v326_v27 = vadd.f32 %v325_v26, %v204_v24  ;;  %v395_v26 = vld [vmem:[#allocation7] sm:$0x3] }
 0x163   :  { %v327_v28 = vpop.f32.mrf.mxu0 }
 0x164   :  { %vm332_vm0 = vcmp.ge.f32.partialorder %v326_v27, 0.0  ;;  %v334_v29 = vmul.f32 0.01, %v326_v27  ;;  %v328_v30 = vadd.f32 %v327_v28, %v208_v25 }
 0x165   :  { %v329_v31 = vpop.f32.mrf.mxu0 }
 0x166   :  { %v4502_v32 = vsel %vm332_vm0, %v326_v27, %v334_v29  ;;  %vm333_vm1 = vcmp.ge.f32.partialorder %v328_v30, 0.0  ;;  %v335_v33 = vmul.f32 0.01, %v328_v30 }
 0x167   :  { %v338_v34 = vrot.slane %v4502_v32, 4  ;;  %v330_v35 = vpop.f32.mrf.mxu0 }
 0x168   :  { %v337_v36 = vsel %vm333_vm1, %v328_v30, %v335_v33 }
 0x169   :  { %v339_v37 = vadd.f32 %v338_v34, %v4502_v32  ;;  %v344_v38 = vrot.slane %v337_v36, 4 }
 0x16b   :  { %v340_v39 = vrot.slane %v339_v37, 2  ;;  %v345_v40 = vadd.f32 %v344_v38, %v337_v36 }
 0x16d   :  { %v341_v41 = vadd.f32 %v340_v39, %v339_v37  ;;  %v346_v42 = vrot.slane %v345_v40, 2  ;;  %v1158_v39 = vld [vmem:[#allocation12 + $0xc8] sm:$0xff] }
 0x16f   :  { %v342_v43 = vrot.slane %v341_v41, 1  ;;  %v347_v44 = vadd.f32 %v346_v42, %v345_v40  ;;  %v1222_v40 = vld [vmem:[#allocation12 + $0x2c8] sm:$0xff] }
 0x170   :  { %v1446_v42 = vunpack.c.h.s8.bf16 %v1222_v40 }
 0x171   :  { %v343_v45 = vadd.f32 %v342_v43, %v341_v41  ;;  %v348_v46 = vrot.slane %v347_v44, 1  ;;  %v1318_v41 = vunpack.c.h.s8.bf16 %v1158_v39  ;;  %v1157_v43 = vld [vmem:[#allocation12 + $0xc0] sm:$0xff] }
 0x172   :  { %1562 = vmatprep.subr.bf16.mxu0 %v1446_v42 }
 0x173   :  { %v351_v47 = vmul.f32 0.125, %v343_v45  ;;  %v349_v48 = vadd.f32 %v348_v46, %v347_v44  ;;  %v1317_v44 = vunpack.c.h.s8.bf16 %v1157_v43  ;;  %1521 = vmatprep.subr.bf16.mxu1 %v1318_v41  ;;  %v1438_v46 = vunpack.c.l.s8.bf16 %v1222_v40  ;;  %v1246_v40 = vld [vmem:[#allocation12 + $0x388] sm:$0xff] }
 0x174   :  { %v1494_v42 = vunpack.c.h.s8.bf16 %v1246_v40 }
 0x175   :  { %v353_v49 = vsub.f32 %v4502_v32, %v351_v47  ;;  %v352_v50 = vmul.f32 0.125, %v349_v48 }
 0x177   :  { %v355_v51 = vmul.f32 %v353_v49, %v353_v49  ;;  %v354_v52 = vsub.f32 %v337_v36, %v352_v50  ;;  %v1150_v49 = vld [vmem:[#allocation12 + $0x88] sm:$0xff] }
 0x179   :  { %v357_v53 = vrot.slane %v355_v51, 4  ;;  %v356_v54 = vmul.f32 %v354_v52, %v354_v52 }
 0x17b   :  { %v358_v55 = vadd.f32 %v357_v53, %v355_v51  ;;  %v363_v56 = vrot.slane %v356_v54, 4  ;;  %v1302_v51 = vunpack.c.h.s8.bf16 %v1150_v49  ;;  %v1149_v53 = vld [vmem:[#allocation12 + $0x80] sm:$0xff] }
 0x17d   :  { %v359_v57 = vrot.slane %v358_v55, 2  ;;  %v364_v58 = vadd.f32 %v363_v56, %v356_v54  ;;  %v1213_v54 = vld [vmem:[#allocation12 + $0x280] sm:$0xff] }
 0x17e   :  { %v1429_v56 = vunpack.c.h.s8.bf16 %v1213_v54 }
 0x17f   :  { %v360_v59 = vadd.f32 %v359_v57, %v358_v55  ;;  %v365_v60 = vrot.slane %v364_v58, 2  ;;  %v1301_v55 = vunpack.c.h.s8.bf16 %v1149_v53  ;;  %v1294_v57 = vunpack.c.l.s8.bf16 %v1150_v49  ;;  %v1174_v49 = vld [vmem:[#allocation12 + $0x148] sm:$0xff] }
 0x181   :  { %v361_v61 = vrot.slane %v360_v59, 1  ;;  %v366_v62 = vadd.f32 %v365_v60, %v364_v58  ;;  %v1421_v60 = vunpack.c.l.s8.bf16 %v1213_v54  ;;  %v1237_v54 = vld [vmem:[#allocation12 + $0x340] sm:$0xff] }
 0x183   :  { %v362_v63 = vadd.f32 %v361_v61, %v360_v59  ;;  %v367_v0 = vrot.slane %v366_v62, 1  ;;  %v1293_v59 = vunpack.c.l.s8.bf16 %v1149_v53  ;;  %v1142_v61 = vld [vmem:[#allocation12 + $0x48] sm:$0xff]  ;;  %v1173_v53 = vld [vmem:[#allocation12 + $0x140] sm:$0xff] }
 0x185   :  { %v369_v1 = vmul.f32 0.125, %v362_v63  ;;  %v368_v2 = vadd.f32 %v367_v0, %v366_v62  ;;  %v1206_v62 = vld [vmem:[#allocation12 + $0x248] sm:$0xff]  ;;  %v1286_v63 = vunpack.c.h.s8.bf16 %v1142_v61 }
 0x186   :  { %v1414_v0 = vunpack.c.h.s8.bf16 %v1206_v62  ;;  %v1406_v6 = vunpack.c.l.s8.bf16 %v1206_v62  ;;  %v1230_v62 = vld [vmem:[#allocation12 + $0x308] sm:$0xff] }
 0x187   :  { %v372_v3 = vadd.f32 1e-05, %v369_v1  ;;  %v370_v4 = vmul.f32 0.125, %v368_v2  ;;  %v1141_v1 = vld [vmem:[#allocation12 + $0x40] sm:$0xff] }
 0x188   :  { %v1205_v2 = vld [vmem:[#allocation12 + $0x240] sm:$0xff]  ;;  %v1277_v7 = vunpack.c.l.s8.bf16 %v1141_v1 }
 0x189   :  { %v373_v5 = vadd.f32 1e-05, %v370_v4  ;;  %4095 = vrsqrt.f32 %v372_v3  ;;  %v1285_v3 = vunpack.c.h.s8.bf16 %v1141_v1  ;;  %v1413_v4 = vunpack.c.h.s8.bf16 %v1205_v2 }
 0x18a   :  { %v1405_v8 = vunpack.c.l.s8.bf16 %v1205_v2  ;;  %v1462_v1 = vunpack.c.h.s8.bf16 %v1230_v62  ;;  %v1229_v2 = vld [vmem:[#allocation12 + $0x300] sm:$0xff] }
 0x18b   :  { %4097 = vrsqrt.f32 %v373_v5  ;;  %v1278_v5 = vunpack.c.l.s8.bf16 %v1142_v61  ;;  %v1166_v61 = vld [vmem:[#allocation12 + $0x108] sm:$0xff] }
 0x196   :  { %v4096_v9 = vpop.eup %4095 }
 0x198   :  { %v4098_v11 = vpop.eup %4097 }
 0x199   :  { %v378_v12 = vcombine.low %v4096_v9, %v4098_v11  ;;  %v1134_v9 = vld [vmem:[#allocation12 + $0x8] sm:$0xff] }
 0x19a   :  { %v1198_v11 = vld [vmem:[#allocation12 + $0x208] sm:$0xff] }
 0x19b   :  { %v385_v13 = vrot.slane %v378_v12, %v4508_v10  ;;  %v1270_v12 = vunpack.c.h.s8.bf16 %v1134_v9 }
 0x19d   :  { %v392_v15 = vrot.slane %v385_v13, %v4508_v10  ;;  %v1398_v13 = vunpack.c.h.s8.bf16 %v1198_v11 }
 0x19f   :  { %v394_v16 = vmul.f32 %v392_v15, %v371_v14  ;;  %v1133_v14 = vld [vmem:[#allocation12] sm:$0xff] }
 0x1a0   :  { %v1197_v15 = vld [vmem:[#allocation12 + $0x200] sm:$0xff] }
 0x1a1   :  { %v400_v17 = vrot.slane %v394_v16, %v4495_v21  ;;  %v404_v18 = vrot.slane %v394_v16, %v4498_v23  ;;  %v1269_v16 = vunpack.c.h.s8.bf16 %v1133_v14 }
 0x1a3   :  { %v407_v19 = vmul.f32 %v400_v17, %v351_v47  ;;  %v408_v22 = vmul.f32 %v404_v18, %v352_v50  ;;  %v429_v29 = vmul.f32 %v404_v18, %v337_v36  ;;  %v428_v31 = vmul.f32 %v400_v17, %v4502_v32  ;;  %v1221_v36 = vld [vmem:[#allocation12 + $0x2c0] sm:$0xff]  ;;  %v1214_v50 = vld [vmem:[#allocation12 + $0x288] sm:$0xff] }
 0x1a4   :  { %v1445_v45 = vunpack.c.h.s8.bf16 %v1221_v36  ;;  %v1310_v32 = vunpack.c.l.s8.bf16 %v1158_v39  ;;  %v1309_v47 = vunpack.c.l.s8.bf16 %v1157_v43  ;;  %v1437_v48 = vunpack.c.l.s8.bf16 %v1221_v36  ;;  %v1182_v39 = vld [vmem:[#allocation12 + $0x188] sm:$0xff]  ;;  %v1181_v43 = vld [vmem:[#allocation12 + $0x180] sm:$0xff] }
 0x1a5   :  { %v411_v24 = vcombine.low %v407_v19, %v408_v22  ;;  %v1430_v52 = vunpack.c.h.s8.bf16 %v1214_v50  ;;  %v1422_v58 = vunpack.c.l.s8.bf16 %v1214_v50  ;;  %v1397_v17 = vunpack.c.h.s8.bf16 %v1197_v15  ;;  %v1245_v36 = vld [vmem:[#allocation12 + $0x380] sm:$0xff]  ;;  %v1238_v50 = vld [vmem:[#allocation12 + $0x348] sm:$0xff] }
 0x1a6   :  { %v1262_v18 = vunpack.c.l.s8.bf16 %v1134_v9  ;;  %v1390_v19 = vunpack.c.l.s8.bf16 %v1198_v11  ;;  %v1261_v22 = vunpack.c.l.s8.bf16 %v1133_v14  ;;  %v1366_v41 = vunpack.c.h.s8.bf16 %v1182_v39  ;;  %v4519_v9 = vld [vmem:[#allocation12 + $0xd8] sm:$0xff] }
 0x1a7   :  { %v418_v25 = vrot.slane %v411_v24, %v4508_v10  ;;  %v1389_v24 = vunpack.c.l.s8.bf16 %v1197_v15  ;;  %v4521_v11 = vld [vmem:[#allocation12 + $0x2d8] sm:$0xff]  ;;  %v4526_v14 = vsub.s32 2, %v4492_v20 }
 0x1a8   :  { %v509_v15 = vld [vmem:[#allocation10] sm:$0xf] }
 0x1a9   :  { %v425_v27 = vrot.slane %v418_v25, %v4508_v10  ;;  %v1190_v25 = vld [vmem:[#allocation12 + $0x1c8] sm:$0xff] }
 0x1ab   :  { %v427_v28 = vsub.f32 %v395_v26, %v425_v27  ;;  %v1254_v26 = vld [vmem:[#allocation12 + $0x3c8] sm:$0xff]  ;;  %v1382_v27 = vunpack.c.h.s8.bf16 %v1190_v25 }
 0x1ad   :  { %v438_v30 = vrot.slane %v427_v28, %v4498_v23  ;;  %v434_v33 = vrot.slane %v427_v28, %v4495_v21  ;;  %v1510_v28 = vunpack.c.h.s8.bf16 %v1254_v26 }
 0x1af   :  { %v442_v34 = vadd.f32 %v438_v30, %v429_v29  ;;  %v441_v35 = vadd.f32 %v434_v33, %v428_v31  ;;  %v1189_v29 = vld [vmem:[#allocation12 + $0x1c0] sm:$0xff] }
 0x1b0   :  { %v1253_v30 = vld [vmem:[#allocation12 + $0x3c0] sm:$0xff]  ;;  %v1381_v31 = vunpack.c.h.s8.bf16 %v1189_v29 }
 0x1b1   :  { %v508_v37 = vpack.c.bf16 %v442_v34, %v442_v34  ;;  %v507_v38 = vpack.c.bf16 %v441_v35, %v441_v35  ;;  %v1509_v33 = vunpack.c.h.s8.bf16 %v1253_v30  ;;  %v1374_v34 = vunpack.c.l.s8.bf16 %v1190_v25 }
 0x1b2   :  { %v1502_v35 = vunpack.c.l.s8.bf16 %v1254_v26 }
 0x1b3   :  { %883 = vmatprep.mubr.bf16.mxu1 %v508_v37  ;;  %924 = vmatprep.mubr.bf16.mxu0 %v508_v37  ;;  %v1373_v37 = vunpack.c.l.s8.bf16 %v1189_v29 }
 0x1b4   :  { %884 = vmatmul.mubr.bf16.vlgmr.msra.gmra.mxu1 %v507_v38  ;;  %925 = vmatmul.mubr.bf16.vlgmr.msra.gmra.mxu0 %v507_v38  ;;  %v1501_v38 = vunpack.c.l.s8.bf16 %v1253_v30 }
 0x1b5   :  { %1522 = vmatpush1.bf16.msra.mxu1 %v1317_v44  ;;  %1563 = vmatpush1.bf16.msra.mxu0 %v1445_v45  ;;  %v1365_v44 = vunpack.c.h.s8.bf16 %v1181_v43  ;;  %v1493_v45 = vunpack.c.h.s8.bf16 %v1245_v36 }
 0x1b6   :  { %1523 = vmatprep.subr.bf16.mxu1 %v1310_v32  ;;  %1564 = vmatprep.subr.bf16.mxu0 %v1438_v46  ;;  %v1358_v32 = vunpack.c.l.s8.bf16 %v1182_v39  ;;  %v1486_v46 = vunpack.c.l.s8.bf16 %v1246_v40 }
 0x1b9   :  { %1524 = vmatpush1.bf16.msra.mxu1 %v1309_v47  ;;  %1565 = vmatpush1.bf16.msra.mxu0 %v1437_v48  ;;  %v1357_v47 = vunpack.c.l.s8.bf16 %v1181_v43  ;;  %v1485_v48 = vunpack.c.l.s8.bf16 %v1245_v36 }
 0x1ba   :  { %1525 = vmatprep.subr.bf16.mxu1 %v1302_v51  ;;  %1566 = vmatprep.subr.bf16.mxu0 %v1430_v52  ;;  %v1350_v51 = vunpack.c.h.s8.bf16 %v1174_v49  ;;  %v1478_v52 = vunpack.c.h.s8.bf16 %v1238_v50 }
 0x1bd   :  { %1526 = vmatpush1.bf16.msra.mxu1 %v1301_v55  ;;  %1567 = vmatpush1.bf16.msra.mxu0 %v1429_v56  ;;  %v1349_v55 = vunpack.c.h.s8.bf16 %v1173_v53  ;;  %v1477_v56 = vunpack.c.h.s8.bf16 %v1237_v54 }
 0x1be   :  { %1527 = vmatprep.subr.bf16.mxu1 %v1294_v57  ;;  %1568 = vmatprep.subr.bf16.mxu0 %v1422_v58  ;;  %v1342_v57 = vunpack.c.l.s8.bf16 %v1174_v49  ;;  %v1470_v58 = vunpack.c.l.s8.bf16 %v1238_v50 }
 0x1c1   :  { %1528 = vmatpush1.bf16.msra.mxu1 %v1293_v59  ;;  %1569 = vmatpush1.bf16.msra.mxu0 %v1421_v60  ;;  %v1341_v59 = vunpack.c.l.s8.bf16 %v1173_v53  ;;  %v1469_v60 = vunpack.c.l.s8.bf16 %v1237_v54 }
 0x1c2   :  { %1529 = vmatprep.subr.bf16.mxu1 %v1286_v63  ;;  %1570 = vmatprep.subr.bf16.mxu0 %v1414_v0  ;;  %v1165_v63 = vld [vmem:[#allocation12 + $0x100] sm:$0xff]  ;;  %v1334_v0 = vunpack.c.h.s8.bf16 %v1166_v61 }
 0x1c5   :  { %1530 = vmatpush1.bf16.msra.mxu1 %v1285_v3  ;;  %1571 = vmatpush1.bf16.msra.mxu0 %v1413_v4  ;;  %v1333_v3 = vunpack.c.h.s8.bf16 %v1165_v63  ;;  %v1461_v4 = vunpack.c.h.s8.bf16 %v1229_v2 }
 0x1c6   :  { %1531 = vmatprep.subr.bf16.mxu1 %v1278_v5  ;;  %1572 = vmatprep.subr.bf16.mxu0 %v1406_v6  ;;  %v1326_v5 = vunpack.c.l.s8.bf16 %v1166_v61  ;;  %v1454_v6 = vunpack.c.l.s8.bf16 %v1230_v62 }
 0x1c9   :  { %1532 = vmatpush1.bf16.msra.mxu1 %v1277_v7  ;;  %1573 = vmatpush1.bf16.msra.mxu0 %v1405_v8  ;;  %v1325_v7 = vunpack.c.l.s8.bf16 %v1165_v63  ;;  %v1453_v8 = vunpack.c.l.s8.bf16 %v1229_v2 }
 0x1ca   :  { %1533 = vmatprep.subr.bf16.mxu1 %v1270_v12  ;;  %1574 = vmatprep.subr.bf16.mxu0 %v1398_v13  ;;  %v1320_v12 = vunpack.c.h.s8.bf16 %v4519_v9  ;;  %v1448_v13 = vunpack.c.h.s8.bf16 %v4521_v11 }
 0x1cd   :  { %1534 = vmatpush1.bf16.msra.mxu1 %v1269_v16  ;;  %1575 = vmatpush1.bf16.msra.mxu0 %v1397_v17  ;;  %v4529_v16 = vsub.s32 3, %v4492_v20  ;;  %v514_v17 = vrot.slane %v509_v15, %v4495_v21 }
 0x1ce   :  { %1535 = vmatprep.subr.bf16.mxu1 %v1262_v18  ;;  %1576 = vmatprep.subr.bf16.mxu0 %v1390_v19  ;;  %v522_v18 = vrot.slane %v509_v15, %v4526_v14 }
 0x1cf   :  { %v526_v25 = vrot.slane %v509_v15, %v4529_v16 }
 0x1d1   :  { %1536 = vmatpush1.bf16.msra.mxu1 %v1261_v22  ;;  %1577 = vmatpush1.bf16.msra.mxu0 %v1389_v24  ;;  %v518_v24 = vrot.slane %v509_v15, %v4498_v23 }
 0x1d2   :  { %1537 = vmatprep.subr.bf16.mxu1 %v1382_v27  ;;  %1578 = vmatprep.subr.bf16.mxu0 %v1510_v28 }
 0x1d5   :  { %1538 = vmatpush2.bf16.msra.mxu1 %v1381_v31  ;;  %1579 = vmatpush2.bf16.msra.mxu0 %v1509_v33 }
 0x1d6   :  { %1539 = vmatprep.subr.bf16.mxu1 %v1374_v34  ;;  %1580 = vmatprep.subr.bf16.mxu0 %v1502_v35 }
 0x1d9   :  { %1540 = vmatpush2.bf16.msra.mxu1 %v1373_v37  ;;  %1581 = vmatpush2.bf16.msra.mxu0 %v1501_v38 }
 0x1da   :  { %1541 = vmatprep.subr.bf16.mxu1 %v1366_v41  ;;  %1582 = vmatprep.subr.bf16.mxu0 %v1494_v42 }
 0x1dd   :  { %1542 = vmatpush2.bf16.msra.mxu1 %v1365_v44  ;;  %1583 = vmatpush2.bf16.msra.mxu0 %v1493_v45 }
 0x1de   :  { %1543 = vmatprep.subr.bf16.mxu1 %v1358_v32  ;;  %1584 = vmatprep.subr.bf16.mxu0 %v1486_v46 }
 0x1e1   :  { %1544 = vmatpush2.bf16.msra.mxu1 %v1357_v47  ;;  %1585 = vmatpush2.bf16.msra.mxu0 %v1485_v48 }
 0x1e2   :  { %1545 = vmatprep.subr.bf16.mxu1 %v1350_v51  ;;  %1586 = vmatprep.subr.bf16.mxu0 %v1478_v52 }
 0x1e5   :  { %1546 = vmatpush2.bf16.msra.mxu1 %v1349_v55  ;;  %1587 = vmatpush2.bf16.msra.mxu0 %v1477_v56 }
 0x1e6   :  { %1547 = vmatprep.subr.bf16.mxu1 %v1342_v57  ;;  %1588 = vmatprep.subr.bf16.mxu0 %v1470_v58 }
 0x1e9   :  { %1548 = vmatpush2.bf16.msra.mxu1 %v1341_v59  ;;  %1589 = vmatpush2.bf16.msra.mxu0 %v1469_v60 }
 0x1ea   :  { %1549 = vmatprep.subr.bf16.mxu1 %v1334_v0  ;;  %1590 = vmatprep.subr.bf16.mxu0 %v1462_v1 }
 0x1ed   :  { %1550 = vmatpush2.bf16.msra.mxu1 %v1333_v3  ;;  %1591 = vmatpush2.bf16.msra.mxu0 %v1461_v4 }
 0x1ee   :  { %1551 = vmatprep.subr.bf16.mxu1 %v1326_v5  ;;  %1592 = vmatprep.subr.bf16.mxu0 %v1454_v6 }
 0x1f1   :  { %1552 = vmatpush2.bf16.msra.mxu1 %v1325_v7  ;;  %1593 = vmatpush2.bf16.msra.mxu0 %v1453_v8 }
 0x1f2   :  { %1603 = vmatprep.subr.bf16.mxu1 %v1320_v12  ;;  %1644 = vmatprep.subr.bf16.mxu0 %v1448_v13 }
 0x274   :  { %v885_v19 = vpop.f32.mrf.mxu1  ;;  %v926_v22 = vpop.f32.mrf.mxu0 }
 0x275   :  { %v886_v26 = vadd.f32 %v885_v19, %v514_v17  ;;  %v927_v27 = vadd.f32 %v926_v22, %v522_v18 }
 0x276   :  { %v887_v28 = vpop.f32.mrf.mxu1  ;;  %v928_v29 = vpop.f32.mrf.mxu0 }
 0x277   :  { %vm933_vm2 = vcmp.ge.f32.partialorder %v886_v26, 0.0  ;;  %v937_v30 = vmul.f32 0.01, %v886_v26  ;;  %vm935_vm3 = vcmp.ge.f32.partialorder %v927_v27, 0.0  ;;  %v939_v31 = vmul.f32 0.01, %v927_v27 }
 0x278   :  { %v888_v33 = vadd.f32 %v887_v28, %v518_v24  ;;  %v929_v34 = vadd.f32 %v928_v29, %v526_v25  ;;  %v889_v35 = vpop.f32.mrf.mxu1  ;;  %v930_v37 = vpop.f32.mrf.mxu0 }
 0x279   :  { %v4535_v38 = vsel %vm933_vm2, %v886_v26, %v937_v30  ;;  %v4537_v39 = vsel %vm935_vm3, %v927_v27, %v939_v31 }
 0x27a   :  { %v945_v40 = vrot.slane %v4535_v38, 4  ;;  %v957_v41 = vrot.slane %v4537_v39, 4  ;;  %vm934_vm4 = vcmp.ge.f32.partialorder %v888_v33, 0.0  ;;  %v938_v42 = vmul.f32 0.01, %v888_v33  ;;  %v890_v43 = vpop.f32.mrf.mxu1  ;;  %v931_v36 = vpop.f32.mrf.mxu0 }
 0x27b   :  { %vm936_vm5 = vcmp.ge.f32.partialorder %v929_v34, 0.0  ;;  %v940_v44 = vmul.f32 0.01, %v929_v34 }
 0x27c   :  { %v946_v45 = vadd.f32 %v945_v40, %v4535_v38  ;;  %v958_v32 = vadd.f32 %v957_v41, %v4537_v39  ;;  %v4543_v46 = vsel %vm934_vm4, %v888_v33, %v938_v42 }
 0x27d   :  { %v951_v47 = vrot.slane %v4543_v46, 4  ;;  %v4546_v48 = vsel %vm936_vm5, %v929_v34, %v940_v44 }
 0x27e   :  { %v947_v49 = vrot.slane %v946_v45, 2  ;;  %v959_v50 = vrot.slane %v958_v32, 2  ;;  %v963_v51 = vrot.slane %v4546_v48, 4 }
 0x27f   :  { %v952_v52 = vadd.f32 %v951_v47, %v4543_v46 }
 0x280   :  { %v948_v53 = vadd.f32 %v947_v49, %v946_v45  ;;  %v960_v54 = vadd.f32 %v959_v50, %v958_v32  ;;  %v964_v55 = vadd.f32 %v963_v51, %v4546_v48 }
 0x281   :  { %v953_v56 = vrot.slane %v952_v52, 2 }
 0x282   :  { %v949_v57 = vrot.slane %v948_v53, 1  ;;  %v961_v58 = vrot.slane %v960_v54, 1  ;;  %v965_v59 = vrot.slane %v964_v55, 2 }
 0x283   :  { %v954_v60 = vadd.f32 %v953_v56, %v952_v52 }
 0x284   :  { %v950_v61 = vadd.f32 %v949_v57, %v948_v53  ;;  %v962_v62 = vadd.f32 %v961_v58, %v960_v54  ;;  %v966_v63 = vadd.f32 %v965_v59, %v964_v55 }
 0x285   :  { %v955_v0 = vrot.slane %v954_v60, 1 }
 0x286   :  { %v4551_v1 = vmul.f32 0.125, %v950_v61  ;;  %v4553_v2 = vmul.f32 0.125, %v962_v62  ;;  %v967_v3 = vrot.slane %v966_v63, 1 }
 0x287   :  { %v956_v4 = vadd.f32 %v955_v0, %v954_v60 }
 0x288   :  { %v973_v5 = vsub.f32 %v4535_v38, %v4551_v1  ;;  %v975_v6 = vsub.f32 %v4537_v39, %v4553_v2  ;;  %v968_v7 = vadd.f32 %v967_v3, %v966_v63 }
 0x289   :  { %v4559_v8 = vmul.f32 0.125, %v956_v4 }
 0x28a   :  { %v977_v12 = vmul.f32 %v973_v5, %v973_v5  ;;  %v979_v13 = vmul.f32 %v975_v6, %v975_v6  ;;  %v972_v15 = vmul.f32 0.125, %v968_v7  ;;  %v1009_v7 = vld [vmem:[%s4951_s7] sm:$0xf] }
 0x28b   :  { %v974_v17 = vsub.f32 %v4543_v46, %v4559_v8 }
 0x28c   :  { %v981_v18 = vrot.slane %v977_v12, 4  ;;  %v993_v19 = vrot.slane %v979_v13, 4  ;;  %v976_v22 = vsub.f32 %v4546_v48, %v972_v15 }
 0x28d   :  { %v978_v24 = vmul.f32 %v974_v17, %v974_v17 }
 0x28e   :  { %v982_v25 = vadd.f32 %v981_v18, %v977_v12  ;;  %v994_v26 = vadd.f32 %v993_v19, %v979_v13  ;;  %v980_v27 = vmul.f32 %v976_v22, %v976_v22 }
 0x28f   :  { %v987_v28 = vrot.slane %v978_v24, 4 }
 0x290   :  { %v983_v29 = vrot.slane %v982_v25, 2  ;;  %v995_v30 = vrot.slane %v994_v26, 2  ;;  %v999_v31 = vrot.slane %v980_v27, 4 }
 0x291   :  { %v988_v33 = vadd.f32 %v987_v28, %v978_v24 }
 0x292   :  { %v984_v34 = vadd.f32 %v983_v29, %v982_v25  ;;  %v996_v35 = vadd.f32 %v995_v30, %v994_v26  ;;  %v1000_v37 = vadd.f32 %v999_v31, %v980_v27 }
 0x293   :  { %v989_v40 = vrot.slane %v988_v33, 2 }
 0x294   :  { %v985_v41 = vrot.slane %v984_v34, 1  ;;  %v997_v42 = vrot.slane %v996_v35, 1  ;;  %v1001_v43 = vrot.slane %v1000_v37, 2 }
 0x295   :  { %v990_v36 = vadd.f32 %v989_v40, %v988_v33 }
 0x296   :  { %v986_v44 = vadd.f32 %v985_v41, %v984_v34  ;;  %v998_v45 = vadd.f32 %v997_v42, %v996_v35  ;;  %v1002_v32 = vadd.f32 %v1001_v43, %v1000_v37  ;;  %v1048_v34 = vld [vmem:[%s4952_s8] sm:$0xf] }
 0x297   :  { %v991_v47 = vrot.slane %v990_v36, 1 }
 0x298   :  { %v1005_v49 = vmul.f32 0.125, %v986_v44  ;;  %v1007_v50 = vmul.f32 0.125, %v998_v45  ;;  %v1003_v51 = vrot.slane %v1002_v32, 1  ;;  %v1223_v44 = vld [vmem:[#allocation12 + $0x2d0] sm:$0xff] }
 0x299   :  { %v992_v52 = vadd.f32 %v991_v47, %v990_v36  ;;  %v1159_v36 = vld [vmem:[#allocation12 + $0xd0] sm:$0xff] }
 0x29a   :  { %v1010_v53 = vadd.f32 1e-05, %v1005_v49  ;;  %v1012_v54 = vadd.f32 1e-05, %v1007_v50  ;;  %v1004_v55 = vadd.f32 %v1003_v51, %v1002_v32  ;;  %v1319_v49 = vunpack.c.h.s8.bf16 %v1159_v36 }
 0x29b   :  { %v1006_v56 = vmul.f32 0.125, %v992_v52  ;;  %v1312_v52 = vunpack.c.l.s8.bf16 %v4519_v9  ;;  %v1215_v9 = vld [vmem:[#allocation12 + $0x290] sm:$0xff] }
 0x29c   :  { %v1008_v57 = vmul.f32 0.125, %v1004_v55  ;;  %4099 = vrsqrt.f32 %v1010_v53  ;;  %v1440_v53 = vunpack.c.l.s8.bf16 %v4521_v11  ;;  %v1216_v55 = vld [vmem:[#allocation12 + $0x298] sm:$0xff] }
 0x29d   :  { %v1011_v58 = vadd.f32 1e-05, %v1006_v56  ;;  %4101 = vrsqrt.f32 %v1012_v54  ;;  %v1152_v54 = vld [vmem:[#allocation12 + $0x98] sm:$0xff]  ;;  %v1311_v56 = vunpack.c.l.s8.bf16 %v1159_v36 }
 0x29e   :  { %v1013_v59 = vadd.f32 1e-05, %v1008_v57  ;;  %v1439_v57 = vunpack.c.l.s8.bf16 %v1223_v44 }
 0x29f   :  { %4103 = vrsqrt.f32 %v1011_v58  ;;  %v1304_v58 = vunpack.c.h.s8.bf16 %v1152_v54 }
 0x2a0   :  { %4105 = vrsqrt.f32 %v1013_v59  ;;  %v1432_v59 = vunpack.c.h.s8.bf16 %v1216_v55 }
 0x2a9   :  { %v4100_v60 = vpop.eup %4099 }
 0x2aa   :  { %v4102_v61 = vpop.eup %4101 }
 0x2ac   :  { %v4104_v62 = vpop.eup %4103 }
 0x2ad   :  { %v4106_v63 = vpop.eup %4105  ;;  %v1022_v0 = vcombine.low %v4100_v60, %v4104_v62  ;;  %v1151_v60 = vld [vmem:[#allocation12 + $0x90] sm:$0xff]  ;;  %v1296_v62 = vunpack.c.l.s8.bf16 %v1152_v54 }
 0x2ae   :  { %v1023_v3 = vcombine.low %v4102_v61, %v4106_v63  ;;  %v1303_v11 = vunpack.c.h.s8.bf16 %v1151_v60  ;;  %v1431_v61 = vunpack.c.h.s8.bf16 %v1215_v9  ;;  %v1424_v63 = vunpack.c.l.s8.bf16 %v1216_v55  ;;  %v1183_v54 = vld [vmem:[#allocation12 + $0x190] sm:$0xff] }
 0x2af   :  { %v1030_v4 = vrot.slane %v1022_v0, %v4508_v10  ;;  %v1144_v0 = vld [vmem:[#allocation12 + $0x58] sm:$0xff]  ;;  %v1247_v55 = vld [vmem:[#allocation12 + $0x390] sm:$0xff] }
 0x2b0   :  { %v1037_v5 = vrot.slane %v1023_v3, %v4508_v10  ;;  %v1208_v3 = vld [vmem:[#allocation12 + $0x258] sm:$0xff] }
 0x2b2   :  { %v1038_v6 = vcombine.low %v1030_v4, %v1037_v5  ;;  %v1295_v4 = vunpack.c.l.s8.bf16 %v1151_v60  ;;  %v1423_v5 = vunpack.c.l.s8.bf16 %v1215_v9  ;;  %v1176_v60 = vld [vmem:[#allocation12 + $0x158] sm:$0xff] }
 0x2b3   :  { %v1240_v9 = vld [vmem:[#allocation12 + $0x358] sm:$0xff] }
 0x2b4   :  { %v1045_v12 = vrot.slane %v1038_v6, %v4508_v10  ;;  %v1288_v6 = vunpack.c.h.s8.bf16 %v1144_v0 }
 0x2b6   :  { %v1047_v13 = vmul.f32 %v1045_v12, %v1009_v7  ;;  %v1416_v7 = vunpack.c.h.s8.bf16 %v1208_v3  ;;  %v1143_v12 = vld [vmem:[#allocation12 + $0x50] sm:$0xff] }
 0x2b8   :  { %v1061_v17 = vrot.slane %v1047_v13, %v4526_v14  ;;  %v1065_v18 = vrot.slane %v1047_v13, %v4529_v16  ;;  %v1053_v19 = vrot.slane %v1047_v13, %v4495_v21  ;;  %v1057_v22 = vrot.slane %v1047_v13, %v4498_v23  ;;  %v1207_v13 = vld [vmem:[#allocation12 + $0x250] sm:$0xff] }
 0x2ba   :  { %v1072_v24 = vmul.f32 %v1061_v17, %v4553_v2  ;;  %v1073_v25 = vmul.f32 %v1065_v18, %v972_v15  ;;  %v1070_v26 = vmul.f32 %v1053_v19, %v4551_v1  ;;  %v1071_v27 = vmul.f32 %v1057_v22, %v4559_v8 }
 0x2bb   :  { %v1107_v2 = vmul.f32 %v1065_v18, %v4546_v48  ;;  %v1105_v1 = vmul.f32 %v1057_v22, %v4543_v46  ;;  %v1104_v8 = vmul.f32 %v1053_v19, %v4535_v38  ;;  %v1106_v15 = vmul.f32 %v1061_v17, %v4537_v39 }
 0x2bc   :  { %v1079_v28 = vcombine.low %v1072_v24, %v1073_v25  ;;  %v1078_v29 = vcombine.low %v1070_v26, %v1071_v27  ;;  %v1447_v46 = vunpack.c.h.s8.bf16 %v1223_v44  ;;  %v1287_v17 = vunpack.c.h.s8.bf16 %v1143_v12  ;;  %v1136_v24 = vld [vmem:[#allocation12 + $0x18] sm:$0xff] }
 0x2bd   :  { %v1415_v18 = vunpack.c.h.s8.bf16 %v1207_v13  ;;  %v1280_v19 = vunpack.c.l.s8.bf16 %v1144_v0  ;;  %v1408_v22 = vunpack.c.l.s8.bf16 %v1208_v3  ;;  %v1200_v25 = vld [vmem:[#allocation12 + $0x218] sm:$0xff]  ;;  %v1279_v26 = vunpack.c.l.s8.bf16 %v1143_v12  ;;  %v1175_v0 = vld [vmem:[#allocation12 + $0x150] sm:$0xff] }
 0x2be   :  { %v1093_v30 = vrot.slane %v1079_v28, %v4508_v10  ;;  %v1086_v31 = vrot.slane %v1078_v29, %v4508_v10  ;;  %v1407_v27 = vunpack.c.l.s8.bf16 %v1207_v13  ;;  %v1272_v28 = vunpack.c.h.s8.bf16 %v1136_v24  ;;  %v1239_v3 = vld [vmem:[#allocation12 + $0x350] sm:$0xff]  ;;  %v1168_v12 = vld [vmem:[#allocation12 + $0x118] sm:$0xff] }
 0x2bf   :  { %v1400_v29 = vunpack.c.h.s8.bf16 %v1200_v25  ;;  %v1232_v13 = vld [vmem:[#allocation12 + $0x318] sm:$0xff] }
 0x2c0   :  { %v1094_v33 = vcombine.low %v1086_v31, %v1093_v30  ;;  %v1135_v30 = vld [vmem:[#allocation12 + $0x10] sm:$0xff] }
 0x2c1   :  { %v1199_v31 = vld [vmem:[#allocation12 + $0x210] sm:$0xff] }
 0x2c2   :  { %v1101_v35 = vrot.slane %v1094_v33, %v4508_v10  ;;  %v1271_v33 = vunpack.c.h.s8.bf16 %v1135_v30 }
 0x2c4   :  { %v1103_v37 = vsub.f32 %v1048_v34, %v1101_v35  ;;  %v1399_v34 = vunpack.c.h.s8.bf16 %v1199_v31  ;;  %v1264_v35 = vunpack.c.l.s8.bf16 %v1136_v24  ;;  %v1167_v24 = vld [vmem:[#allocation12 + $0x110] sm:$0xff] }
 0x2c6   :  { %v1116_v40 = vrot.slane %v1103_v37, %v4498_v23  ;;  %v1124_v41 = vrot.slane %v1103_v37, %v4529_v16  ;;  %v1112_v42 = vrot.slane %v1103_v37, %v4495_v21  ;;  %v1120_v43 = vrot.slane %v1103_v37, %v4526_v14 }
 0x2c7   :  { %v1392_v37 = vunpack.c.l.s8.bf16 %v1200_v25  ;;  %v1231_v25 = vld [vmem:[#allocation12 + $0x310] sm:$0xff] }
 0x2c8   :  { %v1130_v45 = vadd.f32 %v1116_v40, %v1105_v1  ;;  %v1132_v32 = vadd.f32 %v1124_v41, %v1107_v2  ;;  %v1129_v47 = vadd.f32 %v1112_v42, %v1104_v8  ;;  %v1131_v48 = vadd.f32 %v1120_v43, %v1106_v15  ;;  %v1192_v2 = vld [vmem:[#allocation12 + $0x1d8] sm:$0xff]  ;;  %v1191_v42 = vld [vmem:[#allocation12 + $0x1d0] sm:$0xff] }
 0x2c9   :  { %v1256_v1 = vld [vmem:[#allocation12 + $0x3d8] sm:$0xff]  ;;  %v1263_v8 = vunpack.c.l.s8.bf16 %v1135_v30  ;;  %v1391_v15 = vunpack.c.l.s8.bf16 %v1199_v31  ;;  %v1384_v40 = vunpack.c.h.s8.bf16 %v1192_v2  ;;  %v1255_v43 = vld [vmem:[#allocation12 + $0x3d0] sm:$0xff]  ;;  %v1383_v36 = vunpack.c.h.s8.bf16 %v1191_v42  ;;  %v1162_v30 = vld [vmem:[#allocation12 + $0xe8] sm:$0xff] }
 0x2ca   :  { %v4591_v50 = vpack.c.bf16 %v1130_v45, %v1130_v45  ;;  %v4593_v38 = vpack.c.bf16 %v1132_v32, %v1132_v32  ;;  %v4595_v39 = vpack.c.bf16 %v1129_v47, %v1129_v47  ;;  %v4597_v51 = vpack.c.bf16 %v1131_v48, %v1131_v48  ;;  %v1184_v47 = vld [vmem:[#allocation12 + $0x198] sm:$0xff]  ;;  %v1226_v31 = vld [vmem:[#allocation12 + $0x2e8] sm:$0xff] }
 0x2cb   :  { %v1512_v41 = vunpack.c.h.s8.bf16 %v1256_v1  ;;  %v1511_v44 = vunpack.c.h.s8.bf16 %v1255_v43  ;;  %v1376_v45 = vunpack.c.l.s8.bf16 %v1192_v2  ;;  %v1504_v32 = vunpack.c.l.s8.bf16 %v1256_v1  ;;  %v1248_v48 = vld [vmem:[#allocation12 + $0x398] sm:$0xff]  ;;  %v1161_v2 = vld [vmem:[#allocation12 + $0xe0] sm:$0xff] }
 0x2cc   :  { %1553 = vmatprep.mubr.bf16.mxu1 %v4591_v50  ;;  %1594 = vmatprep.mubr.bf16.mxu0 %v4593_v38  ;;  %v1225_v1 = vld [vmem:[#allocation12 + $0x2e0] sm:$0xff] }
 0x2cd   :  { %1554 = vmatmul.mubr.bf16.vlgmr.msra.gmra.mxu1 %v4595_v39  ;;  %1595 = vmatmul.mubr.bf16.vlgmr.msra.gmra.mxu0 %v4597_v51 }
 0x2ce   :  { %1604 = vmatpush1.bf16.msra.mxu1 %v1319_v49  ;;  %1645 = vmatpush1.bf16.msra.mxu0 %v1447_v46  ;;  %v1375_v49 = vunpack.c.l.s8.bf16 %v1191_v42  ;;  %v1503_v46 = vunpack.c.l.s8.bf16 %v1255_v43  ;;  %v1154_v42 = vld [vmem:[#allocation12 + $0xa8] sm:$0xff] }
 0x2cf   :  { %1635 = vmatprep.mubr.bf16.mxu1 %v4591_v50  ;;  %1676 = vmatprep.mubr.bf16.mxu0 %v4593_v38  ;;  %v1218_v43 = vld [vmem:[#allocation12 + $0x2a8] sm:$0xff] }
 0x2d0   :  { %1605 = vmatprep.subr.bf16.mxu1 %v1312_v52  ;;  %1646 = vmatprep.subr.bf16.mxu0 %v1440_v53  ;;  %v1368_v52 = vunpack.c.h.s8.bf16 %v1184_v47  ;;  %v1496_v53 = vunpack.c.h.s8.bf16 %v1248_v48 }
 0x2d2   :  { %1606 = vmatpush1.bf16.msra.mxu1 %v1311_v56  ;;  %1647 = vmatpush1.bf16.msra.mxu0 %v1439_v57  ;;  %v1367_v56 = vunpack.c.h.s8.bf16 %v1183_v54  ;;  %v1495_v57 = vunpack.c.h.s8.bf16 %v1247_v55 }
 0x2d3   :  { %1607 = vmatprep.subr.bf16.mxu1 %v1304_v58  ;;  %1648 = vmatprep.subr.bf16.mxu0 %v1432_v59  ;;  %v1360_v58 = vunpack.c.l.s8.bf16 %v1184_v47  ;;  %v1488_v59 = vunpack.c.l.s8.bf16 %v1248_v48  ;;  %v1434_v47 = vunpack.c.h.s8.bf16 %v1218_v43  ;;  %v1217_v48 = vld [vmem:[#allocation12 + $0x2a0] sm:$0xff] }
 0x2d6   :  { %1608 = vmatpush1.bf16.msra.mxu1 %v1303_v11  ;;  %1649 = vmatpush1.bf16.msra.mxu0 %v1431_v61  ;;  %v1359_v11 = vunpack.c.l.s8.bf16 %v1183_v54  ;;  %v1487_v61 = vunpack.c.l.s8.bf16 %v1247_v55  ;;  %v1146_v54 = vld [vmem:[#allocation12 + $0x68] sm:$0xff] }
 0x2d7   :  { %1609 = vmatprep.subr.bf16.mxu1 %v1296_v62  ;;  %1650 = vmatprep.subr.bf16.mxu0 %v1424_v63  ;;  %v1352_v62 = vunpack.c.h.s8.bf16 %v1176_v60  ;;  %v1480_v63 = vunpack.c.h.s8.bf16 %v1240_v9  ;;  %v1210_v55 = vld [vmem:[#allocation12 + $0x268] sm:$0xff] }
 0x2da   :  { %1610 = vmatpush1.bf16.msra.mxu1 %v1295_v4  ;;  %1651 = vmatpush1.bf16.msra.mxu0 %v1423_v5  ;;  %v1351_v4 = vunpack.c.h.s8.bf16 %v1175_v0  ;;  %v1479_v5 = vunpack.c.h.s8.bf16 %v1239_v3 }
 0x2db   :  { %1611 = vmatprep.subr.bf16.mxu1 %v1288_v6  ;;  %1652 = vmatprep.subr.bf16.mxu0 %v1416_v7  ;;  %v1344_v6 = vunpack.c.l.s8.bf16 %v1176_v60  ;;  %v1472_v7 = vunpack.c.l.s8.bf16 %v1240_v9  ;;  %v1418_v60 = vunpack.c.h.s8.bf16 %v1210_v55  ;;  %v1209_v9 = vld [vmem:[#allocation12 + $0x260] sm:$0xff] }
 0x2de   :  { %1612 = vmatpush1.bf16.msra.mxu1 %v1287_v17  ;;  %1653 = vmatpush1.bf16.msra.mxu0 %v1415_v18  ;;  %v1343_v17 = vunpack.c.l.s8.bf16 %v1175_v0  ;;  %v1471_v18 = vunpack.c.l.s8.bf16 %v1239_v3  ;;  %v1138_v0 = vld [vmem:[#allocation12 + $0x28] sm:$0xff] }
 0x2df   :  { %1613 = vmatprep.subr.bf16.mxu1 %v1280_v19  ;;  %1654 = vmatprep.subr.bf16.mxu0 %v1408_v22  ;;  %v1336_v19 = vunpack.c.h.s8.bf16 %v1168_v12  ;;  %v1464_v22 = vunpack.c.h.s8.bf16 %v1232_v13  ;;  %v1202_v3 = vld [vmem:[#allocation12 + $0x228] sm:$0xff] }
 0x2e2   :  { %1614 = vmatpush1.bf16.msra.mxu1 %v1279_v26  ;;  %1655 = vmatpush1.bf16.msra.mxu0 %v1407_v27  ;;  %v1335_v26 = vunpack.c.h.s8.bf16 %v1167_v24  ;;  %v1463_v27 = vunpack.c.h.s8.bf16 %v1231_v25 }
 0x2e3   :  { %1615 = vmatprep.subr.bf16.mxu1 %v1272_v28  ;;  %1656 = vmatprep.subr.bf16.mxu0 %v1400_v29  ;;  %v1328_v28 = vunpack.c.l.s8.bf16 %v1168_v12  ;;  %v1456_v29 = vunpack.c.l.s8.bf16 %v1232_v13  ;;  %v1402_v12 = vunpack.c.h.s8.bf16 %v1202_v3  ;;  %v1201_v13 = vld [vmem:[#allocation12 + $0x220] sm:$0xff] }
 0x2e6   :  { %1616 = vmatpush1.bf16.msra.mxu1 %v1271_v33  ;;  %1657 = vmatpush1.bf16.msra.mxu0 %v1399_v34  ;;  %v1327_v33 = vunpack.c.l.s8.bf16 %v1167_v24  ;;  %v1455_v34 = vunpack.c.l.s8.bf16 %v1231_v25  ;;  %v1194_v24 = vld [vmem:[#allocation12 + $0x1e8] sm:$0xff] }
 0x2e7   :  { %1617 = vmatprep.subr.bf16.mxu1 %v1264_v35  ;;  %1658 = vmatprep.subr.bf16.mxu0 %v1392_v37  ;;  %v1322_v35 = vunpack.c.h.s8.bf16 %v1162_v30  ;;  %v1450_v37 = vunpack.c.h.s8.bf16 %v1226_v31  ;;  %v1258_v25 = vld [vmem:[#allocation12 + $0x3e8] sm:$0xff] }
 0x2ea   :  { %1618 = vmatpush1.bf16.msra.mxu1 %v1263_v8  ;;  %1659 = vmatpush1.bf16.msra.mxu0 %v1391_v15  ;;  %v1321_v8 = vunpack.c.h.s8.bf16 %v1161_v2  ;;  %v1449_v15 = vunpack.c.h.s8.bf16 %v1225_v1 }
 0x2eb   :  { %1619 = vmatprep.subr.bf16.mxu1 %v1384_v40  ;;  %1660 = vmatprep.subr.bf16.mxu0 %v1512_v41  ;;  %v1314_v40 = vunpack.c.l.s8.bf16 %v1162_v30  ;;  %v1442_v41 = vunpack.c.l.s8.bf16 %v1226_v31  ;;  %v1514_v30 = vunpack.c.h.s8.bf16 %v1258_v25  ;;  %v1257_v31 = vld [vmem:[#allocation12 + $0x3e0] sm:$0xff] }
 0x2ee   :  { %1620 = vmatpush2.bf16.msra.mxu1 %v1383_v36  ;;  %1661 = vmatpush2.bf16.msra.mxu0 %v1511_v44  ;;  %v1313_v36 = vunpack.c.l.s8.bf16 %v1161_v2  ;;  %v1441_v44 = vunpack.c.l.s8.bf16 %v1225_v1  ;;  %v1186_v2 = vld [vmem:[#allocation12 + $0x1a8] sm:$0xff] }
 0x2ef   :  { %1621 = vmatprep.subr.bf16.mxu1 %v1376_v45  ;;  %1662 = vmatprep.subr.bf16.mxu0 %v1504_v32  ;;  %v1306_v45 = vunpack.c.h.s8.bf16 %v1154_v42  ;;  %v1153_v32 = vld [vmem:[#allocation12 + $0xa0] sm:$0xff]  ;;  %v1250_v1 = vld [vmem:[#allocation12 + $0x3a8] sm:$0xff] }
 0x2f2   :  { %1622 = vmatpush2.bf16.msra.mxu1 %v1375_v49  ;;  %1663 = vmatpush2.bf16.msra.mxu0 %v1503_v46  ;;  %v1305_v49 = vunpack.c.h.s8.bf16 %v1153_v32  ;;  %v1433_v46 = vunpack.c.h.s8.bf16 %v1217_v48 }
 0x2f3   :  { %1623 = vmatprep.subr.bf16.mxu1 %v1368_v52  ;;  %1664 = vmatprep.subr.bf16.mxu0 %v1496_v53  ;;  %v1298_v52 = vunpack.c.l.s8.bf16 %v1154_v42  ;;  %v1426_v53 = vunpack.c.l.s8.bf16 %v1218_v43  ;;  %v1498_v42 = vunpack.c.h.s8.bf16 %v1250_v1  ;;  %v1249_v43 = vld [vmem:[#allocation12 + $0x3a0] sm:$0xff] }
 0x2f6   :  { %1624 = vmatpush2.bf16.msra.mxu1 %v1367_v56  ;;  %1665 = vmatpush2.bf16.msra.mxu0 %v1495_v57  ;;  %v1297_v56 = vunpack.c.l.s8.bf16 %v1153_v32  ;;  %v1425_v57 = vunpack.c.l.s8.bf16 %v1217_v48  ;;  %v1490_v32 = vunpack.c.l.s8.bf16 %v1250_v1  ;;  %v1242_v48 = vld [vmem:[#allocation12 + $0x368] sm:$0xff]  ;;  %v1219_v1 = vld [vmem:[#allocation12 + $0x2b0] sm:$0xff] }
 0x2f7   :  { %1625 = vmatprep.subr.bf16.mxu1 %v1360_v58  ;;  %1666 = vmatprep.subr.bf16.mxu0 %v1488_v59  ;;  %v1290_v58 = vunpack.c.h.s8.bf16 %v1146_v54  ;;  %v1145_v59 = vld [vmem:[#allocation12 + $0x60] sm:$0xff] }
 0x2fa   :  { %1626 = vmatpush2.bf16.msra.mxu1 %v1359_v11  ;;  %1667 = vmatpush2.bf16.msra.mxu0 %v1487_v61  ;;  %v1289_v11 = vunpack.c.h.s8.bf16 %v1145_v59  ;;  %v1417_v61 = vunpack.c.h.s8.bf16 %v1209_v9 }
 0x2fb   :  { %1627 = vmatprep.subr.bf16.mxu1 %v1352_v62  ;;  %1668 = vmatprep.subr.bf16.mxu0 %v1480_v63  ;;  %v1282_v62 = vunpack.c.l.s8.bf16 %v1146_v54  ;;  %v1410_v63 = vunpack.c.l.s8.bf16 %v1210_v55  ;;  %v1482_v54 = vunpack.c.h.s8.bf16 %v1242_v48  ;;  %v1241_v55 = vld [vmem:[#allocation12 + $0x360] sm:$0xff] }
 0x2fe   :  { %1628 = vmatpush2.bf16.msra.mxu1 %v1351_v4  ;;  %1669 = vmatpush2.bf16.msra.mxu0 %v1479_v5  ;;  %v1281_v4 = vunpack.c.l.s8.bf16 %v1145_v59  ;;  %v1409_v5 = vunpack.c.l.s8.bf16 %v1209_v9  ;;  %v1474_v59 = vunpack.c.l.s8.bf16 %v1242_v48  ;;  %v1234_v9 = vld [vmem:[#allocation12 + $0x328] sm:$0xff] }
 0x2ff   :  { %1629 = vmatprep.subr.bf16.mxu1 %v1344_v6  ;;  %1670 = vmatprep.subr.bf16.mxu0 %v1472_v7  ;;  %v1274_v6 = vunpack.c.h.s8.bf16 %v1138_v0  ;;  %v1137_v7 = vld [vmem:[#allocation12 + $0x20] sm:$0xff] }
 0x302   :  { %1630 = vmatpush2.bf16.msra.mxu1 %v1343_v17  ;;  %1671 = vmatpush2.bf16.msra.mxu0 %v1471_v18  ;;  %v1273_v17 = vunpack.c.h.s8.bf16 %v1137_v7  ;;  %v1401_v18 = vunpack.c.h.s8.bf16 %v1201_v13 }
 0x303   :  { %1631 = vmatprep.subr.bf16.mxu1 %v1336_v19  ;;  %1672 = vmatprep.subr.bf16.mxu0 %v1464_v22  ;;  %v1266_v19 = vunpack.c.l.s8.bf16 %v1138_v0  ;;  %v1394_v22 = vunpack.c.l.s8.bf16 %v1202_v3  ;;  %v1466_v0 = vunpack.c.h.s8.bf16 %v1234_v9  ;;  %v1233_v3 = vld [vmem:[#allocation12 + $0x320] sm:$0xff] }
 0x306   :  { %1632 = vmatpush2.bf16.msra.mxu1 %v1335_v26  ;;  %1673 = vmatpush2.bf16.msra.mxu0 %v1463_v27  ;;  %v1265_v26 = vunpack.c.l.s8.bf16 %v1137_v7  ;;  %v1393_v27 = vunpack.c.l.s8.bf16 %v1201_v13  ;;  %v1458_v7 = vunpack.c.l.s8.bf16 %v1234_v9  ;;  %v1228_v13 = vld [vmem:[#allocation12 + $0x2f8] sm:$0xff] }
 0x307   :  { %1633 = vmatprep.subr.bf16.mxu1 %v1328_v28  ;;  %1674 = vmatprep.subr.bf16.mxu0 %v1456_v29  ;;  %v1386_v28 = vunpack.c.h.s8.bf16 %v1194_v24  ;;  %v1193_v29 = vld [vmem:[#allocation12 + $0x1e0] sm:$0xff] }
 0x30a   :  { %1634 = vmatpush2.bf16.msra.mxu1 %v1327_v33  ;;  %1675 = vmatpush2.bf16.msra.mxu0 %v1455_v34  ;;  %v1385_v33 = vunpack.c.h.s8.bf16 %v1193_v29  ;;  %v1513_v34 = vunpack.c.h.s8.bf16 %v1257_v31 }
 0x30b   :  { %1685 = vmatprep.subr.bf16.mxu1 %v1322_v35  ;;  %1726 = vmatprep.subr.bf16.mxu0 %v1450_v37  ;;  %v1378_v35 = vunpack.c.l.s8.bf16 %v1194_v24  ;;  %v1506_v37 = vunpack.c.l.s8.bf16 %v1258_v25  ;;  %v1452_v24 = vunpack.c.h.s8.bf16 %v1228_v13  ;;  %v1227_v25 = vld [vmem:[#allocation12 + $0x2f0] sm:$0xff] }
 0x30d   :  { %1636 = vmatmul.mubr.bf16.vlgmr.msra.gmra.mxu1 %v4595_v39  ;;  %1677 = vmatmul.mubr.bf16.vlgmr.msra.gmra.mxu0 %v4597_v51 }
 0x30e   :  { %1686 = vmatpush1.bf16.msra.mxu1 %v1321_v8  ;;  %1717 = vmatprep.mubr.bf16.mxu1 %v4591_v50  ;;  %v1377_v8 = vunpack.c.l.s8.bf16 %v1193_v29  ;;  %v1156_v29 = vld [vmem:[#allocation12 + $0xb8] sm:$0xff] }
 0x30f   :  { %1727 = vmatpush1.bf16.msra.mxu0 %v1449_v15  ;;  %1758 = vmatprep.mubr.bf16.mxu0 %v4593_v38  ;;  %v1505_v15 = vunpack.c.l.s8.bf16 %v1257_v31  ;;  %v1220_v31 = vld [vmem:[#allocation12 + $0x2b8] sm:$0xff] }
 0x310   :  { %1687 = vmatprep.subr.bf16.mxu1 %v1314_v40  ;;  %1728 = vmatprep.subr.bf16.mxu0 %v1442_v41  ;;  %v1370_v40 = vunpack.c.h.s8.bf16 %v1186_v2  ;;  %v1185_v41 = vld [vmem:[#allocation12 + $0x1a0] sm:$0xff] }
 0x312   :  { %1688 = vmatpush1.bf16.msra.mxu1 %v1313_v36  ;;  %v1369_v36 = vunpack.c.h.s8.bf16 %v1185_v41 }
 0x313   :  { %1729 = vmatpush1.bf16.msra.mxu0 %v1441_v44  ;;  %1689 = vmatprep.subr.bf16.mxu1 %v1306_v45  ;;  %v1497_v44 = vunpack.c.h.s8.bf16 %v1249_v43  ;;  %v1362_v45 = vunpack.c.l.s8.bf16 %v1186_v2  ;;  %v1436_v2 = vunpack.c.h.s8.bf16 %v1220_v31 }
 0x314   :  { %1730 = vmatprep.subr.bf16.mxu0 %v1434_v47  ;;  %v1178_v47 = vld [vmem:[#allocation12 + $0x168] sm:$0xff] }
 0x316   :  { %1690 = vmatpush1.bf16.msra.mxu1 %v1305_v49  ;;  %v1361_v49 = vunpack.c.l.s8.bf16 %v1185_v41  ;;  %v1428_v41 = vunpack.c.l.s8.bf16 %v1220_v31 }
 0x317   :  { %1731 = vmatpush1.bf16.msra.mxu0 %v1433_v46  ;;  %1691 = vmatprep.subr.bf16.mxu1 %v1298_v52  ;;  %v1489_v46 = vunpack.c.l.s8.bf16 %v1249_v43  ;;  %v1354_v52 = vunpack.c.h.s8.bf16 %v1178_v47 }
 0x318   :  { %1732 = vmatprep.subr.bf16.mxu0 %v1426_v53  ;;  %v1177_v53 = vld [vmem:[#allocation12 + $0x160] sm:$0xff] }
 0x31a   :  { %1692 = vmatpush1.bf16.msra.mxu1 %v1297_v56  ;;  %v1353_v56 = vunpack.c.h.s8.bf16 %v1177_v53 }
 0x31b   :  { %1733 = vmatpush1.bf16.msra.mxu0 %v1425_v57  ;;  %1693 = vmatprep.subr.bf16.mxu1 %v1290_v58  ;;  %v1481_v57 = vunpack.c.h.s8.bf16 %v1241_v55  ;;  %v1346_v58 = vunpack.c.l.s8.bf16 %v1178_v47 }
 0x31c   :  { %1734 = vmatprep.subr.bf16.mxu0 %v1418_v60  ;;  %v1170_v60 = vld [vmem:[#allocation12 + $0x128] sm:$0xff] }
 0x31e   :  { %1694 = vmatpush1.bf16.msra.mxu1 %v1289_v11  ;;  %v1345_v11 = vunpack.c.l.s8.bf16 %v1177_v53  ;;  %v1204_v53 = vld [vmem:[#allocation12 + $0x238] sm:$0xff] }
 0x31f   :  { %1735 = vmatpush1.bf16.msra.mxu0 %v1417_v61  ;;  %1695 = vmatprep.subr.bf16.mxu1 %v1282_v62  ;;  %v1473_v61 = vunpack.c.l.s8.bf16 %v1241_v55  ;;  %v1338_v62 = vunpack.c.h.s8.bf16 %v1170_v60 }
 0x320   :  { %1736 = vmatprep.subr.bf16.mxu0 %v1410_v63  ;;  %v1169_v63 = vld [vmem:[#allocation12 + $0x120] sm:$0xff] }
 0x322   :  { %1696 = vmatpush1.bf16.msra.mxu1 %v1281_v4  ;;  %v1337_v4 = vunpack.c.h.s8.bf16 %v1169_v63 }
 0x323   :  { %1737 = vmatpush1.bf16.msra.mxu0 %v1409_v5  ;;  %1697 = vmatprep.subr.bf16.mxu1 %v1274_v6  ;;  %v1465_v5 = vunpack.c.h.s8.bf16 %v1233_v3  ;;  %v1330_v6 = vunpack.c.l.s8.bf16 %v1170_v60 }
 0x324   :  { %1738 = vmatprep.subr.bf16.mxu0 %v1402_v12  ;;  %v1164_v12 = vld [vmem:[#allocation12 + $0xf8] sm:$0xff] }
 0x326   :  { %1698 = vmatpush1.bf16.msra.mxu1 %v1273_v17  ;;  %v1329_v17 = vunpack.c.l.s8.bf16 %v1169_v63  ;;  %v1260_v63 = vld [vmem:[#allocation12 + $0x3f8] sm:$0xff] }
 0x327   :  { %1739 = vmatpush1.bf16.msra.mxu0 %v1401_v18  ;;  %1699 = vmatprep.subr.bf16.mxu1 %v1266_v19  ;;  %v1457_v18 = vunpack.c.l.s8.bf16 %v1233_v3  ;;  %v1324_v19 = vunpack.c.h.s8.bf16 %v1164_v12 }
 0x328   :  { %1740 = vmatprep.subr.bf16.mxu0 %v1394_v22  ;;  %v1163_v22 = vld [vmem:[#allocation12 + $0xf0] sm:$0xff] }
 0x32a   :  { %1700 = vmatpush1.bf16.msra.mxu1 %v1265_v26  ;;  %v1323_v26 = vunpack.c.h.s8.bf16 %v1163_v22 }
 0x32b   :  { %1741 = vmatpush1.bf16.msra.mxu0 %v1393_v27  ;;  %1701 = vmatprep.subr.bf16.mxu1 %v1386_v28  ;;  %v1451_v27 = vunpack.c.h.s8.bf16 %v1227_v25  ;;  %v1316_v28 = vunpack.c.l.s8.bf16 %v1164_v12 }
 0x32c   :  { %1742 = vmatprep.subr.bf16.mxu0 %v1514_v30  ;;  %v1444_v30 = vunpack.c.l.s8.bf16 %v1228_v13 }
 0x32e   :  { %1702 = vmatpush2.bf16.msra.mxu1 %v1385_v33  ;;  %v1315_v33 = vunpack.c.l.s8.bf16 %v1163_v22  ;;  %v1252_v22 = vld [vmem:[#allocation12 + $0x3b8] sm:$0xff] }
 0x32f   :  { %1743 = vmatpush2.bf16.msra.mxu0 %v1513_v34  ;;  %1703 = vmatprep.subr.bf16.mxu1 %v1378_v35  ;;  %v1443_v34 = vunpack.c.l.s8.bf16 %v1227_v25  ;;  %v1308_v35 = vunpack.c.h.s8.bf16 %v1156_v29 }
 0x330   :  { %1744 = vmatprep.subr.bf16.mxu0 %v1506_v37  ;;  %v1155_v37 = vld [vmem:[#allocation12 + $0xb0] sm:$0xff] }
 0x331   :  { %v1299_v43 = vunpack.c.l.s8.bf16 %v1155_v37 }
 0x332   :  { %1704 = vmatpush2.bf16.msra.mxu1 %v1377_v8  ;;  %v1307_v8 = vunpack.c.h.s8.bf16 %v1155_v37  ;;  %v1244_v37 = vld [vmem:[#allocation12 + $0x378] sm:$0xff] }
 0x333   :  { %1745 = vmatpush2.bf16.msra.mxu0 %v1505_v15  ;;  %1705 = vmatprep.subr.bf16.mxu1 %v1370_v40  ;;  %v1435_v15 = vunpack.c.h.s8.bf16 %v1219_v1  ;;  %v1300_v40 = vunpack.c.l.s8.bf16 %v1156_v29  ;;  %v1251_v29 = vld [vmem:[#allocation12 + $0x3b0] sm:$0xff] }
 0x334   :  { %1746 = vmatprep.subr.bf16.mxu0 %v1498_v42  ;;  %v1148_v42 = vld [vmem:[#allocation12 + $0x78] sm:$0xff]  ;;  %v1499_v31 = vunpack.c.h.s8.bf16 %v1251_v29 }
 0x336   :  { %1706 = vmatpush2.bf16.msra.mxu1 %v1369_v36  ;;  %v1427_v36 = vunpack.c.l.s8.bf16 %v1219_v1  ;;  %v1491_v1 = vunpack.c.l.s8.bf16 %v1251_v29 }
 0x337   :  { %1747 = vmatpush2.bf16.msra.mxu0 %v1497_v44  ;;  %1707 = vmatprep.subr.bf16.mxu1 %v1362_v45  ;;  %v1147_v44 = vld [vmem:[#allocation12 + $0x70] sm:$0xff] }
 0x338   :  { %1748 = vmatprep.subr.bf16.mxu0 %v1490_v32  ;;  %v1211_v32 = vld [vmem:[#allocation12 + $0x270] sm:$0xff]  ;;  %v1291_v47 = vunpack.c.h.s8.bf16 %v1147_v44 }
 0x339   :  { %v1419_v48 = vunpack.c.h.s8.bf16 %v1211_v32  ;;  %v1411_v55 = vunpack.c.l.s8.bf16 %v1211_v32 }
 0x33a   :  { %1708 = vmatpush2.bf16.msra.mxu1 %v1361_v49  ;;  %v1284_v49 = vunpack.c.l.s8.bf16 %v1148_v42 }
 0x33b   :  { %1749 = vmatpush2.bf16.msra.mxu0 %v1489_v46  ;;  %1709 = vmatprep.subr.bf16.mxu1 %v1354_v52  ;;  %v1140_v52 = vld [vmem:[#allocation12 + $0x38] sm:$0xff] }
 0x33c   :  { %1750 = vmatprep.subr.bf16.mxu0 %v1482_v54  ;;  %v1283_v54 = vunpack.c.l.s8.bf16 %v1147_v44  ;;  %v1236_v44 = vld [vmem:[#allocation12 + $0x338] sm:$0xff] }
 0x33e   :  { %1710 = vmatpush2.bf16.msra.mxu1 %v1353_v56  ;;  %v1276_v56 = vunpack.c.h.s8.bf16 %v1140_v52 }
 0x33f   :  { %1751 = vmatpush2.bf16.msra.mxu0 %v1481_v57  ;;  %1711 = vmatprep.subr.bf16.mxu1 %v1346_v58  ;;  %v1139_v57 = vld [vmem:[#allocation12 + $0x30] sm:$0xff]  ;;  %v1404_v58 = vunpack.c.h.s8.bf16 %v1204_v53 }
 0x340   :  { %1752 = vmatprep.subr.bf16.mxu0 %v1474_v59  ;;  %v1203_v59 = vld [vmem:[#allocation12 + $0x230] sm:$0xff]  ;;  %v1275_v60 = vunpack.c.h.s8.bf16 %v1139_v57 }
 0x341   :  { %v1403_v9 = vunpack.c.h.s8.bf16 %v1203_v59  ;;  %v1395_v3 = vunpack.c.l.s8.bf16 %v1203_v59 }
 0x342   :  { %1712 = vmatpush2.bf16.msra.mxu1 %v1345_v11  ;;  %v1268_v11 = vunpack.c.l.s8.bf16 %v1140_v52 }
 0x343   :  { %1753 = vmatpush2.bf16.msra.mxu0 %v1473_v61  ;;  %1713 = vmatprep.subr.bf16.mxu1 %v1338_v62  ;;  %v1396_v61 = vunpack.c.l.s8.bf16 %v1204_v53  ;;  %v1196_v62 = vld [vmem:[#allocation12 + $0x1f8] sm:$0xff] }
 0x344   :  { %1754 = vmatprep.subr.bf16.mxu0 %v1466_v0  ;;  %v1267_v0 = vunpack.c.l.s8.bf16 %v1139_v57 }
 0x346   :  { %1714 = vmatpush2.bf16.msra.mxu1 %v1337_v4  ;;  %v1388_v4 = vunpack.c.h.s8.bf16 %v1196_v62 }
 0x347   :  { %1755 = vmatpush2.bf16.msra.mxu0 %v1465_v5  ;;  %1715 = vmatprep.subr.bf16.mxu1 %v1330_v6  ;;  %v1195_v5 = vld [vmem:[#allocation12 + $0x1f0] sm:$0xff]  ;;  %v1516_v6 = vunpack.c.h.s8.bf16 %v1260_v63 }
 0x348   :  { %1756 = vmatprep.subr.bf16.mxu0 %v1458_v7  ;;  %v1259_v7 = vld [vmem:[#allocation12 + $0x3f0] sm:$0xff]  ;;  %v1387_v12 = vunpack.c.h.s8.bf16 %v1195_v5 }
 0x349   :  { %v1515_v13 = vunpack.c.h.s8.bf16 %v1259_v7  ;;  %v1507_v25 = vunpack.c.l.s8.bf16 %v1259_v7 }
 0x34a   :  { %1716 = vmatpush2.bf16.msra.mxu1 %v1329_v17  ;;  %v1380_v17 = vunpack.c.l.s8.bf16 %v1196_v62 }
 0x34b   :  { %1757 = vmatpush2.bf16.msra.mxu0 %v1457_v18  ;;  %1767 = vmatprep.subr.bf16.mxu1 %v1324_v19  ;;  %v1508_v18 = vunpack.c.l.s8.bf16 %v1260_v63  ;;  %v1188_v19 = vld [vmem:[#allocation12 + $0x1b8] sm:$0xff] }
 0x34c   :  { %1808 = vmatprep.subr.bf16.mxu0 %v1452_v24  ;;  %v1379_v24 = vunpack.c.l.s8.bf16 %v1195_v5 }
 0x34d   :  { %1718 = vmatmul.mubr.bf16.vlgmr.msra.gmra.mxu1 %v4595_v39 }
 0x34e   :  { %1759 = vmatmul.mubr.bf16.vlgmr.msra.gmra.mxu0 %v4597_v51  ;;  %1768 = vmatpush1.bf16.msra.mxu1 %v1323_v26  ;;  %v1372_v26 = vunpack.c.h.s8.bf16 %v1188_v19 }
 0x34f   :  { %1799 = vmatprep.mubr.bf16.mxu1 %v4591_v50  ;;  %1809 = vmatpush1.bf16.msra.mxu0 %v1451_v27  ;;  %v1212_v50 = vld [vmem:[#allocation12 + $0x278] sm:$0xff]  ;;  %v1187_v27 = vld [vmem:[#allocation12 + $0x1b0] sm:$0xff] }
 0x350   :  { %1840 = vmatprep.mubr.bf16.mxu0 %v4593_v38  ;;  %1769 = vmatprep.subr.bf16.mxu1 %v1316_v28  ;;  %v1292_v38 = vunpack.c.h.s8.bf16 %v1148_v42  ;;  %v1420_v45 = vunpack.c.h.s8.bf16 %v1212_v50  ;;  %v1412_v46 = vunpack.c.l.s8.bf16 %v1212_v50  ;;  %v1500_v28 = vunpack.c.h.s8.bf16 %v1252_v22 }
 0x351   :  { %1810 = vmatprep.subr.bf16.mxu0 %v1444_v30  ;;  %v1371_v30 = vunpack.c.h.s8.bf16 %v1187_v27 }
 0x352   :  { %1770 = vmatpush1.bf16.msra.mxu1 %v1315_v33  ;;  %v1364_v33 = vunpack.c.l.s8.bf16 %v1188_v19  ;;  %v2365_v19 = vld [vmem:[#allocation13 + $0xb0] sm:$0xff] }
 0x353   :  { %1811 = vmatpush1.bf16.msra.mxu0 %v1443_v34  ;;  %1771 = vmatprep.subr.bf16.mxu1 %v1308_v35  ;;  %v1492_v34 = vunpack.c.l.s8.bf16 %v1252_v22  ;;  %v1180_v35 = vld [vmem:[#allocation12 + $0x178] sm:$0xff]  ;;  %v2421_v22 = vld [vmem:[#allocation13 + $0x270] sm:$0xff] }
 0x354   :  { %1812 = vmatprep.subr.bf16.mxu0 %v1436_v2  ;;  %v1363_v2 = vunpack.c.l.s8.bf16 %v1187_v27  ;;  %v2420_v27 = vld [vmem:[#allocation13 + $0x268] sm:$0xff] }
 0x355   :  { %v2728_v29 = vunpack.c.h.s8.bf16 %v2420_v27 }
 0x356   :  { %1772 = vmatpush1.bf16.msra.mxu1 %v1307_v8  ;;  %v1356_v8 = vunpack.c.h.s8.bf16 %v1180_v35 }
 0x357   :  { %1813 = vmatpush1.bf16.msra.mxu0 %v1435_v15  ;;  %1773 = vmatprep.subr.bf16.mxu1 %v1300_v40  ;;  %v1179_v15 = vld [vmem:[#allocation12 + $0x170] sm:$0xff]  ;;  %v1484_v40 = vunpack.c.h.s8.bf16 %v1244_v37 }
 0x358   :  { %1814 = vmatprep.subr.bf16.mxu0 %v1428_v41  ;;  %v1243_v41 = vld [vmem:[#allocation12 + $0x370] sm:$0xff]  ;;  %v1355_v42 = vunpack.c.h.s8.bf16 %v1179_v15 }
 0x359   :  { %v1483_v50 = vunpack.c.h.s8.bf16 %v1243_v41  ;;  %v1475_v32 = vunpack.c.l.s8.bf16 %v1243_v41 }
 0x35a   :  { %1774 = vmatpush1.bf16.msra.mxu1 %v1299_v43  ;;  %v1348_v43 = vunpack.c.l.s8.bf16 %v1180_v35  ;;  %v2358_v35 = vld [vmem:[#allocation13 + $0x78] sm:$0xff] }
 0x35b   :  { %1815 = vmatpush1.bf16.msra.mxu0 %v1427_v36  ;;  %1775 = vmatprep.subr.bf16.mxu1 %v1292_v38  ;;  %v1476_v36 = vunpack.c.l.s8.bf16 %v1244_v37  ;;  %v1172_v38 = vld [vmem:[#allocation12 + $0x138] sm:$0xff] }
 0x35c   :  { %1816 = vmatprep.subr.bf16.mxu0 %v1420_v45  ;;  %v1347_v45 = vunpack.c.l.s8.bf16 %v1179_v15  ;;  %v2414_v37 = vld [vmem:[#allocation13 + $0x238] sm:$0xff]  ;;  %v2413_v15 = vld [vmem:[#allocation13 + $0x230] sm:$0xff] }
 0x35d   :  { %v2714_v41 = vunpack.c.h.s8.bf16 %v2413_v15 }
 0x35e   :  { %1776 = vmatpush1.bf16.msra.mxu1 %v1291_v47  ;;  %v1340_v47 = vunpack.c.h.s8.bf16 %v1172_v38 }
 0x35f   :  { %1817 = vmatpush1.bf16.msra.mxu0 %v1419_v48  ;;  %1777 = vmatprep.subr.bf16.mxu1 %v1284_v49  ;;  %v1171_v48 = vld [vmem:[#allocation12 + $0x130] sm:$0xff]  ;;  %v1468_v49 = vunpack.c.h.s8.bf16 %v1236_v44 }
 0x360   :  { %1818 = vmatprep.subr.bf16.mxu0 %v1412_v46  ;;  %v1235_v46 = vld [vmem:[#allocation12 + $0x330] sm:$0xff]  ;;  %v1339_v52 = vunpack.c.h.s8.bf16 %v1171_v48 }
 0x361   :  { %v1467_v53 = vunpack.c.h.s8.bf16 %v1235_v46  ;;  %v1459_v57 = vunpack.c.l.s8.bf16 %v1235_v46 }
 0x362   :  { %1778 = vmatpush1.bf16.msra.mxu1 %v1283_v54  ;;  %v1332_v54 = vunpack.c.l.s8.bf16 %v1172_v38  ;;  %v2351_v38 = vld [vmem:[#allocation13 + $0x40] sm:$0xff] }
 0x363   :  { %1819 = vmatpush1.bf16.msra.mxu0 %v1411_v55  ;;  %1779 = vmatprep.subr.bf16.mxu1 %v1276_v56  ;;  %v1460_v55 = vunpack.c.l.s8.bf16 %v1236_v44  ;;  %v1331_v56 = vunpack.c.l.s8.bf16 %v1171_v48  ;;  %v2407_v44 = vld [vmem:[#allocation13 + $0x200] sm:$0xff]  ;;  %v2406_v48 = vld [vmem:[#allocation13 + $0x1f8] sm:$0xff] }
 0x364   :  { %1820 = vmatprep.subr.bf16.mxu0 %v1404_v58  ;;  %v2700_v46 = vunpack.c.h.s8.bf16 %v2406_v48 }
 0x366   :  { %1780 = vmatpush1.bf16.msra.mxu1 %v1275_v60 }
 0x367   :  { %1821 = vmatpush1.bf16.msra.mxu0 %v1403_v9  ;;  %1781 = vmatprep.subr.bf16.mxu1 %v1268_v11 }
 0x368   :  { %1822 = vmatprep.subr.bf16.mxu0 %v1396_v61 }
 0x36a   :  { %1782 = vmatpush1.bf16.msra.mxu1 %v1267_v0 }
 0x36b   :  { %1823 = vmatpush1.bf16.msra.mxu0 %v1395_v3  ;;  %1783 = vmatprep.subr.bf16.mxu1 %v1388_v4 }
 0x36c   :  { %1824 = vmatprep.subr.bf16.mxu0 %v1516_v6 }
 0x36e   :  { %1784 = vmatpush2.bf16.msra.mxu1 %v1387_v12 }
 0x36f   :  { %1825 = vmatpush2.bf16.msra.mxu0 %v1515_v13  ;;  %1785 = vmatprep.subr.bf16.mxu1 %v1380_v17 }
 0x370   :  { %1826 = vmatprep.subr.bf16.mxu0 %v1508_v18 }
 0x372   :  { %1786 = vmatpush2.bf16.msra.mxu1 %v1379_v24  ;;  %v2617_v24 = vunpack.c.h.s8.bf16 %v2365_v19 }
 0x373   :  { %1827 = vmatpush2.bf16.msra.mxu0 %v1507_v25  ;;  %1787 = vmatprep.subr.bf16.mxu1 %v1372_v26  ;;  %v2729_v25 = vunpack.c.h.s8.bf16 %v2421_v22  ;;  %v2364_v26 = vld [vmem:[#allocation13 + $0xa8] sm:$0xff] }
 0x374   :  { %1828 = vmatprep.subr.bf16.mxu0 %v1500_v28  ;;  %v2616_v28 = vunpack.c.h.s8.bf16 %v2364_v26 }
 0x376   :  { %1788 = vmatpush2.bf16.msra.mxu1 %v1371_v30  ;;  %v2610_v30 = vunpack.c.l.s8.bf16 %v2365_v19 }
 0x377   :  { %1829 = vmatpush2.bf16.msra.mxu0 %v1499_v31  ;;  %1789 = vmatprep.subr.bf16.mxu1 %v1364_v33  ;;  %v2722_v31 = vunpack.c.l.s8.bf16 %v2421_v22  ;;  %v2609_v33 = vunpack.c.l.s8.bf16 %v2364_v26 }
 0x378   :  { %1830 = vmatprep.subr.bf16.mxu0 %v1492_v34  ;;  %v2721_v34 = vunpack.c.l.s8.bf16 %v2420_v27 }
 0x37a   :  { %1790 = vmatpush2.bf16.msra.mxu1 %v1363_v2  ;;  %v2603_v2 = vunpack.c.h.s8.bf16 %v2358_v35 }
 0x37b   :  { %1831 = vmatpush2.bf16.msra.mxu0 %v1491_v1  ;;  %1791 = vmatprep.subr.bf16.mxu1 %v1356_v8  ;;  %v2715_v1 = vunpack.c.h.s8.bf16 %v2414_v37  ;;  %v2357_v8 = vld [vmem:[#allocation13 + $0x70] sm:$0xff] }
 0x37c   :  { %1832 = vmatprep.subr.bf16.mxu0 %v1484_v40  ;;  %v2602_v40 = vunpack.c.h.s8.bf16 %v2357_v8 }
 0x37e   :  { %1792 = vmatpush2.bf16.msra.mxu1 %v1355_v42  ;;  %v2596_v42 = vunpack.c.l.s8.bf16 %v2358_v35 }
 0x37f   :  { %1833 = vmatpush2.bf16.msra.mxu0 %v1483_v50  ;;  %1793 = vmatprep.subr.bf16.mxu1 %v1348_v43  ;;  %v2708_v50 = vunpack.c.l.s8.bf16 %v2414_v37  ;;  %v2595_v43 = vunpack.c.l.s8.bf16 %v2357_v8 }
 0x380   :  { %1834 = vmatprep.subr.bf16.mxu0 %v1476_v36  ;;  %v2707_v36 = vunpack.c.l.s8.bf16 %v2413_v15 }
 0x382   :  { %1794 = vmatpush2.bf16.msra.mxu1 %v1347_v45  ;;  %v2589_v45 = vunpack.c.h.s8.bf16 %v2351_v38 }
 0x383   :  { %1835 = vmatpush2.bf16.msra.mxu0 %v1475_v32  ;;  %1795 = vmatprep.subr.bf16.mxu1 %v1340_v47  ;;  %v2701_v32 = vunpack.c.h.s8.bf16 %v2407_v44  ;;  %v2350_v47 = vld [vmem:[#allocation13 + $0x38] sm:$0xff] }
 0x384   :  { %1836 = vmatprep.subr.bf16.mxu0 %v1468_v49  ;;  %v2588_v49 = vunpack.c.h.s8.bf16 %v2350_v47 }
 0x386   :  { %1796 = vmatpush2.bf16.msra.mxu1 %v1339_v52  ;;  %v2582_v52 = vunpack.c.l.s8.bf16 %v2351_v38 }
 0x387   :  { %1837 = vmatpush2.bf16.msra.mxu0 %v1467_v53  ;;  %1797 = vmatprep.subr.bf16.mxu1 %v1332_v54  ;;  %v2694_v53 = vunpack.c.l.s8.bf16 %v2407_v44  ;;  %v2581_v54 = vunpack.c.l.s8.bf16 %v2350_v47  ;;  %v2379_v47 = vld [vmem:[#allocation13 + $0x120] sm:$0xff] }
 0x388   :  { %1838 = vmatprep.subr.bf16.mxu0 %v1460_v55  ;;  %v2693_v55 = vunpack.c.l.s8.bf16 %v2406_v48  ;;  %v2435_v48 = vld [vmem:[#allocation13 + $0x2e0] sm:$0xff] }
 0x38a   :  { %1798 = vmatpush2.bf16.msra.mxu1 %v1331_v56  ;;  %v2344_v56 = vld [vmem:[#allocation13 + $0x8] sm:$0xff] }
 0x38b   :  { %1839 = vmatpush2.bf16.msra.mxu0 %v1459_v57  ;;  %3023 = vmatprep.subr.bf16.mxu1 %v2617_v24  ;;  %v2400_v57 = vld [vmem:[#allocation13 + $0x1c8] sm:$0xff] }
 0x38c   :  { %3064 = vmatprep.subr.bf16.mxu0 %v2729_v25 }
 0x38d   :  { %1800 = vmatmul.mubr.bf16.vlgmr.msra.gmra.mxu1 %v4595_v39  ;;  %v1555_v58 = vpop.f32.mrf.mxu1  ;;  %v1596_v59 = vpop.f32.mrf.mxu0 }
 0x38e   :  { %1841 = vmatmul.mubr.bf16.vlgmr.msra.gmra.mxu0 %v4597_v51  ;;  %v4617_v60 = vadd.f32 %v1596_v59, %v1555_v58  ;;  %3024 = vmatpush1.bf16.msra.mxu1 %v2616_v28  ;;  %v2575_v58 = vunpack.c.h.s8.bf16 %v2344_v56  ;;  %v2687_v59 = vunpack.c.h.s8.bf16 %v2400_v57 }
 0x38f   :  { %v1557_v9 = vpop.f32.mrf.mxu1  ;;  %v1598_v11 = vpop.f32.mrf.mxu0  ;;  %3065 = vmatpush1.bf16.msra.mxu0 %v2728_v29  ;;  %3025 = vmatprep.subr.bf16.mxu1 %v2610_v30 }
 0x390   :  { %v4619_v61 = vadd.f32 %v1598_v11, %v1557_v9  ;;  %3066 = vmatprep.subr.bf16.mxu0 %v2722_v31  ;;  %v2343_v9 = vld [vmem:[#allocation13] sm:$0xff] }
 0x391   :  { %v1559_v62 = vpop.f32.mrf.mxu1  ;;  %v1600_v63 = vpop.f32.mrf.mxu0  ;;  %v2399_v11 = vld [vmem:[#allocation13 + $0x1c0] sm:$0xff] }
 0x392   :  { %3026 = vmatpush1.bf16.msra.mxu1 %v2609_v33  ;;  %v2574_v62 = vunpack.c.h.s8.bf16 %v2343_v9  ;;  %v2686_v63 = vunpack.c.h.s8.bf16 %v2399_v11 }
 0x393   :  { %v1560_v0 = vpop.f32.mrf.mxu1  ;;  %v1601_v3 = vpop.f32.mrf.mxu0  ;;  %3067 = vmatpush1.bf16.msra.mxu0 %v2721_v34  ;;  %3027 = vmatprep.subr.bf16.mxu1 %v2603_v2  ;;  %v2386_v2 = vld [vmem:[#allocation13 + $0x158] sm:$0xff] }
 0x394   :  { %3068 = vmatprep.subr.bf16.mxu0 %v2715_v1  ;;  %v2568_v0 = vunpack.c.l.s8.bf16 %v2344_v56  ;;  %v2680_v3 = vunpack.c.l.s8.bf16 %v2400_v57  ;;  %v2442_v1 = vld [vmem:[#allocation13 + $0x318] sm:$0xff]  ;;  %v2659_v15 = vunpack.c.h.s8.bf16 %v2386_v2  ;;  %v2652_v38 = vunpack.c.l.s8.bf16 %v2386_v2 }
 0x395   :  { %v2764_v44 = vunpack.c.l.s8.bf16 %v2442_v1 }
 0x396   :  { %3028 = vmatpush1.bf16.msra.mxu1 %v2602_v40  ;;  %v2771_v40 = vunpack.c.h.s8.bf16 %v2442_v1 }
 0x397   :  { %3069 = vmatpush1.bf16.msra.mxu0 %v2714_v41  ;;  %3029 = vmatprep.subr.bf16.mxu1 %v2596_v42  ;;  %v2385_v41 = vld [vmem:[#allocation13 + $0x150] sm:$0xff] }
 0x398   :  { %3070 = vmatprep.subr.bf16.mxu0 %v2708_v50  ;;  %v2441_v42 = vld [vmem:[#allocation13 + $0x310] sm:$0xff] }
 0x39a   :  { %3030 = vmatpush1.bf16.msra.mxu1 %v2595_v43  ;;  %v2658_v43 = vunpack.c.h.s8.bf16 %v2385_v41 }
 0x39b   :  { %3071 = vmatpush1.bf16.msra.mxu0 %v2707_v36  ;;  %3031 = vmatprep.subr.bf16.mxu1 %v2589_v45  ;;  %v2770_v36 = vunpack.c.h.s8.bf16 %v2441_v42  ;;  %v2651_v45 = vunpack.c.l.s8.bf16 %v2385_v41 }
 0x39c   :  { %3072 = vmatprep.subr.bf16.mxu0 %v2701_v32  ;;  %v2763_v32 = vunpack.c.l.s8.bf16 %v2441_v42 }
 0x39e   :  { %3032 = vmatpush1.bf16.msra.mxu1 %v2588_v49  ;;  %v2645_v49 = vunpack.c.h.s8.bf16 %v2379_v47 }
 0x39f   :  { %3073 = vmatpush1.bf16.msra.mxu0 %v2700_v46  ;;  %3033 = vmatprep.subr.bf16.mxu1 %v2582_v52  ;;  %v2757_v46 = vunpack.c.h.s8.bf16 %v2435_v48  ;;  %v2378_v52 = vld [vmem:[#allocation13 + $0x118] sm:$0xff] }
 0x3a0   :  { %3074 = vmatprep.subr.bf16.mxu0 %v2694_v53  ;;  %v2434_v53 = vld [vmem:[#allocation13 + $0x2d8] sm:$0xff] }
 0x3a1   :  { %v2756_v56 = vunpack.c.h.s8.bf16 %v2434_v53 }
 0x3a2   :  { %3034 = vmatpush1.bf16.msra.mxu1 %v2581_v54  ;;  %v4632_v54 = vld [vmem:[%s4954_s10] sm:$0xff] }
 0x3a3   :  { %3075 = vmatpush1.bf16.msra.mxu0 %v2693_v55  ;;  %3035 = vmatprep.subr.bf16.mxu1 %v2575_v58  ;;  %v2644_v55 = vunpack.c.h.s8.bf16 %v2378_v52  ;;  %v1866_v57 = vrot.slane %v4632_v54, %v4529_v16  ;;  %v4637_v58 = vsub.s32 5, %v4492_v20 }
 0x3a4   :  { %3076 = vmatprep.subr.bf16.mxu0 %v2687_v59  ;;  %v1858_v59 = vrot.slane %v4632_v54, %v4498_v23 }
 0x3a6   :  { %3036 = vmatpush1.bf16.msra.mxu1 %v2574_v62  ;;  %v4649_v62 = vsub.s32 4, %v4492_v20 }
 0x3a7   :  { %3077 = vmatpush1.bf16.msra.mxu0 %v2686_v63  ;;  %3037 = vmatprep.subr.bf16.mxu1 %v2568_v0  ;;  %v2638_v63 = vunpack.c.l.s8.bf16 %v2379_v47  ;;  %v2750_v0 = vunpack.c.l.s8.bf16 %v2435_v48 }
 0x3a8   :  { %3078 = vmatprep.subr.bf16.mxu0 %v2680_v3  ;;  %v1854_v3 = vrot.slane %v4632_v54, %v4495_v21 }
 0x3cd   :  { %v1637_v4 = vpop.f32.mrf.mxu1  ;;  %v1678_v5 = vpop.f32.mrf.mxu0 }
 0x3ce   :  { %v4621_v6 = vadd.f32 %v1678_v5, %v1637_v4  ;;  %v2567_v4 = vunpack.c.l.s8.bf16 %v2343_v9  ;;  %v2679_v5 = vunpack.c.l.s8.bf16 %v2399_v11  ;;  %v4644_v9 = vld [vmem:[%s4955_s11] sm:$0xff]  ;;  %v1862_v11 = vrot.slane %v4632_v54, %v4526_v14 }
 0x3cf   :  { %v1639_v7 = vpop.f32.mrf.mxu1  ;;  %v1680_v39 = vpop.f32.mrf.mxu0 }
 0x3d0   :  { %v4623_v12 = vadd.f32 %v1680_v39, %v1639_v7  ;;  %3038 = vmatpush1.bf16.msra.mxu1 %v2567_v4  ;;  %3079 = vmatpush1.bf16.msra.mxu0 %v2679_v5  ;;  %v2393_v7 = vld [vmem:[#allocation13 + $0x190] sm:$0xff]  ;;  %v1916_v4 = vrot.slane %v4644_v9, %v4529_v16  ;;  %v2637_v5 = vunpack.c.l.s8.bf16 %v2378_v52 }
 0x3d1   :  { %v1641_v13 = vpop.f32.mrf.mxu1  ;;  %v1682_v51 = vpop.f32.mrf.mxu0  ;;  %v2449_v39 = vld [vmem:[#allocation13 + $0x350] sm:$0xff]  ;;  %v2666_v28 = vunpack.c.l.s8.bf16 %v2393_v7 }
 0x3d2   :  { %v2673_v13 = vunpack.c.h.s8.bf16 %v2393_v7  ;;  %v2785_v51 = vunpack.c.h.s8.bf16 %v2449_v39  ;;  %v2778_v29 = vunpack.c.l.s8.bf16 %v2449_v39  ;;  %v2749_v7 = vunpack.c.l.s8.bf16 %v2434_v53  ;;  %v2372_v39 = vld [vmem:[#allocation13 + $0xe8] sm:$0xff] }
 0x3d3   :  { %v1642_v17 = vpop.f32.mrf.mxu1  ;;  %v1683_v18 = vpop.f32.mrf.mxu0 }
 0x3d4   :  { %v2392_v17 = vld [vmem:[#allocation13 + $0x188] sm:$0xff]  ;;  %3039 = vmatprep.subr.bf16.mxu1 %v2673_v13  ;;  %3080 = vmatprep.subr.bf16.mxu0 %v2785_v51  ;;  %v2371_v51 = vld [vmem:[#allocation13 + $0xe0] sm:$0xff] }
 0x3d5   :  { %v2448_v18 = vld [vmem:[#allocation13 + $0x348] sm:$0xff]  ;;  %v2672_v19 = vunpack.c.h.s8.bf16 %v2392_v17  ;;  %v2665_v31 = vunpack.c.l.s8.bf16 %v2392_v17  ;;  %v1894_v17 = vmul.f32 %v1866_v57, %v4623_v12  ;;  %v1893_v12 = vmul.f32 %v1862_v11, %v4621_v6 }
 0x3d6   :  { %v2784_v22 = vunpack.c.h.s8.bf16 %v2448_v18  ;;  %v2777_v33 = vunpack.c.l.s8.bf16 %v2448_v18  ;;  %v2428_v13 = vld [vmem:[#allocation13 + $0x2a8] sm:$0xff]  ;;  %v1874_v18 = vrot.slane %v4632_v54, %v4637_v58  ;;  %v1924_v6 = vrot.slane %v4644_v9, %v4637_v58 }
 0x3d7   :  { %3040 = vmatpush2.bf16.msra.mxu1 %v2672_v19  ;;  %v2631_v19 = vunpack.c.h.s8.bf16 %v2372_v39  ;;  %v1944_v2 = vadd.f32 %v1916_v4, %v1894_v17 }
 0x3d8   :  { %3081 = vmatpush2.bf16.msra.mxu0 %v2784_v22  ;;  %3041 = vmatprep.subr.bf16.mxu1 %v2666_v28  ;;  %v2743_v22 = vunpack.c.h.s8.bf16 %v2428_v13  ;;  %v1912_v28 = vrot.slane %v4644_v9, %v4526_v14 }
 0x3d9   :  { %3082 = vmatprep.subr.bf16.mxu0 %v2778_v29  ;;  %v2630_v29 = vunpack.c.h.s8.bf16 %v2371_v51  ;;  %vm1952_vm6 = vcmp.ge.f32.partialorder %v1944_v2, 0.0 }
 0x3db   :  { %3042 = vmatpush2.bf16.msra.mxu1 %v2665_v31 }
 0x3dc   :  { %3083 = vmatpush2.bf16.msra.mxu0 %v2777_v33  ;;  %3043 = vmatprep.subr.bf16.mxu1 %v2659_v15  ;;  %v2624_v33 = vunpack.c.l.s8.bf16 %v2372_v39  ;;  %v2623_v15 = vunpack.c.l.s8.bf16 %v2371_v51 }
 0x3dd   :  { %3084 = vmatprep.subr.bf16.mxu0 %v2771_v40  ;;  %v1943_v40 = vadd.f32 %v1912_v28, %v1893_v12 }
 0x3df   :  { %3044 = vmatpush2.bf16.msra.mxu1 %v2658_v43  ;;  %v1960_v43 = vmul.f32 0.01, %v1944_v2  ;;  %vm1951_vm8 = vcmp.ge.f32.partialorder %v1943_v40, 0.0 }
 0x3e0   :  { %3085 = vmatpush2.bf16.msra.mxu0 %v2770_v36  ;;  %3045 = vmatprep.subr.bf16.mxu1 %v2652_v38  ;;  %v1959_v38 = vmul.f32 0.01, %v1943_v40 }
 0x3e1   :  { %3086 = vmatprep.subr.bf16.mxu0 %v2764_v44 }
 0x3e2   :  { %v4685_v53 = vsel %vm1951_vm8, %v1943_v40, %v1959_v38 }
 0x3e3   :  { %3046 = vmatpush2.bf16.msra.mxu1 %v2651_v45  ;;  %v4675_v45 = vld [vmem:[#allocation13 + $0x430] sm:$0xff] }
 0x3e4   :  { %3087 = vmatpush2.bf16.msra.mxu0 %v2763_v32  ;;  %3047 = vmatprep.subr.bf16.mxu1 %v2645_v49  ;;  %v2841_v47 = vunpack.c.h.s8.bf16 %v4675_v45  ;;  %v4681_v49 = vsel %vm1952_vm6, %v1944_v2, %v1960_v43 }
 0x3e5   :  { %3088 = vmatprep.subr.bf16.mxu0 %v2757_v46  ;;  %v1991_v57 = vrot.slane %v4681_v49, 4 }
 0x3e7   :  { %3048 = vmatpush2.bf16.msra.mxu1 %v2644_v55  ;;  %v1992_v4 = vadd.f32 %v1991_v57, %v4681_v49 }
 0x3e8   :  { %3089 = vmatpush2.bf16.msra.mxu0 %v2756_v56  ;;  %3049 = vmatprep.subr.bf16.mxu1 %v2638_v63  ;;  %v1985_v63 = vrot.slane %v4685_v53, 4 }
 0x3e9   :  { %3090 = vmatprep.subr.bf16.mxu0 %v2750_v0  ;;  %v1993_v17 = vrot.slane %v1992_v4, 2 }
 0x3ea   :  { %v1986_v39 = vadd.f32 %v1985_v63, %v4685_v53 }
 0x3eb   :  { %3050 = vmatpush2.bf16.msra.mxu1 %v2637_v5 }
 0x3ec   :  { %3091 = vmatpush2.bf16.msra.mxu0 %v2749_v7  ;;  %3051 = vmatprep.subr.bf16.mxu1 %v2631_v19 }
 0x3ed   :  { %3092 = vmatprep.subr.bf16.mxu0 %v2743_v22  ;;  %v1987_v22 = vrot.slane %v1986_v39, 2 }
 0x3ef   :  { %3052 = vmatpush2.bf16.msra.mxu1 %v2630_v29  ;;  %v1988_v12 = vadd.f32 %v1987_v22, %v1986_v39 }
 0x3f0   :  { %3053 = vmatprep.subr.bf16.mxu1 %v2624_v33 }
 0x3f3   :  { %3054 = vmatpush2.bf16.msra.mxu1 %v2623_v15 }
 0x3f4   :  { %3105 = vmatprep.subr.bf16.mxu1 %v2841_v47 }
 0x40d   :  { %v1719_v24 = vpop.f32.mrf.mxu1 }
 0x40e   :  { %v1760_v25 = vpop.f32.mrf.mxu0 }
 0x40f   :  { %v4625_v26 = vadd.f32 %v1760_v25, %v1719_v24  ;;  %v1721_v27 = vpop.f32.mrf.mxu1  ;;  %v2427_v24 = vld [vmem:[#allocation13 + $0x2a0] sm:$0xff]  ;;  %v1892_v25 = vmul.f32 %v1858_v59, %v4619_v61  ;;  %v1904_v61 = vrot.slane %v4644_v9, %v4495_v21 }
 0x410   :  { %v1762_v30 = vpop.f32.mrf.mxu0  ;;  %v2742_v31 = vunpack.c.h.s8.bf16 %v2427_v24  ;;  %v2735_v42 = vunpack.c.l.s8.bf16 %v2427_v24 }
 0x411   :  { %v4627_v34 = vadd.f32 %v1762_v30, %v1721_v27  ;;  %v1723_v35 = vpop.f32.mrf.mxu1  ;;  %v1908_v27 = vrot.slane %v4644_v9, %v4498_v23  ;;  %v1870_v30 = vrot.slane %v4632_v54, %v4649_v62 }
 0x412   :  { %v1764_v37 = vpop.f32.mrf.mxu0  ;;  %v1891_v35 = vmul.f32 %v1854_v3, %v4617_v60  ;;  %v1920_v60 = vrot.slane %v4644_v9, %v4649_v62  ;;  %3093 = vmatpush2.bf16.msra.mxu0 %v2742_v31 }
 0x413   :  { %v1724_v8 = vpop.f32.mrf.mxu1  ;;  %v2736_v37 = vunpack.c.l.s8.bf16 %v2428_v13  ;;  %v1896_v1 = vmul.f32 %v1874_v18, %v4627_v34  ;;  %v1895_v41 = vmul.f32 %v1870_v30, %v4625_v26  ;;  %v4677_v26 = vld [vmem:[#allocation13 + $0x5f0] sm:$0xff] }
 0x414   :  { %v1765_v50 = vpop.f32.mrf.mxu0  ;;  %v1942_v8 = vadd.f32 %v1908_v27, %v1892_v25  ;;  %v2953_v48 = vunpack.c.h.s8.bf16 %v4677_v26  ;;  %v1994_v27 = vadd.f32 %v1993_v17, %v1992_v4 }
 0x415   :  { %v1941_v50 = vadd.f32 %v1904_v61, %v1891_v35  ;;  %3094 = vmatprep.subr.bf16.mxu0 %v2736_v37  ;;  %v1946_v36 = vadd.f32 %v1924_v6, %v1896_v1  ;;  %v1945_v44 = vadd.f32 %v1920_v60, %v1895_v41  ;;  %v1989_v37 = vrot.slane %v1988_v12, 1 }
 0x416   :  { %v1958_v34 = vmul.f32 0.01, %v1942_v8  ;;  %vm1950_vm7 = vcmp.ge.f32.partialorder %v1942_v8, 0.0  ;;  %3095 = vmatpush2.bf16.msra.mxu0 %v2735_v42  ;;  %v1995_v33 = vrot.slane %v1994_v27, 1 }
 0x417   :  { %v1957_v32 = vmul.f32 0.01, %v1941_v50  ;;  %vm1949_vm9 = vcmp.ge.f32.partialorder %v1941_v50, 0.0  ;;  %v1962_v46 = vmul.f32 0.01, %v1946_v36  ;;  %vm1954_vm10 = vcmp.ge.f32.partialorder %v1946_v36, 0.0  ;;  %3146 = vmatprep.subr.bf16.mxu0 %v2953_v48 }
 0x418   :  { %v4683_v52 = vsel %vm1950_vm7, %v1942_v8, %v1958_v34  ;;  %v1961_v55 = vmul.f32 0.01, %v1945_v44  ;;  %vm1953_vm11 = vcmp.ge.f32.partialorder %v1945_v44, 0.0  ;;  %v1996_v6 = vadd.f32 %v1995_v33, %v1994_v27 }
 0x419   :  { %v4687_v56 = vsel %vm1949_vm9, %v1941_v50, %v1957_v32  ;;  %v1979_v59 = vrot.slane %v4683_v52, 4  ;;  %v4691_v11 = vsel %vm1954_vm10, %v1946_v36, %v1962_v46  ;;  %v1990_v40 = vadd.f32 %v1989_v37, %v1988_v12 }
 0x41a   :  { %v1973_v0 = vrot.slane %v4687_v56, 4  ;;  %v4695_v3 = vsel %vm1953_vm11, %v1945_v44, %v1961_v55  ;;  %v2003_v5 = vrot.slane %v4691_v11, 4  ;;  %v4705_v42 = vmul.f32 0.125, %v1996_v6 }
 0x41b   :  { %v1980_v7 = vadd.f32 %v1979_v59, %v4683_v52  ;;  %v1997_v13 = vrot.slane %v4695_v3, 4  ;;  %v4710_v36 = vsub.s32 6, %v4492_v20  ;;  %v4712_v34 = vmul.f32 0.125, %v1990_v40 }
 0x41c   :  { %v1974_v51 = vadd.f32 %v1973_v0, %v4687_v56  ;;  %v2004_v18 = vadd.f32 %v2003_v5, %v4691_v11  ;;  %v4717_v32 = vsub.s32 7, %v4492_v20  ;;  %v2032_v47 = vsub.f32 %v4681_v49, %v4705_v42 }
 0x41d   :  { %v1981_v19 = vrot.slane %v1980_v7, 2  ;;  %v1998_v24 = vadd.f32 %v1997_v13, %v4695_v3  ;;  %v1878_v57 = vrot.slane %v4632_v54, %v4710_v36  ;;  %v2031_v59 = vsub.f32 %v4685_v53, %v4712_v34 }
 0x41e   :  { %v1975_v25 = vrot.slane %v1974_v51, 2  ;;  %v2005_v28 = vrot.slane %v2004_v18, 2  ;;  %v1928_v5 = vrot.slane %v4644_v9, %v4710_v36  ;;  %v1882_v39 = vrot.slane %v4632_v54, %v4717_v32 }
 0x41f   :  { %v1982_v29 = vadd.f32 %v1981_v19, %v1980_v7  ;;  %v1999_v30 = vrot.slane %v1998_v24, 2  ;;  %v2040_v13 = vmul.f32 %v2032_v47, %v2032_v47  ;;  %v2039_v27 = vmul.f32 %v2031_v59, %v2031_v59 }
 0x420   :  { %v1976_v31 = vadd.f32 %v1975_v25, %v1974_v51  ;;  %v2006_v35 = vadd.f32 %v2005_v28, %v2004_v18 }
 0x421   :  { %v1983_v61 = vrot.slane %v1982_v29, 1  ;;  %v2000_v2 = vadd.f32 %v1999_v30, %v1998_v24  ;;  %v1932_v24 = vrot.slane %v4644_v9, %v4717_v32  ;;  %v2063_v33 = vrot.slane %v2040_v13, 4 }
 0x422   :  { %v1977_v1 = vrot.slane %v1976_v31, 1  ;;  %v2007_v8 = vrot.slane %v2006_v35, 1  ;;  %v2057_v6 = vrot.slane %v2039_v27, 4 }
 0x423   :  { %v1984_v15 = vadd.f32 %v1983_v61, %v1982_v29  ;;  %v2001_v41 = vrot.slane %v2000_v2, 1 }
 0x424   :  { %v1978_v60 = vadd.f32 %v1977_v1, %v1976_v31  ;;  %v2008_v50 = vadd.f32 %v2007_v8, %v2006_v35 }
 0x425   :  { %v4707_v43 = vmul.f32 0.125, %v1984_v15  ;;  %v2002_v38 = vadd.f32 %v2001_v41, %v2000_v2  ;;  %v2064_v41 = vadd.f32 %v2063_v33, %v2040_v13 }
 0x426   :  { %v4714_v44 = vmul.f32 0.125, %v1978_v60  ;;  %v4721_v48 = vmul.f32 0.125, %v2008_v50 }
 0x427   :  { %v2030_v46 = vsub.f32 %v4683_v52, %v4707_v43  ;;  %v4729_v63 = vmul.f32 0.125, %v2002_v38 }
 0x428   :  { %v2029_v20 = vsub.f32 %v4687_v56, %v4714_v44  ;;  %v2034_v51 = vsub.f32 %v4691_v11, %v4721_v48 }
 0x429   :  { %v2038_v18 = vmul.f32 %v2030_v46, %v2030_v46  ;;  %v2033_v28 = vsub.f32 %v4695_v3, %v4729_v63  ;;  %v2058_v46 = vadd.f32 %v2057_v6, %v2039_v27 }
 0x42a   :  { %v2037_v12 = vmul.f32 %v2029_v20, %v2029_v20  ;;  %v2042_v35 = vmul.f32 %v2034_v51, %v2034_v51  ;;  %v2065_v20 = vrot.slane %v2064_v41, 2 }
 0x42b   :  { %v2051_v37 = vrot.slane %v2038_v18, 4  ;;  %v2041_v8 = vmul.f32 %v2033_v28, %v2033_v28  ;;  %v2059_v13 = vrot.slane %v2058_v46, 2 }
 0x42c   :  { %v2045_v9 = vrot.slane %v2037_v12, 4  ;;  %v2075_v60 = vrot.slane %v2042_v35, 4 }
 0x42d   :  { %v2052_v38 = vadd.f32 %v2051_v37, %v2038_v18 }
 0x44d   :  { %v1801_v55 = vpop.f32.mrf.mxu1 }
 0x44e   :  { %v1842_v0 = vpop.f32.mrf.mxu0 }
 0x44f   :  { %v1843_v4 = vadd.f32 %v1842_v0, %v1801_v55  ;;  %v1803_v7 = vpop.f32.mrf.mxu1  ;;  %v2069_v55 = vrot.slane %v2041_v8, 4  ;;  %v2046_v0 = vadd.f32 %v2045_v9, %v2037_v12 }
 0x450   :  { %v1844_v17 = vpop.f32.mrf.mxu0 }
 0x451   :  { %v1897_v19 = vmul.f32 %v1878_v57, %v1843_v4  ;;  %v1845_v22 = vadd.f32 %v1844_v17, %v1803_v7  ;;  %v1805_v25 = vpop.f32.mrf.mxu1  ;;  %v2076_v4 = vadd.f32 %v2075_v60, %v2042_v35  ;;  %v2070_v51 = vadd.f32 %v2069_v55, %v2041_v8 }
 0x452   :  { %v1846_v29 = vpop.f32.mrf.mxu0  ;;  %v2047_v18 = vrot.slane %v2046_v0, 2 }
 0x453   :  { %v1947_v30 = vadd.f32 %v1928_v5, %v1897_v19  ;;  %v1898_v54 = vmul.f32 %v1882_v39, %v1845_v22  ;;  %v1806_v31 = vpop.f32.mrf.mxu1  ;;  %v2053_v39 = vrot.slane %v2052_v38, 2  ;;  %v2066_v22 = vadd.f32 %v2065_v20, %v2064_v41 }
 0x454   :  { %v1847_v61 = vpop.f32.mrf.mxu0  ;;  %v2060_v29 = vadd.f32 %v2059_v13, %v2058_v46  ;;  %v2048_v31 = vadd.f32 %v2047_v18, %v2046_v0 }
 0x455   :  { %vm1955_vm12 = vcmp.ge.f32.partialorder %v1947_v30, 0.0  ;;  %v1963_v2 = vmul.f32 0.01, %v1947_v30  ;;  %v1948_v1 = vadd.f32 %v1932_v24, %v1898_v54  ;;  %v2077_v24 = vrot.slane %v2076_v4, 2 }
 0x456   :  { %v2054_v28 = vadd.f32 %v2053_v39, %v2052_v38  ;;  %v2067_v33 = vrot.slane %v2066_v22, 1 }
 0x457   :  { %v4743_v15 = vsel %vm1955_vm12, %v1947_v30, %v1963_v2  ;;  %vm1956_vm13 = vcmp.ge.f32.partialorder %v1948_v1, 0.0  ;;  %v1964_v40 = vmul.f32 0.01, %v1948_v1  ;;  %v2071_v30 = vrot.slane %v2070_v51, 2 }
 0x458   :  { %v2009_v50 = vrot.slane %v4743_v15, 4  ;;  %v2078_v35 = vadd.f32 %v2077_v24, %v2076_v4  ;;  %v2055_v2 = vrot.slane %v2054_v28, 1  ;;  %v2068_v41 = vadd.f32 %v2067_v33, %v2066_v22 }
 0x459   :  { %v4746_v47 = vsel %vm1956_vm13, %v1948_v1, %v1964_v40  ;;  %v2061_v1 = vrot.slane %v2060_v29, 1  ;;  %v2072_v6 = vadd.f32 %v2071_v30, %v2070_v51  ;;  %v2049_v40 = vrot.slane %v2048_v31, 1 }
 0x45a   :  { %v2010_v57 = vadd.f32 %v2009_v50, %v4743_v15  ;;  %v2015_v59 = vrot.slane %v4746_v47, 4  ;;  %v2079_v60 = vrot.slane %v2078_v35, 1  ;;  %v2056_v46 = vadd.f32 %v2055_v2, %v2054_v28 }
 0x45b   :  { %v2062_v55 = vadd.f32 %v2061_v1, %v2060_v29  ;;  %v2050_v20 = vadd.f32 %v2049_v40, %v2048_v31  ;;  %v2096_v4 = vmul.f32 0.125, %v2068_v41 }
 0x45c   :  { %v2011_v5 = vrot.slane %v2010_v57, 2  ;;  %v2016_v7 = vadd.f32 %v2015_v59, %v4746_v47  ;;  %v2094_v13 = vmul.f32 0.125, %v2056_v46 }
 0x45d   :  { %v2095_v51 = vmul.f32 0.125, %v2062_v55  ;;  %v2093_v22 = vmul.f32 0.125, %v2050_v20  ;;  %v2105_v24 = vadd.f32 1e-05, %v2096_v4 }
 0x45e   :  { %v2012_v17 = vadd.f32 %v2011_v5, %v2010_v57  ;;  %v2017_v19 = vrot.slane %v2016_v7, 2  ;;  %v2073_v57 = vrot.slane %v2072_v6, 1  ;;  %v2080_v5 = vadd.f32 %v2079_v60, %v2078_v35 }
 0x45f   :  { %v2103_v28 = vadd.f32 1e-05, %v2094_v13  ;;  %v2104_v29 = vadd.f32 1e-05, %v2095_v51  ;;  %v2102_v31 = vadd.f32 1e-05, %v2093_v22  ;;  %4107 = vrsqrt.f32 %v2105_v24 }
 0x460   :  { %v2013_v25 = vrot.slane %v2012_v17, 1  ;;  %v2018_v27 = vadd.f32 %v2017_v19, %v2016_v7 }
 0x461   :  { %4109 = vrsqrt.f32 %v2103_v28 }
 0x462   :  { %v2014_v54 = vadd.f32 %v2013_v25, %v2012_v17  ;;  %v2019_v12 = vrot.slane %v2018_v27, 1  ;;  %v2074_v17 = vadd.f32 %v2073_v57, %v2072_v6  ;;  %v2098_v25 = vmul.f32 0.125, %v2080_v5 }
 0x463   :  { %4111 = vrsqrt.f32 %v2104_v29 }
 0x464   :  { %v4751_v61 = vmul.f32 0.125, %v2014_v54  ;;  %v2020_v37 = vadd.f32 %v2019_v12, %v2018_v27  ;;  %v2097_v54 = vmul.f32 0.125, %v2074_v17  ;;  %v2107_v35 = vadd.f32 1e-05, %v2098_v25 }
 0x465   :  { %4113 = vrsqrt.f32 %v2102_v31 }
 0x466   :  { %v2035_v8 = vsub.f32 %v4743_v15, %v4751_v61  ;;  %v4755_v9 = vmul.f32 0.125, %v2020_v37  ;;  %v2106_v1 = vadd.f32 1e-05, %v2097_v54  ;;  %4115 = vrsqrt.f32 %v2107_v35 }
 0x468   :  { %v2043_v50 = vmul.f32 %v2035_v8, %v2035_v8  ;;  %v2036_v38 = vsub.f32 %v4746_v47, %v4755_v9  ;;  %4117 = vrsqrt.f32 %v2106_v1 }
 0x46a   :  { %v2081_v59 = vrot.slane %v2043_v50, 4  ;;  %v2044_v0 = vmul.f32 %v2036_v38, %v2036_v38 }
 0x46c   :  { %v2082_v7 = vadd.f32 %v2081_v59, %v2043_v50  ;;  %v2087_v39 = vrot.slane %v2044_v0, 4  ;;  %v4108_v50 = vpop.eup %4107 }
 0x46e   :  { %v2083_v19 = vrot.slane %v2082_v7, 2  ;;  %v2088_v18 = vadd.f32 %v2087_v39, %v2044_v0  ;;  %v4110_v38 = vpop.eup %4109 }
 0x470   :  { %v2084_v27 = vadd.f32 %v2083_v19, %v2082_v7  ;;  %v2089_v30 = vrot.slane %v2088_v18, 2  ;;  %v4112_v46 = vpop.eup %4111 }
 0x471   :  { %v2127_v57 = vcombine.low %v4112_v46, %v4108_v50 }
 0x472   :  { %v2085_v12 = vrot.slane %v2084_v27, 1  ;;  %v2090_v33 = vadd.f32 %v2089_v30, %v2088_v18  ;;  %v4114_v55 = vpop.eup %4113 }
 0x473   :  { %v4116_v59 = vpop.eup %4115  ;;  %v2126_v0 = vcombine.low %v4114_v55, %v4110_v38  ;;  %v2143_v5 = vrot.slane %v2127_v57, %v4508_v10 }
 0x474   :  { %v2086_v37 = vadd.f32 %v2085_v12, %v2084_v27  ;;  %v2091_v2 = vrot.slane %v2090_v33, 1  ;;  %v2101_v27 = vld [vmem:[%s4956_s12] sm:$0xff] }
 0x475   :  { %v4118_v20 = vpop.eup %4117  ;;  %v2136_v13 = vrot.slane %v2126_v0, %v4508_v10 }
 0x476   :  { %v2099_v6 = vmul.f32 0.125, %v2086_v37  ;;  %v2092_v8 = vadd.f32 %v2091_v2, %v2090_v33  ;;  %v2128_v7 = vcombine.low %v4118_v20, %v4116_v59  ;;  %v2476_v20 = vld [vmem:[#allocation13 + $0x428] sm:$0xff] }
 0x477   :  { %v2158_v17 = vcombine.low %v2136_v13, %v2143_v5 }
 0x478   :  { %v2108_v40 = vadd.f32 1e-05, %v2099_v6  ;;  %v2100_v41 = vmul.f32 0.125, %v2092_v8  ;;  %v2150_v19 = vrot.slane %v2128_v7, %v4508_v10 }
 0x479   :  { %v2166_v24 = vrot.slane %v2158_v17, %v4508_v10 }
 0x47a   :  { %v2109_v60 = vadd.f32 1e-05, %v2100_v41  ;;  %4119 = vrsqrt.f32 %v2108_v40 }
 0x47c   :  { %4121 = vrsqrt.f32 %v2109_v60 }
 0x487   :  { %v4120_v4 = vpop.eup %4119 }
 0x489   :  { %v4122_v39 = vpop.eup %4121 }
 0x48a   :  { %v2129_v51 = vcombine.low %v4120_v4, %v4122_v39  ;;  %v2177_v4 = vld [vmem:[%s4957_s13] sm:$0xff]  ;;  %v2840_v39 = vunpack.c.h.s8.bf16 %v2476_v20 }
 0x48c   :  { %v2157_v18 = vrot.slane %v2129_v51, %v4508_v10 }
 0x48e   :  { %v2159_v22 = vcombine.low %v2150_v19, %v2157_v18 }
 0x490   :  { %v2173_v25 = vrot.slane %v2159_v22, %v4508_v10 }
 0x492   :  { %v2174_v30 = vcombine.low %v2166_v24, %v2173_v25 }
 0x494   :  { %v2176_v28 = vmul.f32 %v2174_v30, %v2101_v27 }
 0x496   :  { %v2198_v29 = vrot.slane %v2176_v28, %v4649_v62  ;;  %v2202_v54 = vrot.slane %v2176_v28, %v4637_v58  ;;  %v2206_v12 = vrot.slane %v2176_v28, %v4710_v36  ;;  %v2210_v33 = vrot.slane %v2176_v28, %v4717_v32 }
 0x497   :  { %v2182_v31 = vrot.slane %v2176_v28, %v4495_v21  ;;  %v2186_v35 = vrot.slane %v2176_v28, %v4498_v23  ;;  %v2190_v37 = vrot.slane %v2176_v28, %v4526_v14  ;;  %v2194_v2 = vrot.slane %v2176_v28, %v4529_v16 }
 0x498   :  { %v2223_v1 = vmul.f32 %v2198_v29, %v4729_v63  ;;  %v2224_v6 = vmul.f32 %v2202_v54, %v4721_v48  ;;  %v2225_v8 = vmul.f32 %v2206_v12, %v4751_v61  ;;  %v2226_v40 = vmul.f32 %v2210_v33, %v4755_v9 }
 0x499   :  { %v2219_v41 = vmul.f32 %v2182_v31, %v4714_v44  ;;  %v2220_v60 = vmul.f32 %v2186_v35, %v4707_v43  ;;  %v2221_v50 = vmul.f32 %v2190_v37, %v4712_v34  ;;  %v2222_v38 = vmul.f32 %v2194_v2, %v4705_v42  ;;  %v2532_v42 = vld [vmem:[#allocation13 + $0x5e8] sm:$0xff] }
 0x49a   :  { %v2237_v46 = vcombine.low %v2223_v1, %v2224_v6  ;;  %v2238_v55 = vcombine.low %v2225_v8, %v2226_v40  ;;  %v2287_v7 = vmul.f32 %v2186_v35, %v4683_v52  ;;  %v2952_v13 = vunpack.c.h.s8.bf16 %v2532_v42  ;;  %v2470_v8 = vld [vmem:[#allocation13 + $0x3f8] sm:$0xff] }
 0x49b   :  { %v2235_v57 = vcombine.low %v2219_v41, %v2220_v60  ;;  %v2236_v59 = vcombine.low %v2221_v50, %v2222_v38  ;;  %v2289_v17 = vmul.f32 %v2194_v2, %v4681_v49  ;;  %v2286_v19 = vmul.f32 %v2182_v31, %v4687_v56  ;;  %v2526_v40 = vld [vmem:[#allocation13 + $0x5b8] sm:$0xff] }
 0x49c   :  { %v2259_v63 = vrot.slane %v2237_v46, %v4508_v10  ;;  %v2266_v48 = vrot.slane %v2238_v55, %v4508_v10  ;;  %v2288_v18 = vmul.f32 %v2190_v37, %v4685_v53  ;;  %v2293_v22 = vmul.f32 %v2210_v33, %v4746_v47  ;;  %v2469_v46 = vld [vmem:[#allocation13 + $0x3f0] sm:$0xff] }
 0x49d   :  { %v2245_v61 = vrot.slane %v2235_v57, %v4508_v10  ;;  %v2252_v9 = vrot.slane %v2236_v59, %v4508_v10  ;;  %v2290_v24 = vmul.f32 %v2198_v29, %v4695_v3  ;;  %v2292_v25 = vmul.f32 %v2206_v12, %v4743_v15  ;;  %v2525_v55 = vld [vmem:[#allocation13 + $0x5b0] sm:$0xff] }
 0x49e   :  { %v2268_v0 = vcombine.low %v2259_v63, %v2266_v48  ;;  %v2834_v1 = vunpack.c.l.s8.bf16 %v4675_v45  ;;  %v2946_v6 = vunpack.c.l.s8.bf16 %v4677_v26  ;;  %v2833_v50 = vunpack.c.l.s8.bf16 %v2476_v20  ;;  %v2462_v20 = vld [vmem:[#allocation13 + $0x3b8] sm:$0xff] }
 0x49f   :  { %v2267_v44 = vcombine.low %v2245_v61, %v2252_v9  ;;  %v2945_v38 = vunpack.c.l.s8.bf16 %v2532_v42  ;;  %v2827_v45 = vunpack.c.h.s8.bf16 %v2470_v8  ;;  %v2939_v26 = vunpack.c.h.s8.bf16 %v2526_v40  ;;  %v2463_v61 = vld [vmem:[#allocation13 + $0x3c0] sm:$0xff]  ;;  %v2518_v42 = vld [vmem:[#allocation13 + $0x578] sm:$0xff] }
 0x4a0   :  { %v2282_v43 = vrot.slane %v2268_v0, %v4508_v10  ;;  %v2826_v57 = vunpack.c.h.s8.bf16 %v2469_v46  ;;  %v2938_v59 = vunpack.c.h.s8.bf16 %v2525_v55  ;;  %v2820_v63 = vunpack.c.l.s8.bf16 %v2470_v8  ;;  %v2519_v9 = vld [vmem:[#allocation13 + $0x580] sm:$0xff]  ;;  %v2554_v8 = vld [vmem:[#allocation13 + $0x698] sm:$0xff] }
 0x4a1   :  { %v2275_v34 = vrot.slane %v2267_v44, %v4508_v10  ;;  %v2291_v10 = vmul.f32 %v2202_v54, %v4691_v11  ;;  %v2932_v48 = vunpack.c.l.s8.bf16 %v2526_v40  ;;  %v2819_v0 = vunpack.c.l.s8.bf16 %v2469_v46  ;;  %v2553_v46 = vld [vmem:[#allocation13 + $0x690] sm:$0xff] }
 0x4a2   :  { %v2931_v44 = vunpack.c.l.s8.bf16 %v2525_v55 }
 0x4a3   :  { %v2283_v5 = vcombine.low %v2275_v34, %v2282_v43  ;;  %v2813_v43 = vunpack.c.h.s8.bf16 %v2463_v61  ;;  %v2925_v34 = vunpack.c.h.s8.bf16 %v2519_v9 }
 0x4a5   :  { %v2285_v51 = vsub.f32 %v2177_v4, %v2283_v5  ;;  %v2812_v4 = vunpack.c.h.s8.bf16 %v2462_v20  ;;  %v2924_v5 = vunpack.c.h.s8.bf16 %v2518_v42 }
 0x4a7   :  { %v2302_v27 = vrot.slane %v2285_v51, %v4498_v23  ;;  %v2310_v52 = vrot.slane %v2285_v51, %v4529_v16  ;;  %v2298_v30 = vrot.slane %v2285_v51, %v4495_v21  ;;  %v2306_v49 = vrot.slane %v2285_v51, %v4526_v14 }
 0x4a8   :  { %v2318_v56 = vrot.slane %v2285_v51, %v4637_v58  ;;  %v2326_v53 = vrot.slane %v2285_v51, %v4717_v32  ;;  %v2314_v11 = vrot.slane %v2285_v51, %v4649_v62  ;;  %v2322_v47 = vrot.slane %v2285_v51, %v4710_v36  ;;  %v2512_v51 = vld [vmem:[#allocation13 + $0x548] sm:$0xff] }
 0x4a9   :  { %v2336_v28 = vadd.f32 %v2302_v27, %v2287_v7  ;;  %v2338_v3 = vadd.f32 %v2310_v52, %v2289_v17  ;;  %v2335_v29 = vadd.f32 %v2298_v30, %v2286_v19  ;;  %v2337_v15 = vadd.f32 %v2306_v49, %v2288_v18  ;;  %v2505_v49 = vld [vmem:[#allocation13 + $0x510] sm:$0xff] }
 0x4aa   :  { %v2340_v54 = vadd.f32 %v2318_v56, %v2291_v10  ;;  %v2342_v12 = vadd.f32 %v2326_v53, %v2293_v22  ;;  %v4809_v33 = vadd.f32 %v2314_v11, %v2290_v24  ;;  %v4811_v31 = vadd.f32 %v2322_v47, %v2292_v25  ;;  %v2455_v22 = vld [vmem:[#allocation13 + $0x380] sm:$0xff]  ;;  %v2561_v56 = vld [vmem:[#allocation13 + $0x6d0] sm:$0xff] }
 0x4ab   :  { %v4813_v35 = vpack.c.bf16 %v2336_v28, %v2336_v28  ;;  %v4815_v37 = vpack.c.bf16 %v2338_v3, %v2338_v3  ;;  %v4817_v2 = vpack.c.bf16 %v2335_v29, %v2335_v29  ;;  %v4819_v32 = vpack.c.bf16 %v2337_v15, %v2337_v15  ;;  %v2511_v24 = vld [vmem:[#allocation13 + $0x540] sm:$0xff]  ;;  %v2504_v3 = vld [vmem:[#allocation13 + $0x508] sm:$0xff] }
 0x4ac   :  { %v4827_v41 = vpack.c.bf16 %v2340_v54, %v2340_v54  ;;  %v4829_v60 = vpack.c.bf16 %v2342_v12, %v2342_v12  ;;  %v2806_v7 = vunpack.c.l.s8.bf16 %v2463_v61  ;;  %v2805_v17 = vunpack.c.l.s8.bf16 %v2462_v20  ;;  %v2560_v29 = vld [vmem:[#allocation13 + $0x6c8] sm:$0xff]  ;;  %v2547_v61 = vld [vmem:[#allocation13 + $0x660] sm:$0xff]  ;;  %v2546_v20 = vld [vmem:[#allocation13 + $0x658] sm:$0xff] }
 0x4ad   :  { %3055 = vmatprep.mubr.bf16.mxu1 %v4813_v35  ;;  %3096 = vmatprep.mubr.bf16.mxu0 %v4815_v37  ;;  %v2917_v19 = vunpack.c.l.s8.bf16 %v2518_v42  ;;  %v2911_v10 = vunpack.c.h.s8.bf16 %v2512_v51  ;;  %v2798_v25 = vunpack.c.h.s8.bf16 %v2455_v22  ;;  %v2910_v27 = vunpack.c.h.s8.bf16 %v2511_v24 }
 0x4ae   :  { %3056 = vmatmul.mubr.bf16.vlgmr.msra.gmra.mxu1 %v4817_v2  ;;  %3097 = vmatmul.mubr.bf16.vlgmr.msra.gmra.mxu0 %v4819_v32  ;;  %v2904_v30 = vunpack.c.l.s8.bf16 %v2512_v51  ;;  %v2791_v53 = vunpack.c.l.s8.bf16 %v2455_v22  ;;  %v2903_v11 = vunpack.c.l.s8.bf16 %v2511_v24  ;;  %v2897_v47 = vunpack.c.h.s8.bf16 %v2505_v49  ;;  %v2539_v22 = vld [vmem:[#allocation13 + $0x620] sm:$0xff] }
 0x4af   :  { %3106 = vmatpush1.bf16.msra.mxu1 %v2840_v39  ;;  %3147 = vmatpush1.bf16.msra.mxu0 %v2952_v13  ;;  %v2918_v39 = vunpack.c.l.s8.bf16 %v2519_v9  ;;  %v2456_v13 = vld [vmem:[#allocation13 + $0x388] sm:$0xff]  ;;  %v3009_v28 = vunpack.c.h.s8.bf16 %v2561_v56  ;;  %v2896_v15 = vunpack.c.h.s8.bf16 %v2504_v3  ;;  %v3008_v54 = vunpack.c.h.s8.bf16 %v2560_v29 }
 0x4b0   :  { %3137 = vmatprep.mubr.bf16.mxu1 %v4827_v41  ;;  %3178 = vmatprep.mubr.bf16.mxu0 %v4829_v60  ;;  %v2799_v18 = vunpack.c.h.s8.bf16 %v2456_v13  ;;  %v2792_v52 = vunpack.c.l.s8.bf16 %v2456_v13  ;;  %v2890_v12 = vunpack.c.l.s8.bf16 %v2505_v49  ;;  %v2889_v40 = vunpack.c.l.s8.bf16 %v2504_v3  ;;  %v2540_v13 = vld [vmem:[#allocation13 + $0x628] sm:$0xff]  ;;  %v2423_v49 = vld [vmem:[#allocation13 + $0x280] sm:$0xff]  ;;  %v2422_v3 = vld [vmem:[#allocation13 + $0x278] sm:$0xff] }
 0x4b1   :  { %3107 = vmatprep.subr.bf16.mxu1 %v2834_v1  ;;  %3148 = vmatprep.subr.bf16.mxu0 %v2946_v6  ;;  %v3002_v1 = vunpack.c.l.s8.bf16 %v2561_v56  ;;  %v2498_v6 = vld [vmem:[#allocation13 + $0x4d8] sm:$0xff] }
 0x4b3   :  { %3108 = vmatpush1.bf16.msra.mxu1 %v2833_v50  ;;  %3149 = vmatpush1.bf16.msra.mxu0 %v2945_v38  ;;  %v3001_v50 = vunpack.c.l.s8.bf16 %v2560_v29  ;;  %v2883_v38 = vunpack.c.h.s8.bf16 %v2498_v6 }
 0x4b4   :  { %3109 = vmatprep.subr.bf16.mxu1 %v2827_v45  ;;  %3150 = vmatprep.subr.bf16.mxu0 %v2939_v26  ;;  %v2995_v45 = vunpack.c.h.s8.bf16 %v2554_v8  ;;  %v2497_v26 = vld [vmem:[#allocation13 + $0x4d0] sm:$0xff] }
 0x4b5   :  { %v2882_v55 = vunpack.c.h.s8.bf16 %v2497_v26  ;;  %v2875_v9 = vunpack.c.l.s8.bf16 %v2497_v26  ;;  %v2415_v26 = vld [vmem:[#allocation13 + $0x240] sm:$0xff] }
 0x4b7   :  { %3110 = vmatpush1.bf16.msra.mxu1 %v2826_v57  ;;  %3151 = vmatpush1.bf16.msra.mxu0 %v2938_v59  ;;  %v2994_v57 = vunpack.c.h.s8.bf16 %v2553_v46  ;;  %v2876_v59 = vunpack.c.l.s8.bf16 %v2498_v6  ;;  %v2724_v6 = vunpack.c.l.s8.bf16 %v2423_v49 }
 0x4b8   :  { %3111 = vmatprep.subr.bf16.mxu1 %v2820_v63  ;;  %3152 = vmatprep.subr.bf16.mxu0 %v2932_v48  ;;  %v2988_v63 = vunpack.c.l.s8.bf16 %v2554_v8  ;;  %v2491_v48 = vld [vmem:[#allocation13 + $0x4a0] sm:$0xff]  ;;  %v2360_v8 = vld [vmem:[#allocation13 + $0x88] sm:$0xff] }
 0x4bb   :  { %3112 = vmatpush1.bf16.msra.mxu1 %v2819_v0  ;;  %3153 = vmatpush1.bf16.msra.mxu0 %v2931_v44  ;;  %v2987_v0 = vunpack.c.l.s8.bf16 %v2553_v46  ;;  %v2869_v44 = vunpack.c.h.s8.bf16 %v2491_v48 }
 0x4bc   :  { %3113 = vmatprep.subr.bf16.mxu1 %v2813_v43  ;;  %3154 = vmatprep.subr.bf16.mxu0 %v2925_v34  ;;  %v2981_v43 = vunpack.c.h.s8.bf16 %v2547_v61  ;;  %v2490_v34 = vld [vmem:[#allocation13 + $0x498] sm:$0xff] }
 0x4bd   :  { %v2868_v42 = vunpack.c.h.s8.bf16 %v2490_v34  ;;  %v2861_v51 = vunpack.c.l.s8.bf16 %v2490_v34  ;;  %v2408_v34 = vld [vmem:[#allocation13 + $0x208] sm:$0xff] }
 0x4bf   :  { %3114 = vmatpush1.bf16.msra.mxu1 %v2812_v4  ;;  %3155 = vmatpush1.bf16.msra.mxu0 %v2924_v5  ;;  %v2980_v4 = vunpack.c.h.s8.bf16 %v2546_v20  ;;  %v2862_v5 = vunpack.c.l.s8.bf16 %v2491_v48  ;;  %v2409_v48 = vld [vmem:[#allocation13 + $0x210] sm:$0xff] }
 0x4c0   :  { %3115 = vmatprep.subr.bf16.mxu1 %v2806_v7  ;;  %3156 = vmatprep.subr.bf16.mxu0 %v2918_v39  ;;  %v2974_v7 = vunpack.c.l.s8.bf16 %v2547_v61  ;;  %v2484_v39 = vld [vmem:[#allocation13 + $0x468] sm:$0xff] }
 0x4c3   :  { %3116 = vmatpush1.bf16.msra.mxu1 %v2805_v17  ;;  %3157 = vmatpush1.bf16.msra.mxu0 %v2917_v19  ;;  %v2973_v17 = vunpack.c.l.s8.bf16 %v2546_v20  ;;  %v2855_v19 = vunpack.c.h.s8.bf16 %v2484_v39 }
 0x4c4   :  { %3117 = vmatprep.subr.bf16.mxu1 %v2799_v18  ;;  %3158 = vmatprep.subr.bf16.mxu0 %v2911_v10  ;;  %v2967_v18 = vunpack.c.h.s8.bf16 %v2540_v13  ;;  %v2483_v10 = vld [vmem:[#allocation13 + $0x460] sm:$0xff] }
 0x4c5   :  { %v2854_v24 = vunpack.c.h.s8.bf16 %v2483_v10  ;;  %v2847_v56 = vunpack.c.l.s8.bf16 %v2483_v10  ;;  %v2401_v10 = vld [vmem:[#allocation13 + $0x1d0] sm:$0xff] }
 0x4c7   :  { %3118 = vmatpush1.bf16.msra.mxu1 %v2798_v25  ;;  %3159 = vmatpush1.bf16.msra.mxu0 %v2910_v27  ;;  %v2966_v25 = vunpack.c.h.s8.bf16 %v2539_v22  ;;  %v2848_v27 = vunpack.c.l.s8.bf16 %v2484_v39  ;;  %v2402_v39 = vld [vmem:[#allocation13 + $0x1d8] sm:$0xff] }
 0x4c8   :  { %3119 = vmatprep.subr.bf16.mxu1 %v2792_v52  ;;  %3160 = vmatprep.subr.bf16.mxu0 %v2904_v30  ;;  %v2960_v52 = vunpack.c.l.s8.bf16 %v2540_v13  ;;  %v2367_v30 = vld [vmem:[#allocation13 + $0xc0] sm:$0xff] }
 0x4cb   :  { %3120 = vmatpush1.bf16.msra.mxu1 %v2791_v53  ;;  %3161 = vmatpush1.bf16.msra.mxu0 %v2903_v11  ;;  %v2959_v53 = vunpack.c.l.s8.bf16 %v2539_v22  ;;  %v2619_v11 = vunpack.c.h.s8.bf16 %v2367_v30 }
 0x4cc   :  { %3121 = vmatprep.subr.bf16.mxu1 %v2897_v47  ;;  %3162 = vmatprep.subr.bf16.mxu0 %v3009_v28  ;;  %v2731_v47 = vunpack.c.h.s8.bf16 %v2423_v49  ;;  %v2366_v28 = vld [vmem:[#allocation13 + $0xb8] sm:$0xff] }
 0x4cd   :  { %v2618_v29 = vunpack.c.h.s8.bf16 %v2366_v28 }
 0x4cf   :  { %3122 = vmatpush2.bf16.msra.mxu1 %v2896_v15  ;;  %3163 = vmatpush2.bf16.msra.mxu0 %v3008_v54  ;;  %v4835_v15 = vpack.c.bf16 %v4809_v33, %v4809_v33  ;;  %v4839_v54 = vpack.c.bf16 %v4811_v31, %v4811_v31  ;;  %v2611_v33 = vunpack.c.l.s8.bf16 %v2366_v28  ;;  %v2723_v31 = vunpack.c.l.s8.bf16 %v2422_v3  ;;  %v2450_v28 = vld [vmem:[#allocation13 + $0x358] sm:$0xff] }
 0x4d0   :  { %3123 = vmatprep.subr.bf16.mxu1 %v2890_v12  ;;  %3164 = vmatprep.subr.bf16.mxu0 %v3002_v1  ;;  %v2730_v12 = vunpack.c.h.s8.bf16 %v2422_v3  ;;  %v2612_v1 = vunpack.c.l.s8.bf16 %v2367_v30  ;;  %v2451_v30 = vld [vmem:[#allocation13 + $0x360] sm:$0xff] }
 0x4d3   :  { %3124 = vmatpush2.bf16.msra.mxu1 %v2889_v40  ;;  %3165 = vmatpush2.bf16.msra.mxu0 %v3001_v50  ;;  %v2416_v40 = vld [vmem:[#allocation13 + $0x248] sm:$0xff]  ;;  %v2605_v50 = vunpack.c.h.s8.bf16 %v2360_v8 }
 0x4d4   :  { %3125 = vmatprep.subr.bf16.mxu1 %v2883_v38  ;;  %3166 = vmatprep.subr.bf16.mxu0 %v2995_v45  ;;  %v2359_v38 = vld [vmem:[#allocation13 + $0x80] sm:$0xff]  ;;  %v2717_v45 = vunpack.c.h.s8.bf16 %v2416_v40 }
 0x4d5   :  { %v2604_v46 = vunpack.c.h.s8.bf16 %v2359_v38  ;;  %v2597_v61 = vunpack.c.l.s8.bf16 %v2359_v38 }
 0x4d7   :  { %3126 = vmatpush2.bf16.msra.mxu1 %v2882_v55  ;;  %3167 = vmatpush2.bf16.msra.mxu0 %v2994_v57  ;;  %v2716_v55 = vunpack.c.h.s8.bf16 %v2415_v26  ;;  %v2598_v57 = vunpack.c.l.s8.bf16 %v2360_v8  ;;  %v2444_v8 = vld [vmem:[#allocation13 + $0x328] sm:$0xff] }
 0x4d8   :  { %3127 = vmatprep.subr.bf16.mxu1 %v2876_v59  ;;  %3168 = vmatprep.subr.bf16.mxu0 %v2988_v63  ;;  %v2710_v59 = vunpack.c.l.s8.bf16 %v2416_v40  ;;  %v2353_v63 = vld [vmem:[#allocation13 + $0x50] sm:$0xff]  ;;  %v2773_v38 = vunpack.c.h.s8.bf16 %v2444_v8 }
 0x4db   :  { %3128 = vmatpush2.bf16.msra.mxu1 %v2875_v9  ;;  %3169 = vmatpush2.bf16.msra.mxu0 %v2987_v0  ;;  %v2709_v9 = vunpack.c.l.s8.bf16 %v2415_v26  ;;  %v2591_v0 = vunpack.c.h.s8.bf16 %v2353_v63 }
 0x4dc   :  { %3129 = vmatprep.subr.bf16.mxu1 %v2869_v44  ;;  %3170 = vmatprep.subr.bf16.mxu0 %v2981_v43  ;;  %v2352_v44 = vld [vmem:[#allocation13 + $0x48] sm:$0xff]  ;;  %v2703_v43 = vunpack.c.h.s8.bf16 %v2409_v48 }
 0x4dd   :  { %v2590_v20 = vunpack.c.h.s8.bf16 %v2352_v44  ;;  %v2583_v13 = vunpack.c.l.s8.bf16 %v2352_v44 }
 0x4df   :  { %3130 = vmatpush2.bf16.msra.mxu1 %v2868_v42  ;;  %3171 = vmatpush2.bf16.msra.mxu0 %v2980_v4  ;;  %v2702_v42 = vunpack.c.h.s8.bf16 %v2408_v34  ;;  %v2584_v4 = vunpack.c.l.s8.bf16 %v2353_v63  ;;  %v2437_v63 = vld [vmem:[#allocation13 + $0x2f0] sm:$0xff] }
 0x4e0   :  { %3131 = vmatprep.subr.bf16.mxu1 %v2862_v5  ;;  %3172 = vmatprep.subr.bf16.mxu0 %v2974_v7  ;;  %v2696_v5 = vunpack.c.l.s8.bf16 %v2409_v48  ;;  %v2346_v7 = vld [vmem:[#allocation13 + $0x18] sm:$0xff]  ;;  %v2759_v44 = vunpack.c.h.s8.bf16 %v2437_v63 }
 0x4e3   :  { %3132 = vmatpush2.bf16.msra.mxu1 %v2861_v51  ;;  %3173 = vmatpush2.bf16.msra.mxu0 %v2973_v17  ;;  %v2695_v51 = vunpack.c.l.s8.bf16 %v2408_v34  ;;  %v2577_v17 = vunpack.c.h.s8.bf16 %v2346_v7 }
 0x4e4   :  { %3133 = vmatprep.subr.bf16.mxu1 %v2855_v19  ;;  %3174 = vmatprep.subr.bf16.mxu0 %v2967_v18  ;;  %v2345_v19 = vld [vmem:[#allocation13 + $0x10] sm:$0xff]  ;;  %v2689_v18 = vunpack.c.h.s8.bf16 %v2402_v39 }
 0x4e5   :  { %v2576_v22 = vunpack.c.h.s8.bf16 %v2345_v19  ;;  %v2569_v49 = vunpack.c.l.s8.bf16 %v2345_v19 }
 0x4e7   :  { %3134 = vmatpush2.bf16.msra.mxu1 %v2854_v24  ;;  %3175 = vmatpush2.bf16.msra.mxu0 %v2966_v25  ;;  %v2688_v24 = vunpack.c.h.s8.bf16 %v2401_v10  ;;  %v2570_v25 = vunpack.c.l.s8.bf16 %v2346_v7  ;;  %v2430_v7 = vld [vmem:[#allocation13 + $0x2b8] sm:$0xff] }
 0x4e8   :  { %3135 = vmatprep.subr.bf16.mxu1 %v2848_v27  ;;  %3176 = vmatprep.subr.bf16.mxu0 %v2960_v52  ;;  %v2682_v27 = vunpack.c.l.s8.bf16 %v2402_v39  ;;  %v2395_v52 = vld [vmem:[#allocation13 + $0x1a0] sm:$0xff]  ;;  %v2745_v19 = vunpack.c.h.s8.bf16 %v2430_v7 }
 0x4eb   :  { %3136 = vmatpush2.bf16.msra.mxu1 %v2847_v56  ;;  %3177 = vmatpush2.bf16.msra.mxu0 %v2959_v53  ;;  %v2681_v56 = vunpack.c.l.s8.bf16 %v2401_v10  ;;  %v2675_v53 = vunpack.c.h.s8.bf16 %v2395_v52 }
 0x4ec   :  { %3187 = vmatprep.subr.bf16.mxu1 %v2619_v11  ;;  %3228 = vmatprep.subr.bf16.mxu0 %v2731_v47  ;;  %v2394_v11 = vld [vmem:[#allocation13 + $0x198] sm:$0xff]  ;;  %v2787_v47 = vunpack.c.h.s8.bf16 %v2451_v30 }
 0x4ed   :  { %v2674_v3 = vunpack.c.h.s8.bf16 %v2394_v11  ;;  %v2667_v40 = vunpack.c.l.s8.bf16 %v2394_v11 }
 0x4ee   :  { %3138 = vmatmul.mubr.bf16.vlgmr.msra.gmra.mxu1 %v4835_v15  ;;  %3179 = vmatmul.mubr.bf16.vlgmr.msra.gmra.mxu0 %v4839_v54 }
 0x4ef   :  { %3188 = vmatpush1.bf16.msra.mxu1 %v2618_v29  ;;  %3219 = vmatprep.mubr.bf16.mxu1 %v4813_v35  ;;  %v2786_v29 = vunpack.c.h.s8.bf16 %v2450_v28 }
 0x4f0   :  { %3229 = vmatpush1.bf16.msra.mxu0 %v2730_v12  ;;  %3260 = vmatprep.mubr.bf16.mxu0 %v4815_v37  ;;  %v2668_v12 = vunpack.c.l.s8.bf16 %v2395_v52  ;;  %v2535_v52 = vld [vmem:[#allocation13 + $0x600] sm:$0xff] }
 0x4f1   :  { %3189 = vmatprep.subr.bf16.mxu1 %v2612_v1  ;;  %3230 = vmatprep.subr.bf16.mxu0 %v2724_v6  ;;  %v2780_v1 = vunpack.c.l.s8.bf16 %v2451_v30  ;;  %v2388_v6 = vld [vmem:[#allocation13 + $0x168] sm:$0xff]  ;;  %v2955_v11 = vunpack.c.h.s8.bf16 %v2535_v52 }
 0x4f3   :  { %3190 = vmatpush1.bf16.msra.mxu1 %v2611_v33  ;;  %v2779_v33 = vunpack.c.l.s8.bf16 %v2450_v28 }
 0x4f4   :  { %3231 = vmatpush1.bf16.msra.mxu0 %v2723_v31  ;;  %3191 = vmatprep.subr.bf16.mxu1 %v2605_v50  ;;  %v2661_v31 = vunpack.c.h.s8.bf16 %v2388_v6  ;;  %v2387_v50 = vld [vmem:[#allocation13 + $0x160] sm:$0xff] }
 0x4f5   :  { %3232 = vmatprep.subr.bf16.mxu0 %v2717_v45  ;;  %v2443_v45 = vld [vmem:[#allocation13 + $0x320] sm:$0xff]  ;;  %v2660_v26 = vunpack.c.h.s8.bf16 %v2387_v50  ;;  %v2653_v48 = vunpack.c.l.s8.bf16 %v2387_v50 }
 0x4f7   :  { %3192 = vmatpush1.bf16.msra.mxu1 %v2604_v46  ;;  %v2772_v46 = vunpack.c.h.s8.bf16 %v2443_v45 }
 0x4f8   :  { %3233 = vmatpush1.bf16.msra.mxu0 %v2716_v55  ;;  %3193 = vmatprep.subr.bf16.mxu1 %v2598_v57  ;;  %v2654_v55 = vunpack.c.l.s8.bf16 %v2388_v6  ;;  %v2766_v57 = vunpack.c.l.s8.bf16 %v2444_v8  ;;  %v2528_v6 = vld [vmem:[#allocation13 + $0x5c8] sm:$0xff] }
 0x4f9   :  { %3234 = vmatprep.subr.bf16.mxu0 %v2710_v59  ;;  %v2381_v59 = vld [vmem:[#allocation13 + $0x130] sm:$0xff]  ;;  %v2941_v50 = vunpack.c.h.s8.bf16 %v2528_v6 }
 0x4fb   :  { %3194 = vmatpush1.bf16.msra.mxu1 %v2597_v61  ;;  %v2765_v61 = vunpack.c.l.s8.bf16 %v2443_v45 }
 0x4fc   :  { %3235 = vmatpush1.bf16.msra.mxu0 %v2709_v9  ;;  %3195 = vmatprep.subr.bf16.mxu1 %v2591_v0  ;;  %v2647_v9 = vunpack.c.h.s8.bf16 %v2381_v59  ;;  %v2380_v0 = vld [vmem:[#allocation13 + $0x128] sm:$0xff] }
 0x4fd   :  { %3236 = vmatprep.subr.bf16.mxu0 %v2703_v43  ;;  %v2436_v43 = vld [vmem:[#allocation13 + $0x2e8] sm:$0xff]  ;;  %v2646_v34 = vunpack.c.h.s8.bf16 %v2380_v0  ;;  %v2639_v39 = vunpack.c.l.s8.bf16 %v2380_v0 }
 0x4ff   :  { %3196 = vmatpush1.bf16.msra.mxu1 %v2590_v20  ;;  %v2758_v20 = vunpack.c.h.s8.bf16 %v2436_v43 }
 0x500   :  { %3237 = vmatpush1.bf16.msra.mxu0 %v2702_v42  ;;  %3197 = vmatprep.subr.bf16.mxu1 %v2584_v4  ;;  %v2640_v42 = vunpack.c.l.s8.bf16 %v2381_v59  ;;  %v2752_v4 = vunpack.c.l.s8.bf16 %v2437_v63  ;;  %v2521_v59 = vld [vmem:[#allocation13 + $0x590] sm:$0xff] }
 0x501   :  { %3238 = vmatprep.subr.bf16.mxu0 %v2696_v5  ;;  %v2374_v5 = vld [vmem:[#allocation13 + $0xf8] sm:$0xff]  ;;  %v2927_v0 = vunpack.c.h.s8.bf16 %v2521_v59 }
 0x503   :  { %3198 = vmatpush1.bf16.msra.mxu1 %v2583_v13  ;;  %v2751_v13 = vunpack.c.l.s8.bf16 %v2436_v43 }
 0x504   :  { %3239 = vmatpush1.bf16.msra.mxu0 %v2695_v51  ;;  %3199 = vmatprep.subr.bf16.mxu1 %v2577_v17  ;;  %v2633_v51 = vunpack.c.h.s8.bf16 %v2374_v5  ;;  %v2373_v17 = vld [vmem:[#allocation13 + $0xf0] sm:$0xff] }
 0x505   :  { %3240 = vmatprep.subr.bf16.mxu0 %v2689_v18  ;;  %v2429_v18 = vld [vmem:[#allocation13 + $0x2b0] sm:$0xff]  ;;  %v2632_v10 = vunpack.c.h.s8.bf16 %v2373_v17  ;;  %v2625_v30 = vunpack.c.l.s8.bf16 %v2373_v17 }
 0x507   :  { %3200 = vmatpush1.bf16.msra.mxu1 %v2576_v22  ;;  %v2744_v22 = vunpack.c.h.s8.bf16 %v2429_v18 }
 0x508   :  { %3241 = vmatpush1.bf16.msra.mxu0 %v2688_v24  ;;  %3201 = vmatprep.subr.bf16.mxu1 %v2570_v25  ;;  %v2626_v24 = vunpack.c.l.s8.bf16 %v2374_v5  ;;  %v2738_v25 = vunpack.c.l.s8.bf16 %v2430_v7  ;;  %v2514_v5 = vld [vmem:[#allocation13 + $0x558] sm:$0xff] }
 0x509   :  { %3242 = vmatprep.subr.bf16.mxu0 %v2682_v27  ;;  %v2479_v27 = vld [vmem:[#allocation13 + $0x440] sm:$0xff]  ;;  %v2913_v17 = vunpack.c.h.s8.bf16 %v2514_v5 }
 0x50b   :  { %3202 = vmatpush1.bf16.msra.mxu1 %v2569_v49  ;;  %v2737_v49 = vunpack.c.l.s8.bf16 %v2429_v18 }
 0x50c   :  { %3243 = vmatpush1.bf16.msra.mxu0 %v2681_v56  ;;  %3203 = vmatprep.subr.bf16.mxu1 %v2675_v53  ;;  %v2843_v56 = vunpack.c.h.s8.bf16 %v2479_v27  ;;  %v2478_v53 = vld [vmem:[#allocation13 + $0x438] sm:$0xff] }
 0x50d   :  { %3244 = vmatprep.subr.bf16.mxu0 %v2787_v47  ;;  %v2534_v47 = vld [vmem:[#allocation13 + $0x5f8] sm:$0xff]  ;;  %v2842_v28 = vunpack.c.h.s8.bf16 %v2478_v53  ;;  %v2835_v8 = vunpack.c.l.s8.bf16 %v2478_v53 }
 0x50f   :  { %3204 = vmatpush2.bf16.msra.mxu1 %v2674_v3  ;;  %v2954_v3 = vunpack.c.h.s8.bf16 %v2534_v47 }
 0x510   :  { %3245 = vmatpush2.bf16.msra.mxu0 %v2786_v29  ;;  %3205 = vmatprep.subr.bf16.mxu1 %v2668_v12  ;;  %v2836_v29 = vunpack.c.l.s8.bf16 %v2479_v27  ;;  %v2472_v12 = vld [vmem:[#allocation13 + $0x408] sm:$0xff]  ;;  %v2563_v27 = vld [vmem:[#allocation13 + $0x6e0] sm:$0xff] }
 0x511   :  { %3246 = vmatprep.subr.bf16.mxu0 %v2780_v1  ;;  %v2948_v1 = vunpack.c.l.s8.bf16 %v2535_v52  ;;  %v3011_v53 = vunpack.c.h.s8.bf16 %v2563_v27 }
 0x513   :  { %3206 = vmatpush2.bf16.msra.mxu1 %v2667_v40  ;;  %v2947_v40 = vunpack.c.l.s8.bf16 %v2534_v47 }
 0x514   :  { %3247 = vmatpush2.bf16.msra.mxu0 %v2779_v33  ;;  %3207 = vmatprep.subr.bf16.mxu1 %v2661_v31  ;;  %v2829_v33 = vunpack.c.h.s8.bf16 %v2472_v12  ;;  %v2471_v31 = vld [vmem:[#allocation13 + $0x400] sm:$0xff] }
 0x515   :  { %3248 = vmatprep.subr.bf16.mxu0 %v2773_v38  ;;  %v2527_v38 = vld [vmem:[#allocation13 + $0x5c0] sm:$0xff]  ;;  %v2828_v45 = vunpack.c.h.s8.bf16 %v2471_v31  ;;  %v2821_v63 = vunpack.c.l.s8.bf16 %v2471_v31 }
 0x517   :  { %3208 = vmatpush2.bf16.msra.mxu1 %v2660_v26  ;;  %v2940_v26 = vunpack.c.h.s8.bf16 %v2527_v38 }
 0x518   :  { %3249 = vmatpush2.bf16.msra.mxu0 %v2772_v46  ;;  %3209 = vmatprep.subr.bf16.mxu1 %v2654_v55  ;;  %v2822_v46 = vunpack.c.l.s8.bf16 %v2472_v12  ;;  %v2934_v55 = vunpack.c.l.s8.bf16 %v2528_v6  ;;  %v2500_v12 = vld [vmem:[#allocation13 + $0x4e8] sm:$0xff] }
 0x519   :  { %3250 = vmatprep.subr.bf16.mxu0 %v2766_v57  ;;  %v2465_v57 = vld [vmem:[#allocation13 + $0x3d0] sm:$0xff] }
 0x51b   :  { %3210 = vmatpush2.bf16.msra.mxu1 %v2653_v48  ;;  %v2933_v48 = vunpack.c.l.s8.bf16 %v2527_v38 }
 0x51c   :  { %3251 = vmatpush2.bf16.msra.mxu0 %v2765_v61  ;;  %3211 = vmatprep.subr.bf16.mxu1 %v2647_v9  ;;  %v2815_v61 = vunpack.c.h.s8.bf16 %v2465_v57  ;;  %v2464_v9 = vld [vmem:[#allocation13 + $0x3c8] sm:$0xff] }
 0x51d   :  { %3252 = vmatprep.subr.bf16.mxu0 %v2759_v44  ;;  %v2520_v44 = vld [vmem:[#allocation13 + $0x588] sm:$0xff]  ;;  %v2814_v43 = vunpack.c.h.s8.bf16 %v2464_v9  ;;  %v2807_v7 = vunpack.c.l.s8.bf16 %v2464_v9 }
 0x51f   :  { %3212 = vmatpush2.bf16.msra.mxu1 %v2646_v34  ;;  %v2926_v34 = vunpack.c.h.s8.bf16 %v2520_v44 }
 0x520   :  { %3253 = vmatpush2.bf16.msra.mxu0 %v2758_v20  ;;  %3213 = vmatprep.subr.bf16.mxu1 %v2640_v42  ;;  %v2808_v20 = vunpack.c.l.s8.bf16 %v2465_v57  ;;  %v2920_v42 = vunpack.c.l.s8.bf16 %v2521_v59  ;;  %v2549_v57 = vld [vmem:[#allocation13 + $0x670] sm:$0xff] }
 0x521   :  { %3254 = vmatprep.subr.bf16.mxu0 %v2752_v4  ;;  %v2458_v4 = vld [vmem:[#allocation13 + $0x398] sm:$0xff]  ;;  %v2983_v9 = vunpack.c.h.s8.bf16 %v2549_v57 }
 0x523   :  { %3214 = vmatpush2.bf16.msra.mxu1 %v2639_v39  ;;  %v2919_v39 = vunpack.c.l.s8.bf16 %v2520_v44 }
 0x524   :  { %3255 = vmatpush2.bf16.msra.mxu0 %v2751_v13  ;;  %3215 = vmatprep.subr.bf16.mxu1 %v2633_v51  ;;  %v2801_v13 = vunpack.c.h.s8.bf16 %v2458_v4  ;;  %v2457_v51 = vld [vmem:[#allocation13 + $0x390] sm:$0xff] }
 0x525   :  { %3256 = vmatprep.subr.bf16.mxu0 %v2745_v19  ;;  %v2513_v19 = vld [vmem:[#allocation13 + $0x550] sm:$0xff]  ;;  %v2800_v18 = vunpack.c.h.s8.bf16 %v2457_v51  ;;  %v2793_v52 = vunpack.c.l.s8.bf16 %v2457_v51 }
 0x527   :  { %3216 = vmatpush2.bf16.msra.mxu1 %v2632_v10  ;;  %v2912_v10 = vunpack.c.h.s8.bf16 %v2513_v19 }
 0x528   :  { %3257 = vmatpush2.bf16.msra.mxu0 %v2744_v22  ;;  %3217 = vmatprep.subr.bf16.mxu1 %v2626_v24  ;;  %v2794_v22 = vunpack.c.l.s8.bf16 %v2458_v4  ;;  %v2906_v24 = vunpack.c.l.s8.bf16 %v2514_v5  ;;  %v2542_v4 = vld [vmem:[#allocation13 + $0x638] sm:$0xff] }
 0x529   :  { %3258 = vmatprep.subr.bf16.mxu0 %v2738_v25  ;;  %v2507_v25 = vld [vmem:[#allocation13 + $0x520] sm:$0xff]  ;;  %v2969_v51 = vunpack.c.h.s8.bf16 %v2542_v4 }
 0x52b   :  { %3218 = vmatpush2.bf16.msra.mxu1 %v2625_v30  ;;  %v2905_v30 = vunpack.c.l.s8.bf16 %v2513_v19 }
 0x52c   :  { %3259 = vmatpush2.bf16.msra.mxu0 %v2737_v49  ;;  %3269 = vmatprep.subr.bf16.mxu1 %v2843_v56  ;;  %v2899_v49 = vunpack.c.h.s8.bf16 %v2507_v25  ;;  %v2506_v56 = vld [vmem:[#allocation13 + $0x518] sm:$0xff] }
 0x52d   :  { %3310 = vmatprep.subr.bf16.mxu0 %v2955_v11  ;;  %v2562_v11 = vld [vmem:[#allocation13 + $0x6d8] sm:$0xff]  ;;  %v2898_v47 = vunpack.c.h.s8.bf16 %v2506_v56  ;;  %v2891_v6 = vunpack.c.l.s8.bf16 %v2506_v56 }
 0x52e   :  { %3220 = vmatmul.mubr.bf16.vlgmr.msra.gmra.mxu1 %v4817_v2 }
 0x52f   :  { %3261 = vmatmul.mubr.bf16.vlgmr.msra.gmra.mxu0 %v4819_v32  ;;  %3270 = vmatpush1.bf16.msra.mxu1 %v2842_v28  ;;  %v3010_v28 = vunpack.c.h.s8.bf16 %v2562_v11 }
 0x530   :  { %3301 = vmatprep.mubr.bf16.mxu1 %v4827_v41  ;;  %3311 = vmatpush1.bf16.msra.mxu0 %v2954_v3  ;;  %v2892_v3 = vunpack.c.l.s8.bf16 %v2507_v25  ;;  %v2425_v25 = vld [vmem:[#allocation13 + $0x290] sm:$0xff] }
 0x531   :  { %3342 = vmatprep.mubr.bf16.mxu0 %v4829_v60  ;;  %3271 = vmatprep.subr.bf16.mxu1 %v2836_v29  ;;  %v3004_v29 = vunpack.c.l.s8.bf16 %v2563_v27  ;;  %v2733_v56 = vunpack.c.h.s8.bf16 %v2425_v25 }
 0x532   :  { %3312 = vmatprep.subr.bf16.mxu0 %v2948_v1  ;;  %v2556_v1 = vld [vmem:[#allocation13 + $0x6a8] sm:$0xff] }
 0x533   :  { %3272 = vmatpush1.bf16.msra.mxu1 %v2835_v8  ;;  %v3003_v8 = vunpack.c.l.s8.bf16 %v2562_v11  ;;  %v2997_v31 = vunpack.c.h.s8.bf16 %v2556_v1 }
 0x534   :  { %3313 = vmatpush1.bf16.msra.mxu0 %v2947_v40  ;;  %3273 = vmatprep.subr.bf16.mxu1 %v2829_v33  ;;  %v2885_v40 = vunpack.c.h.s8.bf16 %v2500_v12  ;;  %v2499_v33 = vld [vmem:[#allocation13 + $0x4e0] sm:$0xff] }
 0x535   :  { %3314 = vmatprep.subr.bf16.mxu0 %v2941_v50  ;;  %v2555_v50 = vld [vmem:[#allocation13 + $0x6a0] sm:$0xff]  ;;  %v2884_v38 = vunpack.c.h.s8.bf16 %v2499_v33  ;;  %v2877_v59 = vunpack.c.l.s8.bf16 %v2499_v33 }
 0x537   :  { %3274 = vmatpush1.bf16.msra.mxu1 %v2828_v45  ;;  %v2996_v45 = vunpack.c.h.s8.bf16 %v2555_v50 }
 0x538   :  { %3315 = vmatpush1.bf16.msra.mxu0 %v2940_v26  ;;  %3275 = vmatprep.subr.bf16.mxu1 %v2822_v46  ;;  %v2878_v26 = vunpack.c.l.s8.bf16 %v2500_v12  ;;  %v2990_v46 = vunpack.c.l.s8.bf16 %v2556_v1  ;;  %v2726_v1 = vunpack.c.l.s8.bf16 %v2425_v25 }
 0x539   :  { %3316 = vmatprep.subr.bf16.mxu0 %v2934_v55  ;;  %v2493_v55 = vld [vmem:[#allocation13 + $0x4b0] sm:$0xff] }
 0x53b   :  { %3276 = vmatpush1.bf16.msra.mxu1 %v2821_v63  ;;  %v2989_v63 = vunpack.c.l.s8.bf16 %v2555_v50 }
 0x53c   :  { %3317 = vmatpush1.bf16.msra.mxu0 %v2933_v48  ;;  %3277 = vmatprep.subr.bf16.mxu1 %v2815_v61  ;;  %v2871_v48 = vunpack.c.h.s8.bf16 %v2493_v55  ;;  %v2492_v61 = vld [vmem:[#allocation13 + $0x4a8] sm:$0xff] }
 0x53d   :  { %3318 = vmatprep.subr.bf16.mxu0 %v2927_v0  ;;  %v2548_v0 = vld [vmem:[#allocation13 + $0x668] sm:$0xff]  ;;  %v2870_v44 = vunpack.c.h.s8.bf16 %v2492_v61  ;;  %v2863_v5 = vunpack.c.l.s8.bf16 %v2492_v61 }
 0x53f   :  { %3278 = vmatpush1.bf16.msra.mxu1 %v2814_v43  ;;  %v2982_v43 = vunpack.c.h.s8.bf16 %v2548_v0 }
 0x540   :  { %3319 = vmatpush1.bf16.msra.mxu0 %v2926_v34  ;;  %3279 = vmatprep.subr.bf16.mxu1 %v2808_v20  ;;  %v2864_v34 = vunpack.c.l.s8.bf16 %v2493_v55  ;;  %v2976_v20 = vunpack.c.l.s8.bf16 %v2549_v57 }
 0x541   :  { %3320 = vmatprep.subr.bf16.mxu0 %v2920_v42  ;;  %v2486_v42 = vld [vmem:[#allocation13 + $0x478] sm:$0xff] }
 0x543   :  { %3280 = vmatpush1.bf16.msra.mxu1 %v2807_v7  ;;  %v2975_v7 = vunpack.c.l.s8.bf16 %v2548_v0  ;;  %v2355_v0 = vld [vmem:[#allocation13 + $0x60] sm:$0xff] }
 0x544   :  { %3321 = vmatpush1.bf16.msra.mxu0 %v2919_v39  ;;  %3281 = vmatprep.subr.bf16.mxu1 %v2801_v13  ;;  %v2857_v39 = vunpack.c.h.s8.bf16 %v2486_v42  ;;  %v2485_v13 = vld [vmem:[#allocation13 + $0x470] sm:$0xff] }
 0x545   :  { %3322 = vmatprep.subr.bf16.mxu0 %v2913_v17  ;;  %v2541_v17 = vld [vmem:[#allocation13 + $0x630] sm:$0xff]  ;;  %v2856_v19 = vunpack.c.h.s8.bf16 %v2485_v13  ;;  %v2849_v27 = vunpack.c.l.s8.bf16 %v2485_v13  ;;  %v2586_v13 = vunpack.c.l.s8.bf16 %v2355_v0 }
 0x547   :  { %3282 = vmatpush1.bf16.msra.mxu1 %v2800_v18  ;;  %v2968_v18 = vunpack.c.h.s8.bf16 %v2541_v17 }
 0x548   :  { %3323 = vmatpush1.bf16.msra.mxu0 %v2912_v10  ;;  %3283 = vmatprep.subr.bf16.mxu1 %v2794_v22  ;;  %v2850_v10 = vunpack.c.l.s8.bf16 %v2486_v42  ;;  %v2962_v22 = vunpack.c.l.s8.bf16 %v2542_v4  ;;  %v2354_v42 = vld [vmem:[#allocation13 + $0x58] sm:$0xff] }
 0x549   :  { %3324 = vmatprep.subr.bf16.mxu0 %v2906_v24  ;;  %v2369_v24 = vld [vmem:[#allocation13 + $0xd0] sm:$0xff] }
 0x54b   :  { %3284 = vmatpush1.bf16.msra.mxu1 %v2793_v52  ;;  %v2961_v52 = vunpack.c.l.s8.bf16 %v2541_v17  ;;  %v2348_v17 = vld [vmem:[#allocation13 + $0x28] sm:$0xff] }
 0x54c   :  { %3325 = vmatpush1.bf16.msra.mxu0 %v2905_v30  ;;  %3285 = vmatprep.subr.bf16.mxu1 %v2899_v49  ;;  %v2621_v30 = vunpack.c.h.s8.bf16 %v2369_v24  ;;  %v2368_v49 = vld [vmem:[#allocation13 + $0xc8] sm:$0xff] }
 0x54d   :  { %3326 = vmatprep.subr.bf16.mxu0 %v3011_v53  ;;  %v2424_v53 = vld [vmem:[#allocation13 + $0x288] sm:$0xff]  ;;  %v2620_v11 = vunpack.c.h.s8.bf16 %v2368_v49 }
 0x54f   :  { %3286 = vmatpush2.bf16.msra.mxu1 %v2898_v47  ;;  %v2732_v47 = vunpack.c.h.s8.bf16 %v2424_v53 }
 0x550   :  { %3327 = vmatpush2.bf16.msra.mxu0 %v3010_v28  ;;  %3287 = vmatprep.subr.bf16.mxu1 %v2892_v3  ;;  %v2614_v28 = vunpack.c.l.s8.bf16 %v2369_v24  ;;  %v2362_v3 = vld [vmem:[#allocation13 + $0x98] sm:$0xff]  ;;  %v2347_v24 = vld [vmem:[#allocation13 + $0x20] sm:$0xff] }
 0x551   :  { %3328 = vmatprep.subr.bf16.mxu0 %v3004_v29  ;;  %v2607_v50 = vunpack.c.h.s8.bf16 %v2362_v3  ;;  %v2600_v61 = vunpack.c.l.s8.bf16 %v2362_v3 }
 0x553   :  { %3288 = vmatpush2.bf16.msra.mxu1 %v2891_v6  ;;  %v2418_v6 = vld [vmem:[#allocation13 + $0x258] sm:$0xff] }
 0x554   :  { %3329 = vmatpush2.bf16.msra.mxu0 %v3003_v8  ;;  %3289 = vmatprep.subr.bf16.mxu1 %v2885_v40  ;;  %v2613_v8 = vunpack.c.l.s8.bf16 %v2368_v49  ;;  %v2572_v49 = vunpack.c.l.s8.bf16 %v2348_v17 }
 0x555   :  { %3330 = vmatprep.subr.bf16.mxu0 %v2997_v31  ;;  %v2725_v31 = vunpack.c.l.s8.bf16 %v2424_v53  ;;  %v2397_v53 = vld [vmem:[#allocation13 + $0x1b0] sm:$0xff] }
 0x556   :  { %v2677_v3 = vunpack.c.h.s8.bf16 %v2397_v53 }
 0x557   :  { %3290 = vmatpush2.bf16.msra.mxu1 %v2884_v38  ;;  %v2361_v38 = vld [vmem:[#allocation13 + $0x90] sm:$0xff] }
 0x558   :  { %3331 = vmatpush2.bf16.msra.mxu0 %v2996_v45  ;;  %3291 = vmatprep.subr.bf16.mxu1 %v2878_v26  ;;  %v2719_v45 = vunpack.c.h.s8.bf16 %v2418_v6  ;;  %v2417_v26 = vld [vmem:[#allocation13 + $0x250] sm:$0xff]  ;;  %v2606_v57 = vunpack.c.h.s8.bf16 %v2361_v38 }
 0x559   :  { %3332 = vmatprep.subr.bf16.mxu0 %v2990_v46 }
 0x55b   :  { %3292 = vmatpush2.bf16.msra.mxu1 %v2877_v59 }
 0x55c   :  { %3333 = vmatpush2.bf16.msra.mxu0 %v2989_v63  ;;  %3293 = vmatprep.subr.bf16.mxu1 %v2871_v48  ;;  %v2718_v48 = vunpack.c.h.s8.bf16 %v2417_v26 }
 0x55d   :  { %3334 = vmatprep.subr.bf16.mxu0 %v2983_v9  ;;  %v2712_v9 = vunpack.c.l.s8.bf16 %v2418_v6 }
 0x55f   :  { %3294 = vmatpush2.bf16.msra.mxu1 %v2870_v44  ;;  %v2411_v44 = vld [vmem:[#allocation13 + $0x220] sm:$0xff] }
 0x560   :  { %3335 = vmatpush2.bf16.msra.mxu0 %v2982_v43  ;;  %3295 = vmatprep.subr.bf16.mxu1 %v2864_v34  ;;  %v2599_v43 = vunpack.c.l.s8.bf16 %v2361_v38  ;;  %v2711_v34 = vunpack.c.l.s8.bf16 %v2417_v26  ;;  %v2705_v4 = vunpack.c.h.s8.bf16 %v2411_v44  ;;  %v2670_v38 = vunpack.c.l.s8.bf16 %v2397_v53  ;;  %v2390_v26 = vld [vmem:[#allocation13 + $0x178] sm:$0xff] }
 0x561   :  { %3336 = vmatprep.subr.bf16.mxu0 %v2976_v20  ;;  %v2593_v20 = vunpack.c.h.s8.bf16 %v2355_v0 }
 0x563   :  { %3296 = vmatpush2.bf16.msra.mxu1 %v2863_v5  ;;  %v2410_v5 = vld [vmem:[#allocation13 + $0x218] sm:$0xff] }
 0x564   :  { %3337 = vmatpush2.bf16.msra.mxu0 %v2975_v7  ;;  %3297 = vmatprep.subr.bf16.mxu1 %v2857_v39  ;;  %v2592_v7 = vunpack.c.h.s8.bf16 %v2354_v42  ;;  %v2704_v39 = vunpack.c.h.s8.bf16 %v2410_v5 }
 0x565   :  { %3338 = vmatprep.subr.bf16.mxu0 %v2969_v51  ;;  %v2698_v51 = vunpack.c.l.s8.bf16 %v2411_v44  ;;  %v2656_v44 = vunpack.c.l.s8.bf16 %v2390_v26 }
 0x567   :  { %3298 = vmatpush2.bf16.msra.mxu1 %v2856_v19  ;;  %v2404_v19 = vld [vmem:[#allocation13 + $0x1e8] sm:$0xff] }
 0x568   :  { %3339 = vmatpush2.bf16.msra.mxu0 %v2968_v18  ;;  %3299 = vmatprep.subr.bf16.mxu1 %v2850_v10  ;;  %v2585_v18 = vunpack.c.l.s8.bf16 %v2354_v42  ;;  %v2697_v10 = vunpack.c.l.s8.bf16 %v2410_v5  ;;  %v2691_v25 = vunpack.c.h.s8.bf16 %v2404_v19 }
 0x569   :  { %3340 = vmatprep.subr.bf16.mxu0 %v2962_v22  ;;  %v2579_v22 = vunpack.c.h.s8.bf16 %v2348_v17 }
 0x56b   :  { %3300 = vmatpush2.bf16.msra.mxu1 %v2849_v27  ;;  %v2403_v27 = vld [vmem:[#allocation13 + $0x1e0] sm:$0xff] }
 0x56c   :  { %3341 = vmatpush2.bf16.msra.mxu0 %v2961_v52  ;;  %3351 = vmatprep.subr.bf16.mxu1 %v2621_v30  ;;  %v2578_v52 = vunpack.c.h.s8.bf16 %v2347_v24  ;;  %v2690_v30 = vunpack.c.h.s8.bf16 %v2403_v27 }
 0x56d   :  { %3392 = vmatprep.subr.bf16.mxu0 %v2733_v56  ;;  %v2684_v56 = vunpack.c.l.s8.bf16 %v2404_v19 }
 0x56e   :  { %3302 = vmatmul.mubr.bf16.vlgmr.msra.gmra.mxu1 %v4835_v15  ;;  %v4850_v29 = vpop.f32.mrf.mxu1  ;;  %v4852_v12 = vpop.f32.mrf.mxu0 }
 0x56f   :  { %3343 = vmatmul.mubr.bf16.vlgmr.msra.gmra.mxu0 %v4839_v54  ;;  %3352 = vmatpush1.bf16.msra.mxu1 %v2620_v11  ;;  %v2453_v11 = vld [vmem:[#allocation13 + $0x370] sm:$0xff] }
 0x570   :  { %3383 = vmatprep.mubr.bf16.mxu1 %v4813_v35  ;;  %3393 = vmatpush1.bf16.msra.mxu0 %v2732_v47  ;;  %v4856_v40 = vpop.f32.mrf.mxu1  ;;  %v4858_v33 = vpop.f32.mrf.mxu0  ;;  %v2571_v47 = vunpack.c.l.s8.bf16 %v2347_v24  ;;  %v2789_v6 = vunpack.c.h.s8.bf16 %v2453_v11 }
 0x571   :  { %3424 = vmatprep.mubr.bf16.mxu0 %v4815_v37  ;;  %3353 = vmatprep.subr.bf16.mxu1 %v2614_v28  ;;  %v2683_v28 = vunpack.c.l.s8.bf16 %v2403_v27 }
 0x572   :  { %3394 = vmatprep.subr.bf16.mxu0 %v2726_v1  ;;  %v3061_v46 = vpop.f32.mrf.mxu1  ;;  %v3102_v55 = vpop.f32.mrf.mxu0  ;;  %v2396_v1 = vld [vmem:[#allocation13 + $0x1a8] sm:$0xff] }
 0x573   :  { %3354 = vmatpush1.bf16.msra.mxu1 %v2613_v8  ;;  %v2452_v8 = vld [vmem:[#allocation13 + $0x368] sm:$0xff]  ;;  %v2446_v46 = vld [vmem:[#allocation13 + $0x338] sm:$0xff]  ;;  %v2669_v55 = vunpack.c.l.s8.bf16 %v2396_v1 }
 0x574   :  { %3395 = vmatpush1.bf16.msra.mxu0 %v2725_v31  ;;  %v3062_v59 = vpop.f32.mrf.mxu1  ;;  %v3103_v63 = vpop.f32.mrf.mxu0  ;;  %3355 = vmatprep.subr.bf16.mxu1 %v2607_v50  ;;  %v2676_v31 = vunpack.c.h.s8.bf16 %v2396_v1  ;;  %v2788_v50 = vunpack.c.h.s8.bf16 %v2452_v8 }
 0x575   :  { %3396 = vmatprep.subr.bf16.mxu0 %v2719_v45  ;;  %v2782_v45 = vunpack.c.l.s8.bf16 %v2453_v11  ;;  %v2663_v59 = vunpack.c.h.s8.bf16 %v2390_v26  ;;  %v2389_v63 = vld [vmem:[#allocation13 + $0x170] sm:$0xff]  ;;  %v4861_v26 = vld [vmem:[#allocation15] sm:$0xff] }
 0x576   :  { %v2655_v42 = vunpack.c.l.s8.bf16 %v2389_v63 }
 0x577   :  { %3356 = vmatpush1.bf16.msra.mxu1 %v2606_v57  ;;  %v2781_v57 = vunpack.c.l.s8.bf16 %v2452_v8 }
 0x578   :  { %3397 = vmatpush1.bf16.msra.mxu0 %v2718_v48  ;;  %3357 = vmatprep.subr.bf16.mxu1 %v2600_v61  ;;  %v2775_v48 = vunpack.c.h.s8.bf16 %v2446_v46  ;;  %v2445_v61 = vld [vmem:[#allocation13 + $0x330] sm:$0xff] }
 0x579   :  { %3398 = vmatprep.subr.bf16.mxu0 %v2712_v9  ;;  %v2662_v9 = vunpack.c.h.s8.bf16 %v2389_v63  ;;  %v2774_v0 = vunpack.c.h.s8.bf16 %v2445_v61  ;;  %v2474_v63 = vld [vmem:[#allocation13 + $0x418] sm:$0xff] }
 0x57b   :  { %3358 = vmatpush1.bf16.msra.mxu1 %v2599_v43  ;;  %v2768_v43 = vunpack.c.l.s8.bf16 %v2446_v46 }
 0x57c   :  { %3399 = vmatpush1.bf16.msra.mxu0 %v2711_v34  ;;  %3359 = vmatprep.subr.bf16.mxu1 %v2593_v20  ;;  %v2383_v34 = vld [vmem:[#allocation13 + $0x140] sm:$0xff] }
 0x57d   :  { %3400 = vmatprep.subr.bf16.mxu0 %v2705_v4  ;;  %v2439_v20 = vld [vmem:[#allocation13 + $0x300] sm:$0xff]  ;;  %v2767_v4 = vunpack.c.l.s8.bf16 %v2445_v61  ;;  %v2649_v5 = vunpack.c.h.s8.bf16 %v2383_v34  ;;  %v2642_v19 = vunpack.c.l.s8.bf16 %v2383_v34  ;;  %v3680_v34 = vrot.slane %v4861_v26, %v4495_v21 }
 0x57f   :  { %3360 = vmatpush1.bf16.msra.mxu1 %v2592_v7  ;;  %v2382_v7 = vld [vmem:[#allocation13 + $0x138] sm:$0xff] }
 0x580   :  { %3401 = vmatpush1.bf16.msra.mxu0 %v2704_v39  ;;  %3361 = vmatprep.subr.bf16.mxu1 %v2586_v13  ;;  %v2761_v39 = vunpack.c.h.s8.bf16 %v2439_v20  ;;  %v2438_v13 = vld [vmem:[#allocation13 + $0x2f8] sm:$0xff]  ;;  %v2641_v24 = vunpack.c.l.s8.bf16 %v2382_v7 }
 0x581   :  { %3402 = vmatprep.subr.bf16.mxu0 %v2698_v51  ;;  %v2648_v51 = vunpack.c.h.s8.bf16 %v2382_v7  ;;  %v2760_v17 = vunpack.c.h.s8.bf16 %v2438_v13  ;;  %v2473_v7 = vld [vmem:[#allocation13 + $0x410] sm:$0xff] }
 0x583   :  { %3362 = vmatpush1.bf16.msra.mxu1 %v2585_v18  ;;  %v2754_v18 = vunpack.c.l.s8.bf16 %v2439_v20 }
 0x584   :  { %3403 = vmatpush1.bf16.msra.mxu0 %v2697_v10  ;;  %3363 = vmatprep.subr.bf16.mxu1 %v2579_v22  ;;  %v2376_v10 = vld [vmem:[#allocation13 + $0x108] sm:$0xff] }
 0x585   :  { %3404 = vmatprep.subr.bf16.mxu0 %v2691_v25  ;;  %v2432_v22 = vld [vmem:[#allocation13 + $0x2c8] sm:$0xff]  ;;  %v2753_v25 = vunpack.c.l.s8.bf16 %v2438_v13  ;;  %v2635_v27 = vunpack.c.h.s8.bf16 %v2376_v10  ;;  %v2628_v11 = vunpack.c.l.s8.bf16 %v2376_v10 }
 0x587   :  { %3364 = vmatpush1.bf16.msra.mxu1 %v2578_v52  ;;  %v2375_v52 = vld [vmem:[#allocation13 + $0x100] sm:$0xff] }
 0x588   :  { %3405 = vmatpush1.bf16.msra.mxu0 %v2690_v30  ;;  %3365 = vmatprep.subr.bf16.mxu1 %v2572_v49  ;;  %v2747_v30 = vunpack.c.h.s8.bf16 %v2432_v22  ;;  %v2431_v49 = vld [vmem:[#allocation13 + $0x2c0] sm:$0xff]  ;;  %v2627_v1 = vunpack.c.l.s8.bf16 %v2375_v52 }
 0x589   :  { %3406 = vmatprep.subr.bf16.mxu0 %v2684_v56  ;;  %v2634_v56 = vunpack.c.h.s8.bf16 %v2375_v52  ;;  %v2746_v53 = vunpack.c.h.s8.bf16 %v2431_v49  ;;  %v2824_v52 = vunpack.c.l.s8.bf16 %v2474_v63 }
 0x58b   :  { %3366 = vmatpush1.bf16.msra.mxu1 %v2571_v47  ;;  %v2740_v47 = vunpack.c.l.s8.bf16 %v2432_v22  ;;  %v2830_v22 = vunpack.c.h.s8.bf16 %v2473_v7 }
 0x58c   :  { %3407 = vmatpush1.bf16.msra.mxu0 %v2683_v28  ;;  %3367 = vmatprep.subr.bf16.mxu1 %v2677_v3  ;;  %v2481_v28 = vld [vmem:[#allocation13 + $0x450] sm:$0xff] }
 0x58d   :  { %3408 = vmatprep.subr.bf16.mxu0 %v2789_v6  ;;  %v2537_v3 = vld [vmem:[#allocation13 + $0x610] sm:$0xff]  ;;  %v2739_v6 = vunpack.c.l.s8.bf16 %v2431_v49  ;;  %v2845_v8 = vunpack.c.h.s8.bf16 %v2481_v28 }
 0x58f   :  { %3368 = vmatpush2.bf16.msra.mxu1 %v2676_v31  ;;  %v2480_v31 = vld [vmem:[#allocation13 + $0x448] sm:$0xff] }
 0x590   :  { %3409 = vmatpush2.bf16.msra.mxu0 %v2788_v50  ;;  %3369 = vmatprep.subr.bf16.mxu1 %v2670_v38  ;;  %v2957_v50 = vunpack.c.h.s8.bf16 %v2537_v3  ;;  %v2536_v38 = vld [vmem:[#allocation13 + $0x608] sm:$0xff] }
 0x591   :  { %3410 = vmatprep.subr.bf16.mxu0 %v2782_v45  ;;  %v2844_v45 = vunpack.c.h.s8.bf16 %v2480_v31  ;;  %v2956_v46 = vunpack.c.h.s8.bf16 %v2536_v38 }
 0x593   :  { %3370 = vmatpush2.bf16.msra.mxu1 %v2669_v55  ;;  %v3099_v55 = vadd.f32 %v4852_v12, %v4850_v29  ;;  %v2837_v29 = vunpack.c.l.s8.bf16 %v2480_v31 }
 0x594   :  { %3411 = vmatpush2.bf16.msra.mxu0 %v2781_v57  ;;  %3371 = vmatprep.subr.bf16.mxu1 %v2663_v59  ;;  %v4865_v57 = vld [vmem:[#allocation16] sm:$0xff]  ;;  %v2838_v59 = vunpack.c.l.s8.bf16 %v2481_v28  ;;  %v2823_v28 = vunpack.c.l.s8.bf16 %v2473_v7 }
 0x595   :  { %3412 = vmatprep.subr.bf16.mxu0 %v2775_v48  ;;  %v3724_v12 = vrot.slane %v4865_v57, %v4495_v21  ;;  %v3728_v10 = vrot.slane %v4865_v57, %v4498_v23 }
 0x597   :  { %3372 = vmatpush2.bf16.msra.mxu1 %v2662_v9  ;;  %v2950_v9 = vunpack.c.l.s8.bf16 %v2537_v3 }
 0x598   :  { %3413 = vmatpush2.bf16.msra.mxu0 %v2774_v0  ;;  %3373 = vmatprep.subr.bf16.mxu1 %v2656_v44  ;;  %v2530_v0 = vld [vmem:[#allocation13 + $0x5d8] sm:$0xff]  ;;  %v3101_v44 = vadd.f32 %v4858_v33, %v4856_v40 }
 0x599   :  { %3414 = vmatprep.subr.bf16.mxu0 %v2768_v43  ;;  %v2943_v13 = vunpack.c.h.s8.bf16 %v2530_v0 }
 0x59b   :  { %3374 = vmatpush2.bf16.msra.mxu1 %v2655_v42 }
 0x59c   :  { %3415 = vmatpush2.bf16.msra.mxu0 %v2767_v4  ;;  %3375 = vmatprep.subr.bf16.mxu1 %v2649_v5  ;;  %v2949_v4 = vunpack.c.l.s8.bf16 %v2536_v38  ;;  %v2831_v5 = vunpack.c.h.s8.bf16 %v2474_v63 }
 0x59d   :  { %3416 = vmatprep.subr.bf16.mxu0 %v2761_v39  ;;  %v3684_v39 = vrot.slane %v4861_v26, %v4498_v23 }
 0x59f   :  { %3376 = vmatpush2.bf16.msra.mxu1 %v2648_v51  ;;  %v2529_v51 = vld [vmem:[#allocation13 + $0x5d0] sm:$0xff] }
 0x5a0   :  { %3417 = vmatpush2.bf16.msra.mxu0 %v2760_v17  ;;  %3377 = vmatprep.subr.bf16.mxu1 %v2642_v19  ;;  %v2935_v23 = vunpack.c.l.s8.bf16 %v2529_v51 }
 0x5a1   :  { %3418 = vmatprep.subr.bf16.mxu0 %v2754_v18 }
 0x5a3   :  { %3378 = vmatpush2.bf16.msra.mxu1 %v2641_v24 }
 0x5a4   :  { %3419 = vmatpush2.bf16.msra.mxu0 %v2753_v25  ;;  %3379 = vmatprep.subr.bf16.mxu1 %v2635_v27  ;;  %v2942_v27 = vunpack.c.h.s8.bf16 %v2529_v51 }
 0x5a5   :  { %3420 = vmatprep.subr.bf16.mxu0 %v2747_v30 }
 0x5a7   :  { %3380 = vmatpush2.bf16.msra.mxu1 %v2634_v56  ;;  %v2936_v56 = vunpack.c.l.s8.bf16 %v2530_v0  ;;  %v2515_v0 = vld [vmem:[#allocation13 + $0x560] sm:$0xff] }
 0x5a8   :  { %3421 = vmatpush2.bf16.msra.mxu0 %v2746_v53  ;;  %3381 = vmatprep.subr.bf16.mxu1 %v2628_v11  ;;  %v2467_v53 = vld [vmem:[#allocation13 + $0x3e0] sm:$0xff]  ;;  %v2907_v7 = vunpack.c.l.s8.bf16 %v2515_v0 }
 0x5a9   :  { %3422 = vmatprep.subr.bf16.mxu0 %v2740_v47  ;;  %v2523_v11 = vld [vmem:[#allocation13 + $0x5a0] sm:$0xff]  ;;  %v2817_v3 = vunpack.c.h.s8.bf16 %v2467_v53  ;;  %v2810_v38 = vunpack.c.l.s8.bf16 %v2467_v53 }
 0x5ab   :  { %3382 = vmatpush2.bf16.msra.mxu1 %v2627_v1  ;;  %v2466_v1 = vld [vmem:[#allocation13 + $0x3d8] sm:$0xff] }
 0x5ac   :  { %3423 = vmatpush2.bf16.msra.mxu0 %v2739_v6  ;;  %3433 = vmatprep.subr.bf16.mxu1 %v2845_v8  ;;  %v2929_v6 = vunpack.c.h.s8.bf16 %v2523_v11  ;;  %v2522_v8 = vld [vmem:[#allocation13 + $0x598] sm:$0xff]  ;;  %v2816_v31 = vunpack.c.h.s8.bf16 %v2466_v1 }
 0x5ad   :  { %3474 = vmatprep.subr.bf16.mxu0 %v2957_v50  ;;  %v2928_v50 = vunpack.c.h.s8.bf16 %v2522_v8  ;;  %v2921_v63 = vunpack.c.l.s8.bf16 %v2522_v8 }
 0x5ae   :  { %v3139_v48 = vpop.f32.mrf.mxu1  ;;  %v3180_v61 = vpop.f32.mrf.mxu0  ;;  %3384 = vmatmul.mubr.bf16.vlgmr.msra.gmra.mxu1 %v4817_v2 }
 0x5af   :  { %v3140_v43 = vadd.f32 %v3139_v48, %v3099_v55  ;;  %3425 = vmatmul.mubr.bf16.vlgmr.msra.gmra.mxu0 %v4819_v32  ;;  %3434 = vmatpush1.bf16.msra.mxu1 %v2844_v45  ;;  %v2922_v45 = vunpack.c.l.s8.bf16 %v2523_v11  ;;  %v2516_v55 = vld [vmem:[#allocation13 + $0x568] sm:$0xff] }
 0x5b0   :  { %3465 = vmatprep.mubr.bf16.mxu1 %v4827_v41  ;;  %3475 = vmatpush1.bf16.msra.mxu0 %v2956_v46  ;;  %v3141_v20 = vpop.f32.mrf.mxu1  ;;  %v3182_v42 = vpop.f32.mrf.mxu0  ;;  %v2460_v46 = vld [vmem:[#allocation13 + $0x3a8] sm:$0xff] }
 0x5b1   :  { %v3181_v40 = vadd.f32 %v3180_v61, %v3140_v43  ;;  %3506 = vmatprep.mubr.bf16.mxu0 %v4829_v60  ;;  %v3142_v33 = vadd.f32 %v3141_v20, %v3101_v44  ;;  %3435 = vmatprep.subr.bf16.mxu1 %v2838_v59  ;;  %v2809_v59 = vunpack.c.l.s8.bf16 %v2466_v1  ;;  %v2803_v48 = vunpack.c.h.s8.bf16 %v2460_v46  ;;  %v2459_v61 = vld [vmem:[#allocation13 + $0x3a0] sm:$0xff]  ;;  %v2509_v20 = vld [vmem:[#allocation13 + $0x530] sm:$0xff] }
 0x5b2   :  { %v3143_v17 = vpop.f32.mrf.mxu1  ;;  %v3184_v21 = vpop.f32.mrf.mxu0  ;;  %3476 = vmatprep.subr.bf16.mxu0 %v2950_v9  ;;  %v2915_v9 = vunpack.c.h.s8.bf16 %v2516_v55  ;;  %v2802_v44 = vunpack.c.h.s8.bf16 %v2459_v61 }
 0x5b3   :  { %v3712_v19 = vmul.f32 %v3680_v34, %v3181_v40  ;;  %v3183_v18 = vadd.f32 %v3182_v42, %v3142_v33  ;;  %3436 = vmatpush1.bf16.msra.mxu1 %v2837_v29  ;;  %v2914_v34 = vunpack.c.h.s8.bf16 %v2515_v0  ;;  %v2796_v29 = vunpack.c.l.s8.bf16 %v2460_v46  ;;  %v2508_v33 = vld [vmem:[#allocation13 + $0x528] sm:$0xff] }
 0x5b4   :  { %3477 = vmatpush1.bf16.msra.mxu0 %v2949_v4  ;;  %v3144_v24 = vpop.f32.mrf.mxu1  ;;  %v3185_v25 = vpop.f32.mrf.mxu0  ;;  %3437 = vmatprep.subr.bf16.mxu1 %v2831_v5  ;;  %v2565_v4 = vld [vmem:[#allocation13 + $0x6f0] sm:$0xff]  ;;  %v2795_v5 = vunpack.c.l.s8.bf16 %v2459_v61  ;;  %v2901_v40 = vunpack.c.h.s8.bf16 %v2509_v20  ;;  %v2900_v51 = vunpack.c.h.s8.bf16 %v2508_v33  ;;  %v2894_v21 = vunpack.c.l.s8.bf16 %v2509_v20  ;;  %v2398_v20 = vld [vmem:[#allocation13 + $0x1b8] sm:$0xff] }
 0x5b5   :  { %v3756_v30 = vadd.f32 %v3724_v12, %v3712_v19  ;;  %v3713_v49 = vmul.f32 %v3684_v39, %v3183_v18  ;;  %3478 = vmatprep.subr.bf16.mxu0 %v2943_v13  ;;  %v2908_v12 = vunpack.c.l.s8.bf16 %v2516_v55  ;;  %v3013_v39 = vunpack.c.h.s8.bf16 %v2565_v4  ;;  %v2564_v13 = vld [vmem:[#allocation13 + $0x6e8] sm:$0xff]  ;;  %v2502_v18 = vld [vmem:[#allocation13 + $0x4f8] sm:$0xff] }
 0x5b6   :  { %v3012_v17 = vunpack.c.h.s8.bf16 %v2564_v13  ;;  %v3006_v19 = vunpack.c.l.s8.bf16 %v2565_v4  ;;  %v3005_v24 = vunpack.c.l.s8.bf16 %v2564_v13  ;;  %v2887_v25 = vunpack.c.h.s8.bf16 %v2502_v18  ;;  %v2488_v55 = vld [vmem:[#allocation13 + $0x488] sm:$0xff] }
 0x5b7   :  { %4123 = vtanh.f32 %v3756_v30  ;;  %v3757_v47 = vadd.f32 %v3728_v10, %v3713_v49  ;;  %3438 = vmatpush1.bf16.msra.mxu1 %v2830_v22  ;;  %v2558_v10 = vld [vmem:[#allocation13 + $0x6b8] sm:$0xff]  ;;  %v2893_v22 = vunpack.c.l.s8.bf16 %v2508_v33  ;;  %v2557_v30 = vld [vmem:[#allocation13 + $0x6b0] sm:$0xff]  ;;  %v2880_v53 = vunpack.c.l.s8.bf16 %v2502_v18 }
 0x5b8   :  { %3479 = vmatpush1.bf16.msra.mxu0 %v2942_v27  ;;  %3439 = vmatprep.subr.bf16.mxu1 %v2824_v52  ;;  %v2501_v27 = vld [vmem:[#allocation13 + $0x4f0] sm:$0xff]  ;;  %v2999_v52 = vunpack.c.h.s8.bf16 %v2558_v10  ;;  %v2992_v11 = vunpack.c.l.s8.bf16 %v2558_v10  ;;  %v2859_v61 = vunpack.c.h.s8.bf16 %v2488_v55  ;;  %v2447_v10 = vld [vmem:[#allocation13 + $0x340] sm:$0xff] }
 0x5b9   :  { %4125 = vtanh.f32 %v3757_v47  ;;  %3480 = vmatprep.subr.bf16.mxu0 %v2936_v56  ;;  %v2886_v49 = vunpack.c.h.s8.bf16 %v2501_v27  ;;  %v2998_v56 = vunpack.c.h.s8.bf16 %v2557_v30  ;;  %v2495_v47 = vld [vmem:[#allocation13 + $0x4c0] sm:$0xff] }
 0x5ba   :  { %v2873_v1 = vunpack.c.h.s8.bf16 %v2495_v47 }
 0x5bb   :  { %3440 = vmatpush1.bf16.msra.mxu1 %v2823_v28  ;;  %v2551_v28 = vld [vmem:[#allocation13 + $0x680] sm:$0xff] }
 0x5bc   :  { %3481 = vmatpush1.bf16.msra.mxu0 %v2935_v23  ;;  %3441 = vmatprep.subr.bf16.mxu1 %v2817_v3  ;;  %v2879_v23 = vunpack.c.l.s8.bf16 %v2501_v27  ;;  %v2991_v3 = vunpack.c.l.s8.bf16 %v2557_v30  ;;  %v2985_v8 = vunpack.c.h.s8.bf16 %v2551_v28  ;;  %v2978_v46 = vunpack.c.l.s8.bf16 %v2551_v28  ;;  %v2363_v30 = vld [vmem:[#allocation13 + $0xa0] sm:$0xff] }
 0x5bd   :  { %3482 = vmatprep.subr.bf16.mxu0 %v2929_v6  ;;  %v2494_v6 = vld [vmem:[#allocation13 + $0x4b8] sm:$0xff]  ;;  %v2608_v28 = vunpack.c.h.s8.bf16 %v2363_v30 }
 0x5bf   :  { %3442 = vmatpush1.bf16.msra.mxu1 %v2816_v31  ;;  %v2550_v31 = vld [vmem:[#allocation13 + $0x678] sm:$0xff] }
 0x5c0   :  { %3483 = vmatpush1.bf16.msra.mxu0 %v2928_v50  ;;  %3443 = vmatprep.subr.bf16.mxu1 %v2810_v38  ;;  %v2872_v50 = vunpack.c.h.s8.bf16 %v2494_v6  ;;  %v2984_v38 = vunpack.c.h.s8.bf16 %v2550_v31 }
 0x5c1   :  { %3484 = vmatprep.subr.bf16.mxu0 %v2922_v45  ;;  %v2866_v45 = vunpack.c.l.s8.bf16 %v2495_v47 }
 0x5c3   :  { %3444 = vmatpush1.bf16.msra.mxu1 %v2809_v59  ;;  %v2544_v59 = vld [vmem:[#allocation13 + $0x648] sm:$0xff] }
 0x5c4   :  { %v4124_v43 = vpop.eup %4123  ;;  %3485 = vmatpush1.bf16.msra.mxu0 %v2921_v63  ;;  %3445 = vmatprep.subr.bf16.mxu1 %v2803_v48  ;;  %v2865_v63 = vunpack.c.l.s8.bf16 %v2494_v6  ;;  %v2977_v48 = vunpack.c.l.s8.bf16 %v2550_v31  ;;  %v2971_v0 = vunpack.c.h.s8.bf16 %v2544_v59  ;;  %v2769_v6 = vunpack.c.l.s8.bf16 %v2447_v10 }
 0x5c5   :  { %3770 = vst [vmem:[%s4961_s17] sm:$0xff] %v4124_v43  ;;  %3486 = vmatprep.subr.bf16.mxu0 %v2915_v9  ;;  %v2487_v9 = vld [vmem:[#allocation13 + $0x480] sm:$0xff]  ;;  %v2601_v31 = vunpack.c.l.s8.bf16 %v2363_v30 }
 0x5c6   :  { %v4126_v42 = vpop.eup %4125  ;;  %v2858_v43 = vunpack.c.h.s8.bf16 %v2487_v9  ;;  %v2851_v4 = vunpack.c.l.s8.bf16 %v2487_v9  ;;  %v2377_v9 = vld [vmem:[#allocation13 + $0x110] sm:$0xff] }
 0x5c7   :  { %3771 = vst [vmem:[%s4961_s17 + $0x8] sm:$0xff] %v4126_v42  ;;  %3446 = vmatpush1.bf16.msra.mxu1 %v2802_v44  ;;  %v2543_v44 = vld [vmem:[#allocation13 + $0x640] sm:$0xff]  ;;  %v2454_v42 = vld [vmem:[#allocation13 + $0x378] sm:$0xff] }
 0x5c8   :  { %3487 = vmatpush1.bf16.msra.mxu0 %v2914_v34  ;;  %3447 = vmatprep.subr.bf16.mxu1 %v2796_v29  ;;  %v2970_v34 = vunpack.c.h.s8.bf16 %v2543_v44  ;;  %v2852_v29 = vunpack.c.l.s8.bf16 %v2488_v55  ;;  %v2790_v33 = vunpack.c.h.s8.bf16 %v2454_v42  ;;  %v2783_v18 = vunpack.c.l.s8.bf16 %v2454_v42  ;;  %v2412_v55 = vld [vmem:[#allocation13 + $0x228] sm:$0xff] }
 0x5c9   :  { %3488 = vmatprep.subr.bf16.mxu0 %v2908_v12  ;;  %v2964_v12 = vunpack.c.l.s8.bf16 %v2544_v59 }
 0x5cb   :  { %3448 = vmatpush1.bf16.msra.mxu1 %v2795_v5  ;;  %v2963_v5 = vunpack.c.l.s8.bf16 %v2543_v44 }
 0x5cc   :  { %3489 = vmatpush1.bf16.msra.mxu0 %v2907_v7  ;;  %3449 = vmatprep.subr.bf16.mxu1 %v2901_v40  ;;  %v2678_v7 = vunpack.c.h.s8.bf16 %v2398_v20  ;;  %v2370_v40 = vld [vmem:[#allocation13 + $0xd8] sm:$0xff] }
 0x5cd   :  { %3490 = vmatprep.subr.bf16.mxu0 %v3013_v39  ;;  %v2426_v39 = vld [vmem:[#allocation13 + $0x298] sm:$0xff]  ;;  %v2622_v13 = vunpack.c.h.s8.bf16 %v2370_v40 }
 0x5ce   :  { %v2727_v27 = vunpack.c.l.s8.bf16 %v2426_v39 }
 0x5cf   :  { %3450 = vmatpush2.bf16.msra.mxu1 %v2900_v51  ;;  %v2734_v51 = vunpack.c.h.s8.bf16 %v2426_v39 }
 0x5d0   :  { %3491 = vmatpush2.bf16.msra.mxu0 %v3012_v17  ;;  %3451 = vmatprep.subr.bf16.mxu1 %v2894_v21  ;;  %v2671_v17 = vunpack.c.l.s8.bf16 %v2398_v20  ;;  %v2391_v21 = vld [vmem:[#allocation13 + $0x180] sm:$0xff]  ;;  %v2405_v20 = vld [vmem:[#allocation13 + $0x1f0] sm:$0xff] }
 0x5d1   :  { %3492 = vmatprep.subr.bf16.mxu0 %v3006_v19 }
 0x5d3   :  { %3452 = vmatpush2.bf16.msra.mxu1 %v2893_v22 }
 0x5d4   :  { %3493 = vmatpush2.bf16.msra.mxu0 %v3005_v24  ;;  %3453 = vmatprep.subr.bf16.mxu1 %v2887_v25  ;;  %v2615_v24 = vunpack.c.l.s8.bf16 %v2370_v40  ;;  %v2510_v40 = vld [vmem:[#allocation13 + $0x538] sm:$0xff] }
 0x5d5   :  { %3494 = vmatprep.subr.bf16.mxu0 %v2999_v52  ;;  %v2664_v52 = vunpack.c.h.s8.bf16 %v2391_v21 }
 0x5d7   :  { %3454 = vmatpush2.bf16.msra.mxu1 %v2886_v49 }
 0x5d8   :  { %3495 = vmatpush2.bf16.msra.mxu0 %v2998_v56  ;;  %3455 = vmatprep.subr.bf16.mxu1 %v2880_v53  ;;  %v2776_v56 = vunpack.c.h.s8.bf16 %v2447_v10  ;;  %v2419_v53 = vld [vmem:[#allocation13 + $0x260] sm:$0xff] }
 0x5d9   :  { %3496 = vmatprep.subr.bf16.mxu0 %v2992_v11 }
 0x5db   :  { %3456 = vmatpush2.bf16.msra.mxu1 %v2879_v23  ;;  %v2720_v23 = vunpack.c.h.s8.bf16 %v2419_v53 }
 0x5dc   :  { %3497 = vmatpush2.bf16.msra.mxu0 %v2991_v3  ;;  %3457 = vmatprep.subr.bf16.mxu1 %v2873_v1  ;;  %v2657_v3 = vunpack.c.l.s8.bf16 %v2391_v21 }
 0x5dd   :  { %3498 = vmatprep.subr.bf16.mxu0 %v2985_v8  ;;  %v2384_v8 = vld [vmem:[#allocation13 + $0x148] sm:$0xff] }
 0x5df   :  { %3458 = vmatpush2.bf16.msra.mxu1 %v2872_v50  ;;  %v2713_v50 = vunpack.c.l.s8.bf16 %v2419_v53 }
 0x5e0   :  { %3499 = vmatpush2.bf16.msra.mxu0 %v2984_v38  ;;  %3459 = vmatprep.subr.bf16.mxu1 %v2866_v45  ;;  %v2650_v38 = vunpack.c.h.s8.bf16 %v2384_v8  ;;  %v2356_v45 = vld [vmem:[#allocation13 + $0x68] sm:$0xff] }
 0x5e1   :  { %3500 = vmatprep.subr.bf16.mxu0 %v2978_v46  ;;  %v2594_v59 = vunpack.c.h.s8.bf16 %v2356_v45  ;;  %v2587_v44 = vunpack.c.l.s8.bf16 %v2356_v45 }
 0x5e3   :  { %3460 = vmatpush2.bf16.msra.mxu1 %v2865_v63  ;;  %v2706_v63 = vunpack.c.h.s8.bf16 %v2412_v55 }
 0x5e4   :  { %3501 = vmatpush2.bf16.msra.mxu0 %v2977_v48  ;;  %3461 = vmatprep.subr.bf16.mxu1 %v2859_v61  ;;  %v2643_v48 = vunpack.c.l.s8.bf16 %v2384_v8 }
 0x5e5   :  { %3502 = vmatprep.subr.bf16.mxu0 %v2971_v0  ;;  %v2433_v0 = vld [vmem:[#allocation13 + $0x2d0] sm:$0xff] }
 0x5e7   :  { %3462 = vmatpush2.bf16.msra.mxu1 %v2858_v43  ;;  %v2699_v43 = vunpack.c.l.s8.bf16 %v2412_v55 }
 0x5e8   :  { %3503 = vmatpush2.bf16.msra.mxu0 %v2970_v34  ;;  %3463 = vmatprep.subr.bf16.mxu1 %v2852_v29  ;;  %v2636_v34 = vunpack.c.h.s8.bf16 %v2377_v9  ;;  %v2349_v29 = vld [vmem:[#allocation13 + $0x30] sm:$0xff] }
 0x5e9   :  { %3504 = vmatprep.subr.bf16.mxu0 %v2964_v12  ;;  %v2748_v12 = vunpack.c.h.s8.bf16 %v2433_v0  ;;  %v2580_v42 = vunpack.c.h.s8.bf16 %v2349_v29  ;;  %v2573_v39 = vunpack.c.l.s8.bf16 %v2349_v29 }
 0x5eb   :  { %3464 = vmatpush2.bf16.msra.mxu1 %v2851_v4  ;;  %v2692_v4 = vunpack.c.h.s8.bf16 %v2405_v20 }
 0x5ec   :  { %3505 = vmatpush2.bf16.msra.mxu0 %v2963_v5  ;;  %3867 = vmatprep.subr.bf16.mxu1 %v2678_v7  ;;  %v2629_v5 = vunpack.c.l.s8.bf16 %v2377_v9  ;;  %v2741_v7 = vunpack.c.l.s8.bf16 %v2433_v0 }
 0x5ed   :  { %3889 = vmatprep.subr.bf16.mxu0 %v2790_v33  ;;  %v2566_v33 = vld [vmem:[#allocation13 + $0x6f8] sm:$0xff] }
 0x5ee   :  { %v4887_v19 = vpop.f32.mrf.mxu1  ;;  %3466 = vmatmul.mubr.bf16.vlgmr.msra.gmra.mxu1 %v4835_v15  ;;  %v3014_v21 = vunpack.c.h.s8.bf16 %v2566_v33  ;;  %v3007_v30 = vunpack.c.l.s8.bf16 %v2566_v33 }
 0x5ef   :  { %v4890_v22 = vpop.f32.mrf.mxu0  ;;  %3507 = vmatmul.mubr.bf16.vlgmr.msra.gmra.mxu0 %v4839_v54  ;;  %3868 = vmatpush3.bf16.msra.mxu1 %v2622_v13  ;;  %v2685_v13 = vunpack.c.l.s8.bf16 %v2405_v20 }
 0x5f0   :  { %3547 = vmatprep.mubr.bf16.mxu1 %v4813_v35  ;;  %3890 = vmatpush3.bf16.msra.mxu0 %v2734_v51  ;;  %v4894_v25 = vpop.f32.mrf.mxu1  ;;  %v2902_v51 = vunpack.c.h.s8.bf16 %v2510_v40 }
 0x5f1   :  { %3587 = vmatprep.mubr.bf16.mxu0 %v4815_v37  ;;  %v4897_v49 = vpop.f32.mrf.mxu0  ;;  %3869 = vmatprep.subr.bf16.mxu1 %v2671_v17  ;;  %v2440_v37 = vld [vmem:[#allocation13 + $0x308] sm:$0xff]  ;;  %v2482_v17 = vld [vmem:[#allocation13 + $0x458] sm:$0xff] }
 0x5f2   :  { %v3225_v11 = vpop.f32.mrf.mxu1  ;;  %3891 = vmatprep.subr.bf16.mxu0 %v2783_v18  ;;  %v2762_v46 = vunpack.c.h.s8.bf16 %v2440_v37  ;;  %v2755_v61 = vunpack.c.l.s8.bf16 %v2440_v37  ;;  %v2538_v18 = vld [vmem:[#allocation13 + $0x618] sm:$0xff]  ;;  %v2846_v10 = vunpack.c.h.s8.bf16 %v2482_v17  ;;  %v2839_v53 = vunpack.c.l.s8.bf16 %v2482_v17 }
 0x5f3   :  { %v3266_v47 = vpop.f32.mrf.mxu0  ;;  %3870 = vmatpush3.bf16.msra.mxu1 %v2615_v24  ;;  %v2958_v24 = vunpack.c.h.s8.bf16 %v2538_v18  ;;  %v2951_v11 = vunpack.c.l.s8.bf16 %v2538_v18  ;;  %v3265_v33 = vadd.f32 %v4897_v49, %v4894_v25  ;;  %v3732_v18 = vrot.slane %v4865_v57, %v4526_v14 }
 0x5f4   :  { %3892 = vmatpush3.bf16.msra.mxu0 %v2727_v27  ;;  %v3226_v35 = vpop.f32.mrf.mxu1  ;;  %3871 = vmatprep.subr.bf16.mxu1 %v2664_v52  ;;  %v2895_v27 = vunpack.c.l.s8.bf16 %v2510_v40  ;;  %v2503_v52 = vld [vmem:[#allocation13 + $0x500] sm:$0xff]  ;;  %v3736_v49 = vrot.slane %v4865_v57, %v4529_v16 }
 0x5f5   :  { %v3267_v1 = vpop.f32.mrf.mxu0  ;;  %3893 = vmatprep.subr.bf16.mxu0 %v2776_v56  ;;  %v2559_v56 = vld [vmem:[#allocation13 + $0x6c0] sm:$0xff]  ;;  %v2888_v47 = vunpack.c.h.s8.bf16 %v2503_v52 }
 0x5f6   :  { %v3000_v35 = vunpack.c.h.s8.bf16 %v2559_v56  ;;  %v2993_v1 = vunpack.c.l.s8.bf16 %v2559_v56 }
 0x5f7   :  { %3872 = vmatpush3.bf16.msra.mxu1 %v2608_v28  ;;  %v2475_v28 = vld [vmem:[#allocation13 + $0x420] sm:$0xff] }
 0x5f8   :  { %3894 = vmatpush3.bf16.msra.mxu0 %v2720_v23  ;;  %3873 = vmatprep.subr.bf16.mxu1 %v2657_v3  ;;  %v2531_v23 = vld [vmem:[#allocation13 + $0x5e0] sm:$0xff]  ;;  %v2825_v8 = vunpack.c.l.s8.bf16 %v2475_v28 }
 0x5f9   :  { %3895 = vmatprep.subr.bf16.mxu0 %v2769_v6  ;;  %v2944_v3 = vunpack.c.h.s8.bf16 %v2531_v23  ;;  %v2496_v6 = vld [vmem:[#allocation13 + $0x4c8] sm:$0xff]  ;;  %v2937_v37 = vunpack.c.l.s8.bf16 %v2531_v23 }
 0x5fa   :  { %v2867_v55 = vunpack.c.l.s8.bf16 %v2496_v6 }
 0x5fb   :  { %3874 = vmatpush3.bf16.msra.mxu1 %v2601_v31  ;;  %v2468_v31 = vld [vmem:[#allocation13 + $0x3e8] sm:$0xff] }
 0x5fc   :  { %3896 = vmatpush3.bf16.msra.mxu0 %v2713_v50  ;;  %3875 = vmatprep.subr.bf16.mxu1 %v2650_v38  ;;  %v2524_v38 = vld [vmem:[#allocation13 + $0x5a8] sm:$0xff]  ;;  %v2818_v45 = vunpack.c.h.s8.bf16 %v2468_v31 }
 0x5fd   :  { %3897 = vmatprep.subr.bf16.mxu0 %v2762_v46  ;;  %v2930_v46 = vunpack.c.h.s8.bf16 %v2524_v38  ;;  %v2923_v9 = vunpack.c.l.s8.bf16 %v2524_v38  ;;  %v3740_v38 = vrot.slane %v4865_v57, %v4649_v62 }
 0x5ff   :  { %3876 = vmatpush3.bf16.msra.mxu1 %v2594_v59 }
 0x600   :  { %3898 = vmatpush3.bf16.msra.mxu0 %v2706_v63  ;;  %3877 = vmatprep.subr.bf16.mxu1 %v2643_v48  ;;  %v2489_v63 = vld [vmem:[#allocation13 + $0x490] sm:$0xff] }
 0x601   :  { %3899 = vmatprep.subr.bf16.mxu0 %v2755_v61  ;;  %v2545_v48 = vld [vmem:[#allocation13 + $0x650] sm:$0xff]  ;;  %v2811_v61 = vunpack.c.l.s8.bf16 %v2468_v31  ;;  %v2860_v0 = vunpack.c.h.s8.bf16 %v2489_v63  ;;  %v2853_v20 = vunpack.c.l.s8.bf16 %v2489_v63 }
 0x603   :  { %3878 = vmatpush3.bf16.msra.mxu1 %v2587_v44  ;;  %v2461_v44 = vld [vmem:[#allocation13 + $0x3b0] sm:$0xff] }
 0x604   :  { %3900 = vmatpush3.bf16.msra.mxu0 %v2699_v43  ;;  %3879 = vmatprep.subr.bf16.mxu1 %v2636_v34  ;;  %v2972_v43 = vunpack.c.h.s8.bf16 %v2545_v48  ;;  %v2517_v34 = vld [vmem:[#allocation13 + $0x570] sm:$0xff]  ;;  %v2804_v29 = vunpack.c.h.s8.bf16 %v2461_v44 }
 0x605   :  { %3901 = vmatprep.subr.bf16.mxu0 %v2748_v12  ;;  %v2916_v12 = vunpack.c.h.s8.bf16 %v2517_v34 }
 0x607   :  { %3880 = vmatpush3.bf16.msra.mxu1 %v2580_v42  ;;  %v2965_v42 = vunpack.c.l.s8.bf16 %v2545_v48 }
 0x608   :  { %3902 = vmatpush3.bf16.msra.mxu0 %v2692_v4  ;;  %3881 = vmatprep.subr.bf16.mxu1 %v2629_v5  ;;  %v2797_v4 = vunpack.c.l.s8.bf16 %v2461_v44  ;;  %v2909_v5 = vunpack.c.l.s8.bf16 %v2517_v34 }
 0x609   :  { %3903 = vmatprep.subr.bf16.mxu0 %v2741_v7  ;;  %v3263_v7 = vadd.f32 %v4890_v22, %v4887_v19 }
 0x60b   :  { %3882 = vmatpush3.bf16.msra.mxu1 %v2573_v39 }
 0x60c   :  { %3904 = vmatpush3.bf16.msra.mxu0 %v2685_v13  ;;  %3911 = vmatprep.subr.bf16.mxu1 %v2902_v51  ;;  %v3688_v51 = vrot.slane %v4861_v26, %v4526_v14 }
 0x60d   :  { %3933 = vmatprep.subr.bf16.mxu0 %v3014_v21 }
 0x60e   :  { %3548 = vmatmul.mubr.bf16.vlgmr.msra.gmra.mxu1 %v4817_v2  ;;  %v2832_v2 = vunpack.c.h.s8.bf16 %v2475_v28 }
 0x60f   :  { %3588 = vmatmul.mubr.bf16.vlgmr.msra.gmra.mxu0 %v4819_v32  ;;  %3912 = vmatpush3.bf16.msra.mxu1 %v2846_v10  ;;  %v2881_v32 = vunpack.c.l.s8.bf16 %v2503_v52 }
 0x610   :  { %3627 = vmatprep.mubr.bf16.mxu1 %v4827_v41  ;;  %3934 = vmatpush3.bf16.msra.mxu0 %v2958_v24  ;;  %v2552_v41 = vld [vmem:[#allocation13 + $0x688] sm:$0xff] }
 0x611   :  { %3667 = vmatprep.mubr.bf16.mxu0 %v4829_v60  ;;  %3913 = vmatprep.subr.bf16.mxu1 %v2895_v27  ;;  %v2874_v60 = vunpack.c.h.s8.bf16 %v2496_v6  ;;  %v2986_v50 = vunpack.c.h.s8.bf16 %v2552_v41  ;;  %v2979_v59 = vunpack.c.l.s8.bf16 %v2552_v41 }
 0x612   :  { %3935 = vmatprep.subr.bf16.mxu0 %v3007_v30 }
 0x613   :  { %3914 = vmatpush3.bf16.msra.mxu1 %v2839_v53 }
 0x614   :  { %3936 = vmatpush3.bf16.msra.mxu0 %v2951_v11  ;;  %3915 = vmatprep.subr.bf16.mxu1 %v2888_v47 }
 0x615   :  { %3937 = vmatprep.subr.bf16.mxu0 %v3000_v35 }
 0x617   :  { %3916 = vmatpush3.bf16.msra.mxu1 %v2832_v2 }
 0x618   :  { %3938 = vmatpush3.bf16.msra.mxu0 %v2944_v3  ;;  %3917 = vmatprep.subr.bf16.mxu1 %v2881_v32 }
 0x619   :  { %3939 = vmatprep.subr.bf16.mxu0 %v2993_v1 }
 0x61b   :  { %3918 = vmatpush3.bf16.msra.mxu1 %v2825_v8 }
 0x61c   :  { %3940 = vmatpush3.bf16.msra.mxu0 %v2937_v37  ;;  %3919 = vmatprep.subr.bf16.mxu1 %v2874_v60  ;;  %v3696_v60 = vrot.slane %v4861_v26, %v4649_v62 }
 0x61d   :  { %3941 = vmatprep.subr.bf16.mxu0 %v2986_v50 }
 0x61f   :  { %3920 = vmatpush3.bf16.msra.mxu1 %v2818_v45 }
 0x620   :  { %3942 = vmatpush3.bf16.msra.mxu0 %v2930_v46  ;;  %3921 = vmatprep.subr.bf16.mxu1 %v2867_v55  ;;  %v3700_v55 = vrot.slane %v4861_v26, %v4637_v58 }
 0x621   :  { %3943 = vmatprep.subr.bf16.mxu0 %v2979_v59 }
 0x623   :  { %3922 = vmatpush3.bf16.msra.mxu1 %v2811_v61  ;;  %v3744_v61 = vrot.slane %v4865_v57, %v4637_v58 }
 0x624   :  { %3944 = vmatpush3.bf16.msra.mxu0 %v2923_v9  ;;  %3923 = vmatprep.subr.bf16.mxu1 %v2860_v0 }
 0x625   :  { %3945 = vmatprep.subr.bf16.mxu0 %v2972_v43 }
 0x627   :  { %3924 = vmatpush3.bf16.msra.mxu1 %v2804_v29 }
 0x628   :  { %3946 = vmatpush3.bf16.msra.mxu0 %v2916_v12  ;;  %3925 = vmatprep.subr.bf16.mxu1 %v2853_v20 }
 0x629   :  { %3947 = vmatprep.subr.bf16.mxu0 %v2965_v42 }
 0x62b   :  { %3926 = vmatpush3.bf16.msra.mxu1 %v2797_v4 }
 0x62c   :  { %3948 = vmatpush3.bf16.msra.mxu0 %v2909_v5 }
 0x62e   :  { %v3303_v40 = vpop.f32.mrf.mxu1  ;;  %3628 = vmatmul.mubr.bf16.vlgmr.msra.gmra.mxu1 %v4835_v15  ;;  %v3692_v15 = vrot.slane %v4861_v26, %v4529_v16 }
 0x62f   :  { %v3304_v39 = vadd.f32 %v3303_v40, %v3263_v7  ;;  %v3344_v13 = vpop.f32.mrf.mxu0  ;;  %3668 = vmatmul.mubr.bf16.vlgmr.msra.gmra.mxu0 %v4839_v54 }
 0x630   :  { %v3305_v17 = vpop.f32.mrf.mxu1 }
 0x631   :  { %v3345_v21 = vadd.f32 %v3344_v13, %v3304_v39  ;;  %v3306_v10 = vadd.f32 %v3305_v17, %v3265_v33  ;;  %v3346_v19 = vpop.f32.mrf.mxu0 }
 0x632   :  { %v3307_v22 = vpop.f32.mrf.mxu1 }
 0x633   :  { %v3714_v24 = vmul.f32 %v3688_v51, %v3345_v21  ;;  %v3347_v25 = vadd.f32 %v3346_v19, %v3306_v10  ;;  %v3348_v27 = vpop.f32.mrf.mxu0 }
 0x634   :  { %v3308_v52 = vpop.f32.mrf.mxu1 }
 0x635   :  { %v3758_v30 = vadd.f32 %v3732_v18, %v3714_v24  ;;  %v3715_v54 = vmul.f32 %v3692_v15, %v3347_v25  ;;  %v3349_v56 = vpop.f32.mrf.mxu0  ;;  %v3704_v25 = vrot.slane %v4861_v26, %v4710_v36 }
 0x637   :  { %4127 = vtanh.f32 %v3758_v30  ;;  %v3759_v53 = vadd.f32 %v3736_v49, %v3715_v54  ;;  %v3748_v30 = vrot.slane %v4865_v57, %v4710_v36 }
 0x639   :  { %4129 = vtanh.f32 %v3759_v53 }
 0x644   :  { %v4128_v14 = vpop.eup %4127 }
 0x645   :  { %3772 = vst [vmem:[%s4961_s17 + $0x10] sm:$0xff] %v4128_v14 }
 0x646   :  { %v4130_v11 = vpop.eup %4129 }
 0x647   :  { %3773 = vst [vmem:[%s4961_s17 + $0x18] sm:$0xff] %v4130_v11 }
 0x66e   :  { %v3385_v47 = vpop.f32.mrf.mxu1 }
 0x66f   :  { %v3426_v16 = vpop.f32.mrf.mxu0 }
 0x670   :  { %v3387_v28 = vpop.f32.mrf.mxu1  ;;  %v3427_v1 = vadd.f32 %v3426_v16, %v3385_v47 }
 0x671   :  { %v3428_v35 = vpop.f32.mrf.mxu0 }
 0x672   :  { %v3389_v23 = vpop.f32.mrf.mxu1  ;;  %v3429_v41 = vadd.f32 %v3428_v35, %v3387_v28 }
 0x673   :  { %v3430_v2 = vpop.f32.mrf.mxu0 }
 0x674   :  { %v3390_v3 = vpop.f32.mrf.mxu1 }
 0x675   :  { %v3431_v32 = vpop.f32.mrf.mxu0 }
 0x6ae   :  { %v3467_v6 = vpop.f32.mrf.mxu1 }
 0x6af   :  { %v3468_v8 = vadd.f32 %v3467_v6, %v3427_v1  ;;  %v3508_v37 = vpop.f32.mrf.mxu0 }
 0x6b0   :  { %v3469_v31 = vpop.f32.mrf.mxu1 }
 0x6b1   :  { %v3509_v50 = vadd.f32 %v3508_v37, %v3468_v8  ;;  %v3470_v45 = vadd.f32 %v3469_v31, %v3429_v41  ;;  %v3510_v46 = vpop.f32.mrf.mxu0 }
 0x6b2   :  { %v3471_v59 = vpop.f32.mrf.mxu1 }
 0x6b3   :  { %v3716_v63 = vmul.f32 %v3696_v60, %v3509_v50  ;;  %v3511_v48 = vadd.f32 %v3510_v46, %v3470_v45  ;;  %v3512_v9 = vpop.f32.mrf.mxu0 }
 0x6b4   :  { %v3472_v0 = vpop.f32.mrf.mxu1 }
 0x6b5   :  { %v3760_v44 = vadd.f32 %v3740_v38, %v3716_v63  ;;  %v3717_v43 = vmul.f32 %v3700_v55, %v3511_v48  ;;  %v3513_v34 = vpop.f32.mrf.mxu0 }
 0x6b7   :  { %4131 = vtanh.f32 %v3760_v44  ;;  %v3761_v29 = vadd.f32 %v3744_v61, %v3717_v43 }
 0x6b9   :  { %4133 = vtanh.f32 %v3761_v29 }
 0x6c4   :  { %v4132_v62 = vpop.eup %4131 }
 0x6c5   :  { %3774 = vst [vmem:[%s4961_s17 + $0x20] sm:$0xff] %v4132_v62 }
 0x6c6   :  { %v4134_v12 = vpop.eup %4133 }
 0x6c7   :  { %3775 = vst [vmem:[%s4961_s17 + $0x28] sm:$0xff] %v4134_v12 }
 0x6ce   :  { %v3883_v20 = vpop.f32.mrf.mxu1 }
 0x6cf   :  { %v3905_v58 = vpop.f32.mrf.mxu0 }
 0x6d0   :  { %v3884_v42 = vpop.f32.mrf.mxu1 }
 0x6d1   :  { %v3906_v4 = vpop.f32.mrf.mxu0  ;;  %v3885_v39 = vadd.f32 %v3884_v42, %v3883_v20 }
 0x6d2   :  { %v3886_v5 = vpop.f32.mrf.mxu1  ;;  %v3907_v13 = vadd.f32 %v3906_v4, %v3905_v58 }
 0x6d3   :  { %v3908_v7 = vpop.f32.mrf.mxu0 }
 0x6d4   :  { %v3887_v40 = vpop.f32.mrf.mxu1  ;;  %v3590_v18 = vadd.f32 %v3907_v13, %v3885_v39 }
 0x6d5   :  { %v3909_v33 = vpop.f32.mrf.mxu0 }
 0x6ee   :  { %v3927_v51 = vpop.f32.mrf.mxu1 }
 0x6ef   :  { %v3949_v17 = vpop.f32.mrf.mxu0 }
 0x6f0   :  { %v3928_v21 = vpop.f32.mrf.mxu1 }
 0x6f1   :  { %v3929_v10 = vadd.f32 %v3928_v21, %v3927_v51  ;;  %v3950_v19 = vpop.f32.mrf.mxu0 }
 0x6f2   :  { %v3930_v15 = vpop.f32.mrf.mxu1  ;;  %v3951_v24 = vadd.f32 %v3950_v19, %v3949_v17 }
 0x6f3   :  { %v3630_v22 = vadd.f32 %v3929_v10, %v3590_v18  ;;  %v3952_v49 = vpop.f32.mrf.mxu0 }
 0x6f4   :  { %v3931_v27 = vpop.f32.mrf.mxu1 }
 0x6f5   :  { %v3670_v52 = vadd.f32 %v3951_v24, %v3630_v22  ;;  %v3953_v54 = vpop.f32.mrf.mxu0 }
 0x6f7   :  { %v3718_v56 = vmul.f32 %v3704_v25, %v3670_v52 }
 0x6f9   :  { %v3762_v53 = vadd.f32 %v3748_v30, %v3718_v56 }
 0x6fb   :  { %4135 = vtanh.f32 %v3762_v53 }
 0x708   :  { %v4136_v14 = vpop.eup %4135 }
 0x709   :  { %3776 = vst [vmem:[%s4961_s17 + $0x30] sm:$0xff] %v4136_v14 }
 0x70a   :  { %3781 = vsyncpa [#allocation3], 1 }
 0x70b   :  { %3782 = vsyncpa [#allocation5], 1 }
 0x70c   :  { %3783 = vsyncpa [#allocation8], 1 }
 0x70d   :  { %3784 = vsyncpa [#allocation11], 1 }
 0x70e   :  { %3785 = vsyncpa [#allocation14], 1 }
 0x70f   :  { %3786 = vsyncpa [#allocation17], 1 }

</bundles_post_ra>
